<compile_context>
chip_gen: v7x
topology: tpu7x:2x2x1
jax: 0.10.0
libtpu: 0.0.40
codegen_flags: <defaults>
</compile_context>

<pallas_src>
import functools
import math

import jax
import jax.numpy as jnp
import numpy as np
from jax.experimental import pallas as pl
from jax.experimental.pallas import tpu as pltpu


# -----------------------------------------------------------------------------
# Fused per-level kernel
# -----------------------------------------------------------------------------
def _fcos_level_kernel(x_ref, cls_w_ref, cls_p_ref, bbox_w_ref, bbox_p_ref,
                       hcls_w_ref, hcls_b_ref, hbox_w_ref, hbox_b_ref,
                       scale_ref,
                       logits_ref, ctr_ref, bbox_ref,
                       buf_a, buf_b,
                       *, H, W, C, num_convs, num_classes, num_groups):
    Wp = W + 2                     # horizontally padded width
    Q = H * Wp                     # flattened spatial extent seen by the matmuls
    R = buf_a.shape[1]             # (H + 2) * Wp + 2  (flat, fully padded)

    # Zero the scratch buffers so their padding columns are valid zeros.
    buf_a[...] = jnp.zeros_like(buf_a)
    buf_b[...] = jnp.zeros_like(buf_b)

    # Columns q with (q % Wp) >= W are horizontal-padding ("garbage") outputs.
    col = jax.lax.broadcasted_iota(jnp.int32, (1, Q), 1) % Wp
    valid = col < W

    gs = C // num_groups
    if gs > 1:
        ci = jax.lax.broadcasted_iota(jnp.int32, (C, C), 0) // gs
        cj = jax.lax.broadcasted_iota(jnp.int32, (C, C), 1) // gs
        gmat = jnp.where(ci == cj, jnp.float32(1.0 / gs), jnp.float32(0.0))
        group_avg = lambda v: jnp.dot(gmat, v,
                                      preferred_element_type=jnp.float32)
    else:
        # One channel per group: per-channel stats ARE the group stats.
        group_avg = lambda v: v

    def im2col_T(src):
        """Build the (9*C, Q) bf16 patch matrix (tap-major, channel-minor)."""
        taps = []
        for ky in range(3):
            for kx in range(3):
                ks = ky * Wp + kx
                taps.append(src[:, ks:ks + Q].astype(jnp.bfloat16))
        return jnp.concatenate(taps, axis=0)

    inv_n = 1.0 / float(H * W)

    def run_tower(src, dst, w_ref, p_ref):
        # Place the (already horizontally padded) image into src; the tail /
        # head columns of the buffer stay zero (vertical padding rows).
        src[:, Wp + Q:R] = jnp.zeros((C, R - Wp - Q), jnp.float32)
        src[:, Wp:Wp + Q] = x_ref[0]
        cur, nxt = src, dst
        for i in range(num_convs):
            patches = im2col_T(cur)                               # (9C, Q) bf16
            acc = jnp.dot(w_ref[i], patches,
                          preferred_element_type=jnp.float32)     # (C, Q) f32
            prm = p_ref[i]                                        # (C, 3)
            acc = acc + prm[:, 0:1]                               # conv bias
            # GroupNorm: two-pass, padding columns excluded from the stats.
            acc_v = jnp.where(valid, acc, 0.0)
            mean_g = group_avg(jnp.sum(acc_v, axis=1, keepdims=True) * inv_n)
            cent = acc - mean_g
            cent_v = jnp.where(valid, cent, 0.0)
            var_g = group_avg(
                jnp.sum(cent_v * cent_v, axis=1, keepdims=True) * inv_n)
            y = cent * jax.lax.rsqrt(var_g + 1e-5)
            y = y * prm[:, 1:2] + prm[:, 2:3]                     # GN affine
            y = jnp.maximum(y, 0.0)                               # ReLU
            y = jnp.where(valid, y, 0.0)   # keep padding columns exactly zero
            nxt[:, Wp + 1:Wp + 1 + Q] = y
            cur, nxt = nxt, cur
        return cur

    # ---- classification branch: tower -> fused (cls_logits | centerness) ----
    cls_final = run_tower(buf_a, buf_b, cls_w_ref, cls_p_ref)
    patches = im2col_T(cls_final)
    head = jnp.dot(hcls_w_ref[...], patches,
                   preferred_element_type=jnp.float32) + hcls_b_ref[...]
    logits_ref[0] = head[:num_classes, :]
    ctr_ref[0] = head[num_classes:num_classes + 1, :]

    # ---- regression branch: tower -> bbox head -> exp(scale * x) ----
    bbox_final = run_tower(buf_a, buf_b, bbox_w_ref, bbox_p_ref)
    patches = im2col_T(bbox_final)
    bb = jnp.dot(hbox_w_ref[...], patches,
                 preferred_element_type=jnp.float32) + hbox_b_ref[...]
    bbox_ref[0] = jnp.exp(bb[:4, :] * scale_ref[0])


# -----------------------------------------------------------------------------
# Wrapper: one pallas_call per FPN level
# -----------------------------------------------------------------------------
def fcos_level_forward(x_nchw, cls_w, cls_p, bbox_w, bbox_p,
                       hcls_w, hcls_b, hbox_w, hbox_b, scale,
                       *, num_classes, num_convs, num_groups):
    N, C, H, W = x_nchw.shape
    Wp = W + 2
    Q = H * Wp
    R = (H + 2) * Wp + 2

    # One cheap horizontal zero-pad per level; vertical padding is provided by
    # the zeroed borders of the in-kernel scratch buffers.
    xp = jnp.pad(x_nchw, ((0, 0), (0, 0), (0, 0), (1, 1))).reshape(N, C, Q)

    kern = functools.partial(_fcos_level_kernel, H=H, W=W, C=C,
                             num_convs=num_convs, num_classes=num_classes,
                             num_groups=num_groups)

    def full_spec(arr):
        shape = tuple(arr.shape)
        return pl.BlockSpec(shape, lambda n, _s=shape: (0,) * len(_s))

    logits, ctr, bbox = pl.pallas_call(
        kern,
        out_shape=(jax.ShapeDtypeStruct((N, num_classes, Q), jnp.float32),
                   jax.ShapeDtypeStruct((N, 1, Q), jnp.float32),
                   jax.ShapeDtypeStruct((N, 4, Q), jnp.float32)),
        grid=(N,),
        in_specs=[
            pl.BlockSpec((1, C, Q), lambda n: (n, 0, 0)),
            full_spec(cls_w), full_spec(cls_p),
            full_spec(bbox_w), full_spec(bbox_p),
            full_spec(hcls_w), full_spec(hcls_b),
            full_spec(hbox_w), full_spec(hbox_b),
            pl.BlockSpec(memory_space=pltpu.MemorySpace.SMEM),   # scale scalar
        ],
        out_specs=(pl.BlockSpec((1, num_classes, Q), lambda n: (n, 0, 0)),
                   pl.BlockSpec((1, 1, Q), lambda n: (n, 0, 0)),
                   pl.BlockSpec((1, 4, Q), lambda n: (n, 0, 0))),
        scratch_shapes=[pltpu.VMEM((C, R), jnp.float32),
                        pltpu.VMEM((C, R), jnp.float32)],
        compiler_params=pltpu.CompilerParams(
            dimension_semantics=("parallel",)),
    )(xp, cls_w, cls_p, bbox_w, bbox_p, hcls_w, hcls_b, hbox_w, hbox_b, scale)

    def to_nchw(o):
        ch = o.shape[1]
        return o.reshape(N, ch, H, Wp)[:, :, :, :W]   # drop pad columns

    return to_nchw(logits), to_nchw(ctr), to_nchw(bbox)


# -----------------------------------------------------------------------------
# FCOSHead (parameters initialized deterministically in-script)
# -----------------------------------------------------------------------------
class FCOSHeadPallas:
    def __init__(self, key, in_channels=32, num_convs=2, num_classes=8,
                 prior_prob=0.01, num_groups=32, num_levels=5):
        assert in_channels % num_groups == 0
        self.num_convs = num_convs
        self.num_classes = num_classes
        self.num_groups = num_groups
        C = in_channels

        ks = jax.random.split(key, 2 * num_convs + 3)

        def conv_w(k, cin, cout):
            # PyTorch init: normal_(weight, std=0.01); stored HWIO for the ref.
            return 0.01 * jax.random.normal(k, (3, 3, cin, cout), jnp.float32)

        # Reference (HWIO, f32) parameters ------------------------------------
        self.cls_tower, self.bbox_tower = [], []
        for i in range(num_convs):
            self.cls_tower.append((conv_w(ks[i], C, C),
                                   jnp.zeros((C,), jnp.float32),   # conv bias
                                   jnp.ones((C,), jnp.float32),    # GN gamma
                                   jnp.zeros((C,), jnp.float32)))  # GN beta
            self.bbox_tower.append((conv_w(ks[num_convs + i], C, C),
                                    jnp.zeros((C,), jnp.float32),
                                    jnp.ones((C,), jnp.float32),
                                    jnp.zeros((C,), jnp.float32)))
        self.cls_w = conv_w(ks[2 * num_convs], C, num_classes)
        bias_value = -math.log((1 - prior_prob) / prior_prob)
        self.cls_b = jnp.full((num_classes,), bias_value, jnp.float32)
        self.bbox_w = conv_w(ks[2 * num_convs + 1], C, 4)
        self.bbox_b = jnp.zeros((4,), jnp.float32)
        self.ctr_w = conv_w(ks[2 * num_convs + 2], C, 1)
        self.ctr_b = jnp.zeros((1,), jnp.float32)
        # Scale modules: learnable scalar, init 1.0, one per FPN level.
        self.scales = [jnp.ones((1,), jnp.float32) for _ in range(num_levels)]

        # Kernel-layout parameters (bf16 matmul weights, f32 affine params) ---
        def to_kw(w_hwio):
            cout = w_hwio.shape[-1]
            # (3,3,Cin,Cout) -> (Cout, 9*Cin), tap-major / channel-minor.
            return jnp.transpose(w_hwio, (3, 0, 1, 2)).reshape(cout, -1)

        self.cls_w_k = jnp.stack(
            [to_kw(w) for (w, _, _, _) in self.cls_tower]).astype(jnp.bfloat16)
        self.cls_p_k = jnp.stack(
            [jnp.stack([b, g, be], axis=-1) for (_, b, g, be) in self.cls_tower])
        self.bbox_w_k = jnp.stack(
            [to_kw(w) for (w, _, _, _) in self.bbox_tower]).astype(jnp.bfloat16)
        self.bbox_p_k = jnp.stack(
            [jnp.stack([b, g, be], axis=-1) for (_, b, g, be) in self.bbox_tower])

        hp_cls = ((num_classes + 1 + 7) // 8) * 8     # fused cls|ctr head rows
        hcls_w = jnp.concatenate([to_kw(self.cls_w), to_kw(self.ctr_w)], axis=0)
        hcls_b = jnp.concatenate([self.cls_b, self.ctr_b], axis=0)
        self.hcls_w_k = jnp.pad(
            hcls_w, ((0, hp_cls - (num_classes + 1)), (0, 0))).astype(jnp.bfloat16)
        self.hcls_b_k = jnp.pad(
            hcls_b, (0, hp_cls - (num_classes + 1))).reshape(hp_cls, 1)

        hp_box = 8
        self.hbox_w_k = jnp.pad(
            to_kw(self.bbox_w), ((0, hp_box - 4), (0, 0))).astype(jnp.bfloat16)
        self.hbox_b_k = jnp.pad(self.bbox_b, (0, hp_box - 4)).reshape(hp_box, 1)

    def __call__(self, features_nchw):
        logits, bbox_reg, centerness = [], [], []
        for l, feat in enumerate(features_nchw):
            lg, ct, bb = fcos_level_forward(
                feat.astype(jnp.float32),
                self.cls_w_k, self.cls_p_k, self.bbox_w_k, self.bbox_p_k,
                self.hcls_w_k, self.hcls_b_k, self.hbox_w_k, self.hbox_b_k,
                self.scales[l],
                num_classes=self.num_classes, num_convs=self.num_convs,
                num_groups=self.num_groups)
            logits.append(lg)
            centerness.append(ct)
            bbox_reg.append(bb)
        return logits, bbox_reg, centerness

    # Pure-JAX reference (correctness verification only).
    def reference(self, features_nchw):
        def conv(x, w_hwio, b):
            y = jax.lax.conv_general_dilated(
                x, w_hwio, window_strides=(1, 1), padding="SAME",
                dimension_numbers=("NHWC", "HWIO", "NHWC"))
            return y + b.reshape(1, 1, 1, -1)

        def gn(x, gamma, beta, G):
            N, H, W, C = x.shape
            xg = x.reshape(N, H, W, G, C // G)
            mean = xg.mean(axis=(1, 2, 4), keepdims=True)
            var = ((xg - mean) ** 2).mean(axis=(1, 2, 4), keepdims=True)
            xg = (xg - mean) / jnp.sqrt(var + 1e-5)
            return (xg.reshape(N, H, W, C) * gamma.reshape(1, 1, 1, C)
                    + beta.reshape(1, 1, 1, C))

        logits, bbox_reg, centerness = [], [], []
        for l, feat in enumerate(features_nchw):
            x = jnp.transpose(feat, (0, 2, 3, 1)).astype(jnp.float32)
            cls_t = x
            for (w, b, g, be) in self.cls_tower:
                cls_t = jax.nn.relu(gn(conv(cls_t, w, b), g, be, self.num_groups))
            bbox_t = x
            for (w, b, g, be) in self.bbox_tower:
                bbox_t = jax.nn.relu(gn(conv(bbox_t, w, b), g, be, self.num_groups))
            lg = conv(cls_t, self.cls_w, self.cls_b)
            ct = conv(cls_t, self.ctr_w, self.ctr_b)
            bb = jnp.exp(self.scales[l][0] * conv(bbox_t, self.bbox_w, self.bbox_b))
            logits.append(jnp.transpose(lg, (0, 3, 1, 2)))
            centerness.append(jnp.transpose(ct, (0, 3, 1, 2)))
            bbox_reg.append(jnp.transpose(bb, (0, 3, 1, 2)))
        return logits, bbox_reg, centerness


# -----------------------------------------------------------------------------
# Main
# -----------------------------------------------------------------------------
if __name__ == "__main__":
    # Small, GroupNorm-compatible config: in_channels=32 (32 groups),
    # NUM_CONVS=2, NUM_CLASSES-1 = 8, prior_prob=0.01, two FPN levels.
    key = jax.random.PRNGKey(0)
    kparam, kfeat = jax.random.split(key)
    head = FCOSHeadPallas(kparam, in_channels=32, num_convs=2,
                          num_classes=8, prior_prob=0.01)

    k1, k2 = jax.random.split(kfeat)
    features = [
        jax.random.normal(k1, (2, 32, 16, 16), jnp.float32),  # level 0 (NCHW)
        jax.random.normal(k2, (2, 32, 8, 8), jnp.float32),    # level 1 (NCHW)
    ]

    logits, bbox_reg, centerness = head(features)
    jax.block_until_ready((logits, bbox_reg, centerness))

    # Verify against a pure-JAX f32 reference (kernel matmuls are bf16).
    ref_l, ref_b, ref_c = head.reference(features)
    for got, ref in zip(logits + bbox_reg + centerness, ref_l + ref_b + ref_c):
        np.testing.assert_allclose(np.asarray(got), np.asarray(ref),
                                   rtol=2e-2, atol=2e-2)

    print("KERNEL_OK")
</pallas_src>

<mosaic_0001>
module attributes {stable_mosaic.version = 11 : i64} {
  func.func @_fcos_level_kernel(%arg0: i32, %arg1: memref<1x32x288xf32, #tpu.memory_space<vmem>>, %arg2: memref<2x32x288xbf16, #tpu.memory_space<vmem>>, %arg3: memref<2x32x3xf32, #tpu.memory_space<vmem>>, %arg4: memref<2x32x288xbf16, #tpu.memory_space<vmem>>, %arg5: memref<2x32x3xf32, #tpu.memory_space<vmem>>, %arg6: memref<16x288xbf16, #tpu.memory_space<vmem>>, %arg7: memref<16x1xf32, #tpu.memory_space<vmem>>, %arg8: memref<8x288xbf16, #tpu.memory_space<vmem>>, %arg9: memref<8x1xf32, #tpu.memory_space<vmem>>, %arg10: memref<1xf32, #tpu.memory_space<smem>>, %arg11: memref<1x8x288xf32, #tpu.memory_space<vmem>>, %arg12: memref<1x1x288xf32, #tpu.memory_space<vmem>>, %arg13: memref<1x4x288xf32, #tpu.memory_space<vmem>>, %arg14: memref<32x326xf32, #tpu.memory_space<vmem>>, %arg15: memref<32x326xf32, #tpu.memory_space<vmem>>) attributes {dimension_semantics = [#tpu.dimension_semantics<parallel>], iteration_bounds = array<i64: 2>, scalar_prefetch = 0 : i64, scratch_operands = 2 : i64, tpu.core_type = #tpu.core_type<tc>, window_params = [{transform_indices = @transform_0, window_bounds = array<i64: 1, 32, 288>}, {pipeline_mode = #tpu.pipeline_mode<synchronous>, transform_indices = @transform_1, window_bounds = array<i64: 2, 32, 288>}, {pipeline_mode = #tpu.pipeline_mode<synchronous>, transform_indices = @transform_2, window_bounds = array<i64: 2, 32, 3>}, {pipeline_mode = #tpu.pipeline_mode<synchronous>, transform_indices = @transform_3, window_bounds = array<i64: 2, 32, 288>}, {pipeline_mode = #tpu.pipeline_mode<synchronous>, transform_indices = @transform_4, window_bounds = array<i64: 2, 32, 3>}, {pipeline_mode = #tpu.pipeline_mode<synchronous>, transform_indices = @transform_5, window_bounds = array<i64: 16, 288>}, {pipeline_mode = #tpu.pipeline_mode<synchronous>, transform_indices = @transform_6, window_bounds = array<i64: 16, 1>}, {pipeline_mode = #tpu.pipeline_mode<synchronous>, transform_indices = @transform_7, window_bounds = array<i64: 8, 288>}, {pipeline_mode = #tpu.pipeline_mode<synchronous>, transform_indices = @transform_8, window_bounds = array<i64: 8, 1>}, {transform_indices = @transform_9, window_bounds = array<i64: 1>}, {transform_indices = @transform_10, window_bounds = array<i64: 1, 8, 288>}, {transform_indices = @transform_11, window_bounds = array<i64: 1, 1, 288>}, {transform_indices = @transform_12, window_bounds = array<i64: 1, 4, 288>}]} {
    %cst = arith.constant 0.000000e+00 : f32
    %0 = vector.broadcast %cst : f32 to vector<32x326xf32>
    %c0 = arith.constant 0 : index
    %c0_0 = arith.constant 0 : index
    %1 = vector.load %arg14[%c0, %c0_0] : memref<32x326xf32, #tpu.memory_space<vmem>>, vector<32x326xf32>
    tpu.vector_store %arg14[%c0, %c0_0], %0 {strides = array<i32>} : memref<32x326xf32, #tpu.memory_space<vmem>>, vector<32x326xf32>,
    %cst_1 = arith.constant 0.000000e+00 : f32
    %2 = vector.broadcast %cst_1 : f32 to vector<32x326xf32>
    %c0_2 = arith.constant 0 : index
    %c0_3 = arith.constant 0 : index
    %3 = vector.load %arg15[%c0_2, %c0_3] : memref<32x326xf32, #tpu.memory_space<vmem>>, vector<32x326xf32>
    tpu.vector_store %arg15[%c0_2, %c0_3], %2 {strides = array<i32>} : memref<32x326xf32, #tpu.memory_space<vmem>>, vector<32x326xf32>,
    %4 = tpu.iota {dimensions = array<i32: 1>} : vector<1x288xi32>
    %c18_i32 = arith.constant 18 : i32
    %c0_i32 = arith.constant 0 : i32
    %5 = arith.cmpi eq, %c18_i32, %c0_i32 : i32
    %c1_i32 = arith.constant 1 : i32
    %6 = arith.select %5, %c1_i32, %c18_i32 : i32
    %7 = vector.broadcast %6 : i32 to vector<1x288xi32>
    %8 = arith.remsi %4, %7 : vector<1x288xi32>
    %c0_i32_4 = arith.constant 0 : i32
    %9 = vector.broadcast %c0_i32_4 : i32 to vector<1x288xi32>
    %10 = arith.cmpi ne, %8, %9 : vector<1x288xi32>
    %c0_i32_5 = arith.constant 0 : i32
    %11 = vector.broadcast %c0_i32_5 : i32 to vector<1x288xi32>
    %12 = arith.cmpi slt, %8, %11 : vector<1x288xi32>
    %c0_i32_6 = arith.constant 0 : i32
    %13 = arith.cmpi slt, %6, %c0_i32_6 : i32
    %14 = vector.broadcast %13 : i1 to vector<1x288xi1>
    %15 = vector.broadcast %14 : vector<1x288xi1> to vector<1x288xi1>
    %16 = arith.xori %12, %15 : vector<1x288xi1>
    %17 = arith.andi %16, %10 : vector<1x288xi1>
    %18 = vector.broadcast %6 : i32 to vector<1x288xi32>
    %19 = arith.addi %8, %18 : vector<1x288xi32>
    %20 = arith.select %17, %19, %8 : vector<1x288xi1>, vector<1x288xi32>
    %c16_i32 = arith.constant 16 : i32
    %21 = vector.broadcast %c16_i32 : i32 to vector<1x288xi32>
    %22 = arith.cmpi slt, %20, %21 : vector<1x288xi32>
    %cst_7 = arith.constant 0.000000e+00 : f32
    %23 = vector.broadcast %cst_7 : f32 to vector<32x20xf32>
    %c0_8 = arith.constant 0 : index
    %c306 = arith.constant 306 : index
    %24 = vector.load %arg14[%c0_8, %c306] : memref<32x326xf32, #tpu.memory_space<vmem>>, vector<32x20xf32>
    tpu.vector_store %arg14[%c0_8, %c306], %23 {strides = array<i32>} : memref<32x326xf32, #tpu.memory_space<vmem>>, vector<32x20xf32>,
    %c0_9 = arith.constant 0 : index
    %c0_10 = arith.constant 0 : index
    %c0_11 = arith.constant 0 : index
    %25 = vector.load %arg1[%c0_9, %c0_10, %c0_11] : memref<1x32x288xf32, #tpu.memory_space<vmem>>, vector<1x32x288xf32>
    %26 = vector.shape_cast %25 : vector<1x32x288xf32> to vector<32x288xf32>
    %c0_12 = arith.constant 0 : index
    %c18 = arith.constant 18 : index
    %27 = vector.load %arg14[%c0_12, %c18] : memref<32x326xf32, #tpu.memory_space<vmem>>, vector<32x288xf32>
    tpu.vector_store %arg14[%c0_12, %c18], %26 {strides = array<i32>} : memref<32x326xf32, #tpu.memory_space<vmem>>, vector<32x288xf32>,
    %c0_13 = arith.constant 0 : index
    %c0_14 = arith.constant 0 : index
    %28 = vector.load %arg14[%c0_13, %c0_14] : memref<32x326xf32, #tpu.memory_space<vmem>>, vector<32x288xf32>
    %29 = arith.truncf %28 : vector<32x288xf32> to vector<32x288xbf16>
    %c0_15 = arith.constant 0 : index
    %c1 = arith.constant 1 : index
    %30 = vector.load %arg14[%c0_15, %c1] : memref<32x326xf32, #tpu.memory_space<vmem>>, vector<32x288xf32>
    %31 = arith.truncf %30 : vector<32x288xf32> to vector<32x288xbf16>
    %c0_16 = arith.constant 0 : index
    %c2 = arith.constant 2 : index
    %32 = vector.load %arg14[%c0_16, %c2] : memref<32x326xf32, #tpu.memory_space<vmem>>, vector<32x288xf32>
    %33 = arith.truncf %32 : vector<32x288xf32> to vector<32x288xbf16>
    %c0_17 = arith.constant 0 : index
    %c18_18 = arith.constant 18 : index
    %34 = vector.load %arg14[%c0_17, %c18_18] : memref<32x326xf32, #tpu.memory_space<vmem>>, vector<32x288xf32>
    %35 = arith.truncf %34 : vector<32x288xf32> to vector<32x288xbf16>
    %c0_19 = arith.constant 0 : index
    %c19 = arith.constant 19 : index
    %36 = vector.load %arg14[%c0_19, %c19] : memref<32x326xf32, #tpu.memory_space<vmem>>, vector<32x288xf32>
    %37 = arith.truncf %36 : vector<32x288xf32> to vector<32x288xbf16>
    %c0_20 = arith.constant 0 : index
    %c20 = arith.constant 20 : index
    %38 = vector.load %arg14[%c0_20, %c20] : memref<32x326xf32, #tpu.memory_space<vmem>>, vector<32x288xf32>
    %39 = arith.truncf %38 : vector<32x288xf32> to vector<32x288xbf16>
    %c0_21 = arith.constant 0 : index
    %c36 = arith.constant 36 : index
    %40 = vector.load %arg14[%c0_21, %c36] : memref<32x326xf32, #tpu.memory_space<vmem>>, vector<32x288xf32>
    %41 = arith.truncf %40 : vector<32x288xf32> to vector<32x288xbf16>
    %c0_22 = arith.constant 0 : index
    %c37 = arith.constant 37 : index
    %42 = vector.load %arg14[%c0_22, %c37] : memref<32x326xf32, #tpu.memory_space<vmem>>, vector<32x288xf32>
    %43 = arith.truncf %42 : vector<32x288xf32> to vector<32x288xbf16>
    %c0_23 = arith.constant 0 : index
    %c38 = arith.constant 38 : index
    %44 = vector.load %arg14[%c0_23, %c38] : memref<32x326xf32, #tpu.memory_space<vmem>>, vector<32x288xf32>
    %45 = arith.truncf %44 : vector<32x288xf32> to vector<32x288xbf16>
    %46 = tpu.concatenate %29, %31, %33, %35, %37, %39, %41, %43, %45 in 0 : vector<32x288xbf16>, vector<32x288xbf16>, vector<32x288xbf16>, vector<32x288xbf16>, vector<32x288xbf16>, vector<32x288xbf16>, vector<32x288xbf16>, vector<32x288xbf16>, vector<32x288xbf16> -> vector<288x288xbf16>
    %c0_24 = arith.constant 0 : index
    %c0_25 = arith.constant 0 : index
    %c0_26 = arith.constant 0 : index
    %47 = vector.load %arg2[%c0_24, %c0_25, %c0_26] : memref<2x32x288xbf16, #tpu.memory_space<vmem>>, vector<1x32x288xbf16>
    %48 = vector.shape_cast %47 : vector<1x32x288xbf16> to vector<32x288xbf16>
    %cst_27 = arith.constant dense<0.000000e+00> : vector<32x288xf32>
    %49 = tpu.matmul %48, %46, %cst_27 {dimension_numbers = #tpu.dot_dimension_numbers<[1], [0], [0], [1], [0, 0, 1, 1], [], []>} : vector<32x288xbf16>, vector<288x288xbf16>, vector<32x288xf32> -> vector<32x288xf32>
    %c0_28 = arith.constant 0 : index
    %c0_29 = arith.constant 0 : index
    %c0_30 = arith.constant 0 : index
    %50 = vector.load %arg3[%c0_28, %c0_29, %c0_30] : memref<2x32x3xf32, #tpu.memory_space<vmem>>, vector<1x32x3xf32>
    %51 = vector.shape_cast %50 : vector<1x32x3xf32> to vector<32x3xf32>
    %52 = vector.extract_strided_slice %51 {offsets = [0, 0], sizes = [32, 1], strides = [1, 1]} : vector<32x3xf32> to vector<32x1xf32>
    %53 = vector.broadcast %52 : vector<32x1xf32> to vector<32x288xf32>
    %54 = arith.addf %49, %53 : vector<32x288xf32>
    %cst_31 = arith.constant 0.000000e+00 : f32
    %55 = vector.shape_cast %22 : vector<1x288xi1> to vector<1x288xi1>
    %56 = vector.broadcast %55 : vector<1x288xi1> to vector<32x288xi1>
    %57 = vector.broadcast %cst_31 : f32 to vector<32x288xf32>
    %58 = arith.select %56, %54, %57 : vector<32x288xi1>, vector<32x288xf32>
    %cst_32 = arith.constant dense<0.000000e+00> : vector<32xf32>
    %59 = vector.multi_reduction <add>, %58, %cst_32 [1] : vector<32x288xf32> to vector<32xf32>
    %60 = vector.shape_cast %59 : vector<32xf32> to vector<32x1xf32>
    %cst_33 = arith.constant 3.906250e-03 : f32
    %61 = vector.broadcast %cst_33 : f32 to vector<32x1xf32>
    %62 = arith.mulf %60, %61 : vector<32x1xf32>
    %63 = vector.broadcast %62 : vector<32x1xf32> to vector<32x288xf32>
    %64 = arith.subf %54, %63 : vector<32x288xf32>
    %cst_34 = arith.constant 0.000000e+00 : f32
    %65 = vector.shape_cast %22 : vector<1x288xi1> to vector<1x288xi1>
    %66 = vector.broadcast %65 : vector<1x288xi1> to vector<32x288xi1>
    %67 = vector.broadcast %cst_34 : f32 to vector<32x288xf32>
    %68 = arith.select %66, %64, %67 : vector<32x288xi1>, vector<32x288xf32>
    %69 = arith.mulf %68, %68 : vector<32x288xf32>
    %cst_35 = arith.constant dense<0.000000e+00> : vector<32xf32>
    %70 = vector.multi_reduction <add>, %69, %cst_35 [1] : vector<32x288xf32> to vector<32xf32>
    %71 = vector.shape_cast %70 : vector<32xf32> to vector<32x1xf32>
    %cst_36 = arith.constant 3.906250e-03 : f32
    %72 = vector.broadcast %cst_36 : f32 to vector<32x1xf32>
    %73 = arith.mulf %71, %72 : vector<32x1xf32>
    %cst_37 = arith.constant 9.99999974E-6 : f32
    %74 = vector.broadcast %cst_37 : f32 to vector<32x1xf32>
    %75 = arith.addf %73, %74 : vector<32x1xf32>
    %76 = math.rsqrt %75 : vector<32x1xf32>
    %77 = vector.broadcast %76 : vector<32x1xf32> to vector<32x288xf32>
    %78 = arith.mulf %64, %77 : vector<32x288xf32>
    %79 = vector.extract_strided_slice %51 {offsets = [0, 1], sizes = [32, 1], strides = [1, 1]} : vector<32x3xf32> to vector<32x1xf32>
    %80 = vector.broadcast %79 : vector<32x1xf32> to vector<32x288xf32>
    %81 = arith.mulf %78, %80 : vector<32x288xf32>
    %82 = vector.extract_strided_slice %51 {offsets = [0, 2], sizes = [32, 1], strides = [1, 1]} : vector<32x3xf32> to vector<32x1xf32>
    %83 = vector.broadcast %82 : vector<32x1xf32> to vector<32x288xf32>
    %84 = arith.addf %81, %83 : vector<32x288xf32>
    %cst_38 = arith.constant 0.000000e+00 : f32
    %85 = vector.broadcast %cst_38 : f32 to vector<32x288xf32>
    %86 = arith.maximumf %84, %85 : vector<32x288xf32>
    %cst_39 = arith.constant 0.000000e+00 : f32
    %87 = vector.shape_cast %22 : vector<1x288xi1> to vector<1x288xi1>
    %88 = vector.broadcast %87 : vector<1x288xi1> to vector<32x288xi1>
    %89 = vector.broadcast %cst_39 : f32 to vector<32x288xf32>
    %90 = arith.select %88, %86, %89 : vector<32x288xi1>, vector<32x288xf32>
    %c0_40 = arith.constant 0 : index
    %c19_41 = arith.constant 19 : index
    %91 = vector.load %arg15[%c0_40, %c19_41] : memref<32x326xf32, #tpu.memory_space<vmem>>, vector<32x288xf32>
    tpu.vector_store %arg15[%c0_40, %c19_41], %90 {strides = array<i32>} : memref<32x326xf32, #tpu.memory_space<vmem>>, vector<32x288xf32>,
    %c0_42 = arith.constant 0 : index
    %c0_43 = arith.constant 0 : index
    %92 = vector.load %arg15[%c0_42, %c0_43] : memref<32x326xf32, #tpu.memory_space<vmem>>, vector<32x288xf32>
    %93 = arith.truncf %92 : vector<32x288xf32> to vector<32x288xbf16>
    %c0_44 = arith.constant 0 : index
    %c1_45 = arith.constant 1 : index
    %94 = vector.load %arg15[%c0_44, %c1_45] : memref<32x326xf32, #tpu.memory_space<vmem>>, vector<32x288xf32>
    %95 = arith.truncf %94 : vector<32x288xf32> to vector<32x288xbf16>
    %c0_46 = arith.constant 0 : index
    %c2_47 = arith.constant 2 : index
    %96 = vector.load %arg15[%c0_46, %c2_47] : memref<32x326xf32, #tpu.memory_space<vmem>>, vector<32x288xf32>
    %97 = arith.truncf %96 : vector<32x288xf32> to vector<32x288xbf16>
    %c0_48 = arith.constant 0 : index
    %c18_49 = arith.constant 18 : index
    %98 = vector.load %arg15[%c0_48, %c18_49] : memref<32x326xf32, #tpu.memory_space<vmem>>, vector<32x288xf32>
    %99 = arith.truncf %98 : vector<32x288xf32> to vector<32x288xbf16>
    %c0_50 = arith.constant 0 : index
    %c19_51 = arith.constant 19 : index
    %100 = vector.load %arg15[%c0_50, %c19_51] : memref<32x326xf32, #tpu.memory_space<vmem>>, vector<32x288xf32>
    %101 = arith.truncf %100 : vector<32x288xf32> to vector<32x288xbf16>
    %c0_52 = arith.constant 0 : index
    %c20_53 = arith.constant 20 : index
    %102 = vector.load %arg15[%c0_52, %c20_53] : memref<32x326xf32, #tpu.memory_space<vmem>>, vector<32x288xf32>
    %103 = arith.truncf %102 : vector<32x288xf32> to vector<32x288xbf16>
    %c0_54 = arith.constant 0 : index
    %c36_55 = arith.constant 36 : index
    %104 = vector.load %arg15[%c0_54, %c36_55] : memref<32x326xf32, #tpu.memory_space<vmem>>, vector<32x288xf32>
    %105 = arith.truncf %104 : vector<32x288xf32> to vector<32x288xbf16>
    %c0_56 = arith.constant 0 : index
    %c37_57 = arith.constant 37 : index
    %106 = vector.load %arg15[%c0_56, %c37_57] : memref<32x326xf32, #tpu.memory_space<vmem>>, vector<32x288xf32>
    %107 = arith.truncf %106 : vector<32x288xf32> to vector<32x288xbf16>
    %c0_58 = arith.constant 0 : index
    %c38_59 = arith.constant 38 : index
    %108 = vector.load %arg15[%c0_58, %c38_59] : memref<32x326xf32, #tpu.memory_space<vmem>>, vector<32x288xf32>
    %109 = arith.truncf %108 : vector<32x288xf32> to vector<32x288xbf16>
    %110 = tpu.concatenate %93, %95, %97, %99, %101, %103, %105, %107, %109 in 0 : vector<32x288xbf16>, vector<32x288xbf16>, vector<32x288xbf16>, vector<32x288xbf16>, vector<32x288xbf16>, vector<32x288xbf16>, vector<32x288xbf16>, vector<32x288xbf16>, vector<32x288xbf16> -> vector<288x288xbf16>
    %c1_60 = arith.constant 1 : index
    %c0_61 = arith.constant 0 : index
    %c0_62 = arith.constant 0 : index
    %111 = vector.load %arg2[%c1_60, %c0_61, %c0_62] : memref<2x32x288xbf16, #tpu.memory_space<vmem>>, vector<1x32x288xbf16>
    %112 = vector.shape_cast %111 : vector<1x32x288xbf16> to vector<32x288xbf16>
    %cst_63 = arith.constant dense<0.000000e+00> : vector<32x288xf32>
    %113 = tpu.matmul %112, %110, %cst_63 {dimension_numbers = #tpu.dot_dimension_numbers<[1], [0], [0], [1], [0, 0, 1, 1], [], []>} : vector<32x288xbf16>, vector<288x288xbf16>, vector<32x288xf32> -> vector<32x288xf32>
    %c1_64 = arith.constant 1 : index
    %c0_65 = arith.constant 0 : index
    %c0_66 = arith.constant 0 : index
    %114 = vector.load %arg3[%c1_64, %c0_65, %c0_66] : memref<2x32x3xf32, #tpu.memory_space<vmem>>, vector<1x32x3xf32>
    %115 = vector.shape_cast %114 : vector<1x32x3xf32> to vector<32x3xf32>
    %116 = vector.extract_strided_slice %115 {offsets = [0, 0], sizes = [32, 1], strides = [1, 1]} : vector<32x3xf32> to vector<32x1xf32>
    %117 = vector.broadcast %116 : vector<32x1xf32> to vector<32x288xf32>
    %118 = arith.addf %113, %117 : vector<32x288xf32>
    %cst_67 = arith.constant 0.000000e+00 : f32
    %119 = vector.shape_cast %22 : vector<1x288xi1> to vector<1x288xi1>
    %120 = vector.broadcast %119 : vector<1x288xi1> to vector<32x288xi1>
    %121 = vector.broadcast %cst_67 : f32 to vector<32x288xf32>
    %122 = arith.select %120, %118, %121 : vector<32x288xi1>, vector<32x288xf32>
    %cst_68 = arith.constant dense<0.000000e+00> : vector<32xf32>
    %123 = vector.multi_reduction <add>, %122, %cst_68 [1] : vector<32x288xf32> to vector<32xf32>
    %124 = vector.shape_cast %123 : vector<32xf32> to vector<32x1xf32>
    %cst_69 = arith.constant 3.906250e-03 : f32
    %125 = vector.broadcast %cst_69 : f32 to vector<32x1xf32>
    %126 = arith.mulf %124, %125 : vector<32x1xf32>
    %127 = vector.broadcast %126 : vector<32x1xf32> to vector<32x288xf32>
    %128 = arith.subf %118, %127 : vector<32x288xf32>
    %cst_70 = arith.constant 0.000000e+00 : f32
    %129 = vector.shape_cast %22 : vector<1x288xi1> to vector<1x288xi1>
    %130 = vector.broadcast %129 : vector<1x288xi1> to vector<32x288xi1>
    %131 = vector.broadcast %cst_70 : f32 to vector<32x288xf32>
    %132 = arith.select %130, %128, %131 : vector<32x288xi1>, vector<32x288xf32>
    %133 = arith.mulf %132, %132 : vector<32x288xf32>
    %cst_71 = arith.constant dense<0.000000e+00> : vector<32xf32>
    %134 = vector.multi_reduction <add>, %133, %cst_71 [1] : vector<32x288xf32> to vector<32xf32>
    %135 = vector.shape_cast %134 : vector<32xf32> to vector<32x1xf32>
    %cst_72 = arith.constant 3.906250e-03 : f32
    %136 = vector.broadcast %cst_72 : f32 to vector<32x1xf32>
    %137 = arith.mulf %135, %136 : vector<32x1xf32>
    %cst_73 = arith.constant 9.99999974E-6 : f32
    %138 = vector.broadcast %cst_73 : f32 to vector<32x1xf32>
    %139 = arith.addf %137, %138 : vector<32x1xf32>
    %140 = math.rsqrt %139 : vector<32x1xf32>
    %141 = vector.broadcast %140 : vector<32x1xf32> to vector<32x288xf32>
    %142 = arith.mulf %128, %141 : vector<32x288xf32>
    %143 = vector.extract_strided_slice %115 {offsets = [0, 1], sizes = [32, 1], strides = [1, 1]} : vector<32x3xf32> to vector<32x1xf32>
    %144 = vector.broadcast %143 : vector<32x1xf32> to vector<32x288xf32>
    %145 = arith.mulf %142, %144 : vector<32x288xf32>
    %146 = vector.extract_strided_slice %115 {offsets = [0, 2], sizes = [32, 1], strides = [1, 1]} : vector<32x3xf32> to vector<32x1xf32>
    %147 = vector.broadcast %146 : vector<32x1xf32> to vector<32x288xf32>
    %148 = arith.addf %145, %147 : vector<32x288xf32>
    %cst_74 = arith.constant 0.000000e+00 : f32
    %149 = vector.broadcast %cst_74 : f32 to vector<32x288xf32>
    %150 = arith.maximumf %148, %149 : vector<32x288xf32>
    %cst_75 = arith.constant 0.000000e+00 : f32
    %151 = vector.shape_cast %22 : vector<1x288xi1> to vector<1x288xi1>
    %152 = vector.broadcast %151 : vector<1x288xi1> to vector<32x288xi1>
    %153 = vector.broadcast %cst_75 : f32 to vector<32x288xf32>
    %154 = arith.select %152, %150, %153 : vector<32x288xi1>, vector<32x288xf32>
    %c0_76 = arith.constant 0 : index
    %c19_77 = arith.constant 19 : index
    %155 = vector.load %arg14[%c0_76, %c19_77] : memref<32x326xf32, #tpu.memory_space<vmem>>, vector<32x288xf32>
    tpu.vector_store %arg14[%c0_76, %c19_77], %154 {strides = array<i32>} : memref<32x326xf32, #tpu.memory_space<vmem>>, vector<32x288xf32>,
    %c0_78 = arith.constant 0 : index
    %c0_79 = arith.constant 0 : index
    %156 = vector.load %arg14[%c0_78, %c0_79] : memref<32x326xf32, #tpu.memory_space<vmem>>, vector<32x288xf32>
    %157 = arith.truncf %156 : vector<32x288xf32> to vector<32x288xbf16>
    %c0_80 = arith.constant 0 : index
    %c1_81 = arith.constant 1 : index
    %158 = vector.load %arg14[%c0_80, %c1_81] : memref<32x326xf32, #tpu.memory_space<vmem>>, vector<32x288xf32>
    %159 = arith.truncf %158 : vector<32x288xf32> to vector<32x288xbf16>
    %c0_82 = arith.constant 0 : index
    %c2_83 = arith.constant 2 : index
    %160 = vector.load %arg14[%c0_82, %c2_83] : memref<32x326xf32, #tpu.memory_space<vmem>>, vector<32x288xf32>
    %161 = arith.truncf %160 : vector<32x288xf32> to vector<32x288xbf16>
    %c0_84 = arith.constant 0 : index
    %c18_85 = arith.constant 18 : index
    %162 = vector.load %arg14[%c0_84, %c18_85] : memref<32x326xf32, #tpu.memory_space<vmem>>, vector<32x288xf32>
    %163 = arith.truncf %162 : vector<32x288xf32> to vector<32x288xbf16>
    %c0_86 = arith.constant 0 : index
    %c19_87 = arith.constant 19 : index
    %164 = vector.load %arg14[%c0_86, %c19_87] : memref<32x326xf32, #tpu.memory_space<vmem>>, vector<32x288xf32>
    %165 = arith.truncf %164 : vector<32x288xf32> to vector<32x288xbf16>
    %c0_88 = arith.constant 0 : index
    %c20_89 = arith.constant 20 : index
    %166 = vector.load %arg14[%c0_88, %c20_89] : memref<32x326xf32, #tpu.memory_space<vmem>>, vector<32x288xf32>
    %167 = arith.truncf %166 : vector<32x288xf32> to vector<32x288xbf16>
    %c0_90 = arith.constant 0 : index
    %c36_91 = arith.constant 36 : index
    %168 = vector.load %arg14[%c0_90, %c36_91] : memref<32x326xf32, #tpu.memory_space<vmem>>, vector<32x288xf32>
    %169 = arith.truncf %168 : vector<32x288xf32> to vector<32x288xbf16>
    %c0_92 = arith.constant 0 : index
    %c37_93 = arith.constant 37 : index
    %170 = vector.load %arg14[%c0_92, %c37_93] : memref<32x326xf32, #tpu.memory_space<vmem>>, vector<32x288xf32>
    %171 = arith.truncf %170 : vector<32x288xf32> to vector<32x288xbf16>
    %c0_94 = arith.constant 0 : index
    %c38_95 = arith.constant 38 : index
    %172 = vector.load %arg14[%c0_94, %c38_95] : memref<32x326xf32, #tpu.memory_space<vmem>>, vector<32x288xf32>
    %173 = arith.truncf %172 : vector<32x288xf32> to vector<32x288xbf16>
    %174 = tpu.concatenate %157, %159, %161, %163, %165, %167, %169, %171, %173 in 0 : vector<32x288xbf16>, vector<32x288xbf16>, vector<32x288xbf16>, vector<32x288xbf16>, vector<32x288xbf16>, vector<32x288xbf16>, vector<32x288xbf16>, vector<32x288xbf16>, vector<32x288xbf16> -> vector<288x288xbf16>
    %c0_96 = arith.constant 0 : index
    %c0_97 = arith.constant 0 : index
    %175 = vector.load %arg6[%c0_96, %c0_97] : memref<16x288xbf16, #tpu.memory_space<vmem>>, vector<16x288xbf16>
    %cst_98 = arith.constant dense<0.000000e+00> : vector<16x288xf32>
    %176 = tpu.matmul %175, %174, %cst_98 {dimension_numbers = #tpu.dot_dimension_numbers<[1], [0], [0], [1], [0, 0, 1, 1], [], []>} : vector<16x288xbf16>, vector<288x288xbf16>, vector<16x288xf32> -> vector<16x288xf32>
    %c0_99 = arith.constant 0 : index
    %c0_100 = arith.constant 0 : index
    %177 = vector.load %arg7[%c0_99, %c0_100] : memref<16x1xf32, #tpu.memory_space<vmem>>, vector<16x1xf32>
    %178 = vector.broadcast %177 : vector<16x1xf32> to vector<16x288xf32>
    %179 = arith.addf %176, %178 : vector<16x288xf32>
    %180 = vector.extract_strided_slice %179 {offsets = [0, 0], sizes = [8, 288], strides = [1, 1]} : vector<16x288xf32> to vector<8x288xf32>
    %c0_101 = arith.constant 0 : index
    %c0_102 = arith.constant 0 : index
    %c0_103 = arith.constant 0 : index
    %181 = vector.load %arg11[%c0_101, %c0_102, %c0_103] : memref<1x8x288xf32, #tpu.memory_space<vmem>>, vector<1x8x288xf32>
    %182 = vector.shape_cast %181 : vector<1x8x288xf32> to vector<8x288xf32>
    %183 = vector.shape_cast %180 : vector<8x288xf32> to vector<1x8x288xf32>
    tpu.vector_store %arg11[%c0_101, %c0_102, %c0_103], %183 {strides = array<i32>} : memref<1x8x288xf32, #tpu.memory_space<vmem>>, vector<1x8x288xf32>,
    %184 = vector.extract_strided_slice %179 {offsets = [8, 0], sizes = [1, 288], strides = [1, 1]} : vector<16x288xf32> to vector<1x288xf32>
    %c0_104 = arith.constant 0 : index
    %c0_105 = arith.constant 0 : index
    %c0_106 = arith.constant 0 : index
    %185 = vector.load %arg12[%c0_104, %c0_105, %c0_106] : memref<1x1x288xf32, #tpu.memory_space<vmem>>, vector<1x1x288xf32>
    %186 = vector.shape_cast %185 : vector<1x1x288xf32> to vector<1x288xf32>
    %187 = vector.shape_cast %184 : vector<1x288xf32> to vector<1x1x288xf32>
    tpu.vector_store %arg12[%c0_104, %c0_105, %c0_106], %187 {strides = array<i32>} : memref<1x1x288xf32, #tpu.memory_space<vmem>>, vector<1x1x288xf32>,
    %cst_107 = arith.constant 0.000000e+00 : f32
    %188 = vector.broadcast %cst_107 : f32 to vector<32x20xf32>
    %c0_108 = arith.constant 0 : index
    %c306_109 = arith.constant 306 : index
    %189 = vector.load %arg14[%c0_108, %c306_109] : memref<32x326xf32, #tpu.memory_space<vmem>>, vector<32x20xf32>
    tpu.vector_store %arg14[%c0_108, %c306_109], %188 {strides = array<i32>} : memref<32x326xf32, #tpu.memory_space<vmem>>, vector<32x20xf32>,
    %c0_110 = arith.constant 0 : index
    %c0_111 = arith.constant 0 : index
    %c0_112 = arith.constant 0 : index
    %190 = vector.load %arg1[%c0_110, %c0_111, %c0_112] : memref<1x32x288xf32, #tpu.memory_space<vmem>>, vector<1x32x288xf32>
    %191 = vector.shape_cast %190 : vector<1x32x288xf32> to vector<32x288xf32>
    %c0_113 = arith.constant 0 : index
    %c18_114 = arith.constant 18 : index
    %192 = vector.load %arg14[%c0_113, %c18_114] : memref<32x326xf32, #tpu.memory_space<vmem>>, vector<32x288xf32>
    tpu.vector_store %arg14[%c0_113, %c18_114], %191 {strides = array<i32>} : memref<32x326xf32, #tpu.memory_space<vmem>>, vector<32x288xf32>,
    %c0_115 = arith.constant 0 : index
    %c0_116 = arith.constant 0 : index
    %193 = vector.load %arg14[%c0_115, %c0_116] : memref<32x326xf32, #tpu.memory_space<vmem>>, vector<32x288xf32>
    %194 = arith.truncf %193 : vector<32x288xf32> to vector<32x288xbf16>
    %c0_117 = arith.constant 0 : index
    %c1_118 = arith.constant 1 : index
    %195 = vector.load %arg14[%c0_117, %c1_118] : memref<32x326xf32, #tpu.memory_space<vmem>>, vector<32x288xf32>
    %196 = arith.truncf %195 : vector<32x288xf32> to vector<32x288xbf16>
    %c0_119 = arith.constant 0 : index
    %c2_120 = arith.constant 2 : index
    %197 = vector.load %arg14[%c0_119, %c2_120] : memref<32x326xf32, #tpu.memory_space<vmem>>, vector<32x288xf32>
    %198 = arith.truncf %197 : vector<32x288xf32> to vector<32x288xbf16>
    %c0_121 = arith.constant 0 : index
    %c18_122 = arith.constant 18 : index
    %199 = vector.load %arg14[%c0_121, %c18_122] : memref<32x326xf32, #tpu.memory_space<vmem>>, vector<32x288xf32>
    %200 = arith.truncf %199 : vector<32x288xf32> to vector<32x288xbf16>
    %c0_123 = arith.constant 0 : index
    %c19_124 = arith.constant 19 : index
    %201 = vector.load %arg14[%c0_123, %c19_124] : memref<32x326xf32, #tpu.memory_space<vmem>>, vector<32x288xf32>
    %202 = arith.truncf %201 : vector<32x288xf32> to vector<32x288xbf16>
    %c0_125 = arith.constant 0 : index
    %c20_126 = arith.constant 20 : index
    %203 = vector.load %arg14[%c0_125, %c20_126] : memref<32x326xf32, #tpu.memory_space<vmem>>, vector<32x288xf32>
    %204 = arith.truncf %203 : vector<32x288xf32> to vector<32x288xbf16>
    %c0_127 = arith.constant 0 : index
    %c36_128 = arith.constant 36 : index
    %205 = vector.load %arg14[%c0_127, %c36_128] : memref<32x326xf32, #tpu.memory_space<vmem>>, vector<32x288xf32>
    %206 = arith.truncf %205 : vector<32x288xf32> to vector<32x288xbf16>
    %c0_129 = arith.constant 0 : index
    %c37_130 = arith.constant 37 : index
    %207 = vector.load %arg14[%c0_129, %c37_130] : memref<32x326xf32, #tpu.memory_space<vmem>>, vector<32x288xf32>
    %208 = arith.truncf %207 : vector<32x288xf32> to vector<32x288xbf16>
    %c0_131 = arith.constant 0 : index
    %c38_132 = arith.constant 38 : index
    %209 = vector.load %arg14[%c0_131, %c38_132] : memref<32x326xf32, #tpu.memory_space<vmem>>, vector<32x288xf32>
    %210 = arith.truncf %209 : vector<32x288xf32> to vector<32x288xbf16>
    %211 = tpu.concatenate %194, %196, %198, %200, %202, %204, %206, %208, %210 in 0 : vector<32x288xbf16>, vector<32x288xbf16>, vector<32x288xbf16>, vector<32x288xbf16>, vector<32x288xbf16>, vector<32x288xbf16>, vector<32x288xbf16>, vector<32x288xbf16>, vector<32x288xbf16> -> vector<288x288xbf16>
    %c0_133 = arith.constant 0 : index
    %c0_134 = arith.constant 0 : index
    %c0_135 = arith.constant 0 : index
    %212 = vector.load %arg4[%c0_133, %c0_134, %c0_135] : memref<2x32x288xbf16, #tpu.memory_space<vmem>>, vector<1x32x288xbf16>
    %213 = vector.shape_cast %212 : vector<1x32x288xbf16> to vector<32x288xbf16>
    %cst_136 = arith.constant dense<0.000000e+00> : vector<32x288xf32>
    %214 = tpu.matmul %213, %211, %cst_136 {dimension_numbers = #tpu.dot_dimension_numbers<[1], [0], [0], [1], [0, 0, 1, 1], [], []>} : vector<32x288xbf16>, vector<288x288xbf16>, vector<32x288xf32> -> vector<32x288xf32>
    %c0_137 = arith.constant 0 : index
    %c0_138 = arith.constant 0 : index
    %c0_139 = arith.constant 0 : index
    %215 = vector.load %arg5[%c0_137, %c0_138, %c0_139] : memref<2x32x3xf32, #tpu.memory_space<vmem>>, vector<1x32x3xf32>
    %216 = vector.shape_cast %215 : vector<1x32x3xf32> to vector<32x3xf32>
    %217 = vector.extract_strided_slice %216 {offsets = [0, 0], sizes = [32, 1], strides = [1, 1]} : vector<32x3xf32> to vector<32x1xf32>
    %218 = vector.broadcast %217 : vector<32x1xf32> to vector<32x288xf32>
    %219 = arith.addf %214, %218 : vector<32x288xf32>
    %cst_140 = arith.constant 0.000000e+00 : f32
    %220 = vector.shape_cast %22 : vector<1x288xi1> to vector<1x288xi1>
    %221 = vector.broadcast %220 : vector<1x288xi1> to vector<32x288xi1>
    %222 = vector.broadcast %cst_140 : f32 to vector<32x288xf32>
    %223 = arith.select %221, %219, %222 : vector<32x288xi1>, vector<32x288xf32>
    %cst_141 = arith.constant dense<0.000000e+00> : vector<32xf32>
    %224 = vector.multi_reduction <add>, %223, %cst_141 [1] : vector<32x288xf32> to vector<32xf32>
    %225 = vector.shape_cast %224 : vector<32xf32> to vector<32x1xf32>
    %cst_142 = arith.constant 3.906250e-03 : f32
    %226 = vector.broadcast %cst_142 : f32 to vector<32x1xf32>
    %227 = arith.mulf %225, %226 : vector<32x1xf32>
    %228 = vector.broadcast %227 : vector<32x1xf32> to vector<32x288xf32>
    %229 = arith.subf %219, %228 : vector<32x288xf32>
    %cst_143 = arith.constant 0.000000e+00 : f32
    %230 = vector.shape_cast %22 : vector<1x288xi1> to vector<1x288xi1>
    %231 = vector.broadcast %230 : vector<1x288xi1> to vector<32x288xi1>
    %232 = vector.broadcast %cst_143 : f32 to vector<32x288xf32>
    %233 = arith.select %231, %229, %232 : vector<32x288xi1>, vector<32x288xf32>
    %234 = arith.mulf %233, %233 : vector<32x288xf32>
    %cst_144 = arith.constant dense<0.000000e+00> : vector<32xf32>
    %235 = vector.multi_reduction <add>, %234, %cst_144 [1] : vector<32x288xf32> to vector<32xf32>
    %236 = vector.shape_cast %235 : vector<32xf32> to vector<32x1xf32>
    %cst_145 = arith.constant 3.906250e-03 : f32
    %237 = vector.broadcast %cst_145 : f32 to vector<32x1xf32>
    %238 = arith.mulf %236, %237 : vector<32x1xf32>
    %cst_146 = arith.constant 9.99999974E-6 : f32
    %239 = vector.broadcast %cst_146 : f32 to vector<32x1xf32>
    %240 = arith.addf %238, %239 : vector<32x1xf32>
    %241 = math.rsqrt %240 : vector<32x1xf32>
    %242 = vector.broadcast %241 : vector<32x1xf32> to vector<32x288xf32>
    %243 = arith.mulf %229, %242 : vector<32x288xf32>
    %244 = vector.extract_strided_slice %216 {offsets = [0, 1], sizes = [32, 1], strides = [1, 1]} : vector<32x3xf32> to vector<32x1xf32>
    %245 = vector.broadcast %244 : vector<32x1xf32> to vector<32x288xf32>
    %246 = arith.mulf %243, %245 : vector<32x288xf32>
    %247 = vector.extract_strided_slice %216 {offsets = [0, 2], sizes = [32, 1], strides = [1, 1]} : vector<32x3xf32> to vector<32x1xf32>
    %248 = vector.broadcast %247 : vector<32x1xf32> to vector<32x288xf32>
    %249 = arith.addf %246, %248 : vector<32x288xf32>
    %cst_147 = arith.constant 0.000000e+00 : f32
    %250 = vector.broadcast %cst_147 : f32 to vector<32x288xf32>
    %251 = arith.maximumf %249, %250 : vector<32x288xf32>
    %cst_148 = arith.constant 0.000000e+00 : f32
    %252 = vector.shape_cast %22 : vector<1x288xi1> to vector<1x288xi1>
    %253 = vector.broadcast %252 : vector<1x288xi1> to vector<32x288xi1>
    %254 = vector.broadcast %cst_148 : f32 to vector<32x288xf32>
    %255 = arith.select %253, %251, %254 : vector<32x288xi1>, vector<32x288xf32>
    %c0_149 = arith.constant 0 : index
    %c19_150 = arith.constant 19 : index
    %256 = vector.load %arg15[%c0_149, %c19_150] : memref<32x326xf32, #tpu.memory_space<vmem>>, vector<32x288xf32>
    tpu.vector_store %arg15[%c0_149, %c19_150], %255 {strides = array<i32>} : memref<32x326xf32, #tpu.memory_space<vmem>>, vector<32x288xf32>,
    %c0_151 = arith.constant 0 : index
    %c0_152 = arith.constant 0 : index
    %257 = vector.load %arg15[%c0_151, %c0_152] : memref<32x326xf32, #tpu.memory_space<vmem>>, vector<32x288xf32>
    %258 = arith.truncf %257 : vector<32x288xf32> to vector<32x288xbf16>
    %c0_153 = arith.constant 0 : index
    %c1_154 = arith.constant 1 : index
    %259 = vector.load %arg15[%c0_153, %c1_154] : memref<32x326xf32, #tpu.memory_space<vmem>>, vector<32x288xf32>
    %260 = arith.truncf %259 : vector<32x288xf32> to vector<32x288xbf16>
    %c0_155 = arith.constant 0 : index
    %c2_156 = arith.constant 2 : index
    %261 = vector.load %arg15[%c0_155, %c2_156] : memref<32x326xf32, #tpu.memory_space<vmem>>, vector<32x288xf32>
    %262 = arith.truncf %261 : vector<32x288xf32> to vector<32x288xbf16>
    %c0_157 = arith.constant 0 : index
    %c18_158 = arith.constant 18 : index
    %263 = vector.load %arg15[%c0_157, %c18_158] : memref<32x326xf32, #tpu.memory_space<vmem>>, vector<32x288xf32>
    %264 = arith.truncf %263 : vector<32x288xf32> to vector<32x288xbf16>
    %c0_159 = arith.constant 0 : index
    %c19_160 = arith.constant 19 : index
    %265 = vector.load %arg15[%c0_159, %c19_160] : memref<32x326xf32, #tpu.memory_space<vmem>>, vector<32x288xf32>
    %266 = arith.truncf %265 : vector<32x288xf32> to vector<32x288xbf16>
    %c0_161 = arith.constant 0 : index
    %c20_162 = arith.constant 20 : index
    %267 = vector.load %arg15[%c0_161, %c20_162] : memref<32x326xf32, #tpu.memory_space<vmem>>, vector<32x288xf32>
    %268 = arith.truncf %267 : vector<32x288xf32> to vector<32x288xbf16>
    %c0_163 = arith.constant 0 : index
    %c36_164 = arith.constant 36 : index
    %269 = vector.load %arg15[%c0_163, %c36_164] : memref<32x326xf32, #tpu.memory_space<vmem>>, vector<32x288xf32>
    %270 = arith.truncf %269 : vector<32x288xf32> to vector<32x288xbf16>
    %c0_165 = arith.constant 0 : index
    %c37_166 = arith.constant 37 : index
    %271 = vector.load %arg15[%c0_165, %c37_166] : memref<32x326xf32, #tpu.memory_space<vmem>>, vector<32x288xf32>
    %272 = arith.truncf %271 : vector<32x288xf32> to vector<32x288xbf16>
    %c0_167 = arith.constant 0 : index
    %c38_168 = arith.constant 38 : index
    %273 = vector.load %arg15[%c0_167, %c38_168] : memref<32x326xf32, #tpu.memory_space<vmem>>, vector<32x288xf32>
    %274 = arith.truncf %273 : vector<32x288xf32> to vector<32x288xbf16>
    %275 = tpu.concatenate %258, %260, %262, %264, %266, %268, %270, %272, %274 in 0 : vector<32x288xbf16>, vector<32x288xbf16>, vector<32x288xbf16>, vector<32x288xbf16>, vector<32x288xbf16>, vector<32x288xbf16>, vector<32x288xbf16>, vector<32x288xbf16>, vector<32x288xbf16> -> vector<288x288xbf16>
    %c1_169 = arith.constant 1 : index
    %c0_170 = arith.constant 0 : index
    %c0_171 = arith.constant 0 : index
    %276 = vector.load %arg4[%c1_169, %c0_170, %c0_171] : memref<2x32x288xbf16, #tpu.memory_space<vmem>>, vector<1x32x288xbf16>
    %277 = vector.shape_cast %276 : vector<1x32x288xbf16> to vector<32x288xbf16>
    %cst_172 = arith.constant dense<0.000000e+00> : vector<32x288xf32>
    %278 = tpu.matmul %277, %275, %cst_172 {dimension_numbers = #tpu.dot_dimension_numbers<[1], [0], [0], [1], [0, 0, 1, 1], [], []>} : vector<32x288xbf16>, vector<288x288xbf16>, vector<32x288xf32> -> vector<32x288xf32>
    %c1_173 = arith.constant 1 : index
    %c0_174 = arith.constant 0 : index
    %c0_175 = arith.constant 0 : index
    %279 = vector.load %arg5[%c1_173, %c0_174, %c0_175] : memref<2x32x3xf32, #tpu.memory_space<vmem>>, vector<1x32x3xf32>
    %280 = vector.shape_cast %279 : vector<1x32x3xf32> to vector<32x3xf32>
    %281 = vector.extract_strided_slice %280 {offsets = [0, 0], sizes = [32, 1], strides = [1, 1]} : vector<32x3xf32> to vector<32x1xf32>
    %282 = vector.broadcast %281 : vector<32x1xf32> to vector<32x288xf32>
    %283 = arith.addf %278, %282 : vector<32x288xf32>
    %cst_176 = arith.constant 0.000000e+00 : f32
    %284 = vector.shape_cast %22 : vector<1x288xi1> to vector<1x288xi1>
    %285 = vector.broadcast %284 : vector<1x288xi1> to vector<32x288xi1>
    %286 = vector.broadcast %cst_176 : f32 to vector<32x288xf32>
    %287 = arith.select %285, %283, %286 : vector<32x288xi1>, vector<32x288xf32>
    %cst_177 = arith.constant dense<0.000000e+00> : vector<32xf32>
    %288 = vector.multi_reduction <add>, %287, %cst_177 [1] : vector<32x288xf32> to vector<32xf32>
    %289 = vector.shape_cast %288 : vector<32xf32> to vector<32x1xf32>
    %cst_178 = arith.constant 3.906250e-03 : f32
    %290 = vector.broadcast %cst_178 : f32 to vector<32x1xf32>
    %291 = arith.mulf %289, %290 : vector<32x1xf32>
    %292 = vector.broadcast %291 : vector<32x1xf32> to vector<32x288xf32>
    %293 = arith.subf %283, %292 : vector<32x288xf32>
    %cst_179 = arith.constant 0.000000e+00 : f32
    %294 = vector.shape_cast %22 : vector<1x288xi1> to vector<1x288xi1>
    %295 = vector.broadcast %294 : vector<1x288xi1> to vector<32x288xi1>
    %296 = vector.broadcast %cst_179 : f32 to vector<32x288xf32>
    %297 = arith.select %295, %293, %296 : vector<32x288xi1>, vector<32x288xf32>
    %298 = arith.mulf %297, %297 : vector<32x288xf32>
    %cst_180 = arith.constant dense<0.000000e+00> : vector<32xf32>
    %299 = vector.multi_reduction <add>, %298, %cst_180 [1] : vector<32x288xf32> to vector<32xf32>
    %300 = vector.shape_cast %299 : vector<32xf32> to vector<32x1xf32>
    %cst_181 = arith.constant 3.906250e-03 : f32
    %301 = vector.broadcast %cst_181 : f32 to vector<32x1xf32>
    %302 = arith.mulf %300, %301 : vector<32x1xf32>
    %cst_182 = arith.constant 9.99999974E-6 : f32
    %303 = vector.broadcast %cst_182 : f32 to vector<32x1xf32>
    %304 = arith.addf %302, %303 : vector<32x1xf32>
    %305 = math.rsqrt %304 : vector<32x1xf32>
    %306 = vector.broadcast %305 : vector<32x1xf32> to vector<32x288xf32>
    %307 = arith.mulf %293, %306 : vector<32x288xf32>
    %308 = vector.extract_strided_slice %280 {offsets = [0, 1], sizes = [32, 1], strides = [1, 1]} : vector<32x3xf32> to vector<32x1xf32>
    %309 = vector.broadcast %308 : vector<32x1xf32> to vector<32x288xf32>
    %310 = arith.mulf %307, %309 : vector<32x288xf32>
    %311 = vector.extract_strided_slice %280 {offsets = [0, 2], sizes = [32, 1], strides = [1, 1]} : vector<32x3xf32> to vector<32x1xf32>
    %312 = vector.broadcast %311 : vector<32x1xf32> to vector<32x288xf32>
    %313 = arith.addf %310, %312 : vector<32x288xf32>
    %cst_183 = arith.constant 0.000000e+00 : f32
    %314 = vector.broadcast %cst_183 : f32 to vector<32x288xf32>
    %315 = arith.maximumf %313, %314 : vector<32x288xf32>
    %cst_184 = arith.constant 0.000000e+00 : f32
    %316 = vector.shape_cast %22 : vector<1x288xi1> to vector<1x288xi1>
    %317 = vector.broadcast %316 : vector<1x288xi1> to vector<32x288xi1>
    %318 = vector.broadcast %cst_184 : f32 to vector<32x288xf32>
    %319 = arith.select %317, %315, %318 : vector<32x288xi1>, vector<32x288xf32>
    %c0_185 = arith.constant 0 : index
    %c19_186 = arith.constant 19 : index
    %320 = vector.load %arg14[%c0_185, %c19_186] : memref<32x326xf32, #tpu.memory_space<vmem>>, vector<32x288xf32>
    tpu.vector_store %arg14[%c0_185, %c19_186], %319 {strides = array<i32>} : memref<32x326xf32, #tpu.memory_space<vmem>>, vector<32x288xf32>,
    %c0_187 = arith.constant 0 : index
    %c0_188 = arith.constant 0 : index
    %321 = vector.load %arg14[%c0_187, %c0_188] : memref<32x326xf32, #tpu.memory_space<vmem>>, vector<32x288xf32>
    %322 = arith.truncf %321 : vector<32x288xf32> to vector<32x288xbf16>
    %c0_189 = arith.constant 0 : index
    %c1_190 = arith.constant 1 : index
    %323 = vector.load %arg14[%c0_189, %c1_190] : memref<32x326xf32, #tpu.memory_space<vmem>>, vector<32x288xf32>
    %324 = arith.truncf %323 : vector<32x288xf32> to vector<32x288xbf16>
    %c0_191 = arith.constant 0 : index
    %c2_192 = arith.constant 2 : index
    %325 = vector.load %arg14[%c0_191, %c2_192] : memref<32x326xf32, #tpu.memory_space<vmem>>, vector<32x288xf32>
    %326 = arith.truncf %325 : vector<32x288xf32> to vector<32x288xbf16>
    %c0_193 = arith.constant 0 : index
    %c18_194 = arith.constant 18 : index
    %327 = vector.load %arg14[%c0_193, %c18_194] : memref<32x326xf32, #tpu.memory_space<vmem>>, vector<32x288xf32>
    %328 = arith.truncf %327 : vector<32x288xf32> to vector<32x288xbf16>
    %c0_195 = arith.constant 0 : index
    %c19_196 = arith.constant 19 : index
    %329 = vector.load %arg14[%c0_195, %c19_196] : memref<32x326xf32, #tpu.memory_space<vmem>>, vector<32x288xf32>
    %330 = arith.truncf %329 : vector<32x288xf32> to vector<32x288xbf16>
    %c0_197 = arith.constant 0 : index
    %c20_198 = arith.constant 20 : index
    %331 = vector.load %arg14[%c0_197, %c20_198] : memref<32x326xf32, #tpu.memory_space<vmem>>, vector<32x288xf32>
    %332 = arith.truncf %331 : vector<32x288xf32> to vector<32x288xbf16>
    %c0_199 = arith.constant 0 : index
    %c36_200 = arith.constant 36 : index
    %333 = vector.load %arg14[%c0_199, %c36_200] : memref<32x326xf32, #tpu.memory_space<vmem>>, vector<32x288xf32>
    %334 = arith.truncf %333 : vector<32x288xf32> to vector<32x288xbf16>
    %c0_201 = arith.constant 0 : index
    %c37_202 = arith.constant 37 : index
    %335 = vector.load %arg14[%c0_201, %c37_202] : memref<32x326xf32, #tpu.memory_space<vmem>>, vector<32x288xf32>
    %336 = arith.truncf %335 : vector<32x288xf32> to vector<32x288xbf16>
    %c0_203 = arith.constant 0 : index
    %c38_204 = arith.constant 38 : index
    %337 = vector.load %arg14[%c0_203, %c38_204] : memref<32x326xf32, #tpu.memory_space<vmem>>, vector<32x288xf32>
    %338 = arith.truncf %337 : vector<32x288xf32> to vector<32x288xbf16>
    %339 = tpu.concatenate %322, %324, %326, %328, %330, %332, %334, %336, %338 in 0 : vector<32x288xbf16>, vector<32x288xbf16>, vector<32x288xbf16>, vector<32x288xbf16>, vector<32x288xbf16>, vector<32x288xbf16>, vector<32x288xbf16>, vector<32x288xbf16>, vector<32x288xbf16> -> vector<288x288xbf16>
    %c0_205 = arith.constant 0 : index
    %c0_206 = arith.constant 0 : index
    %340 = vector.load %arg8[%c0_205, %c0_206] : memref<8x288xbf16, #tpu.memory_space<vmem>>, vector<8x288xbf16>
    %cst_207 = arith.constant dense<0.000000e+00> : vector<8x288xf32>
    %341 = tpu.matmul %340, %339, %cst_207 {dimension_numbers = #tpu.dot_dimension_numbers<[1], [0], [0], [1], [0, 0, 1, 1], [], []>} : vector<8x288xbf16>, vector<288x288xbf16>, vector<8x288xf32> -> vector<8x288xf32>
    %c0_208 = arith.constant 0 : index
    %c0_209 = arith.constant 0 : index
    %342 = vector.load %arg9[%c0_208, %c0_209] : memref<8x1xf32, #tpu.memory_space<vmem>>, vector<8x1xf32>
    %343 = vector.broadcast %342 : vector<8x1xf32> to vector<8x288xf32>
    %344 = arith.addf %341, %343 : vector<8x288xf32>
    %345 = vector.extract_strided_slice %344 {offsets = [0, 0], sizes = [4, 288], strides = [1, 1]} : vector<8x288xf32> to vector<4x288xf32>
    %c0_210 = arith.constant 0 : index
    %346 = memref.load %arg10[%c0_210] : memref<1xf32, #tpu.memory_space<smem>>
    %347 = vector.broadcast %346 : f32 to vector<4x288xf32>
    %348 = arith.mulf %345, %347 : vector<4x288xf32>
    %349 = math.exp %348 : vector<4x288xf32>
    %c0_211 = arith.constant 0 : index
    %c0_212 = arith.constant 0 : index
    %c0_213 = arith.constant 0 : index
    %350 = vector.load %arg13[%c0_211, %c0_212, %c0_213] : memref<1x4x288xf32, #tpu.memory_space<vmem>>, vector<1x4x288xf32>
    %351 = vector.shape_cast %350 : vector<1x4x288xf32> to vector<4x288xf32>
    %352 = vector.shape_cast %349 : vector<4x288xf32> to vector<1x4x288xf32>
    tpu.vector_store %arg13[%c0_211, %c0_212, %c0_213], %352 {strides = array<i32>} : memref<1x4x288xf32, #tpu.memory_space<vmem>>, vector<1x4x288xf32>,
    return
  }
  func.func @transform_0(%arg0: i32) -> (i32, i32, i32) {
    %c0_i32 = arith.constant 0 : i32
    %c0_i32_0 = arith.constant 0 : i32
    %c0_i32_1 = arith.constant 0 : i32
    return %arg0, %c0_i32, %c0_i32_0 : i32, i32, i32
  }
  func.func @transform_1(%arg0: i32) -> (i32, i32, i32) {
    %c0_i32 = arith.constant 0 : i32
    %c0_i32_0 = arith.constant 0 : i32
    %c0_i32_1 = arith.constant 0 : i32
    %c0_i32_2 = arith.constant 0 : i32
    return %c0_i32, %c0_i32_0, %c0_i32_1 : i32, i32, i32
  }
  func.func @transform_2(%arg0: i32) -> (i32, i32, i32) {
    %c0_i32 = arith.constant 0 : i32
    %c0_i32_0 = arith.constant 0 : i32
    %c0_i32_1 = arith.constant 0 : i32
    %c0_i32_2 = arith.constant 0 : i32
    return %c0_i32, %c0_i32_0, %c0_i32_1 : i32, i32, i32
  }
  func.func @transform_3(%arg0: i32) -> (i32, i32, i32) {
    %c0_i32 = arith.constant 0 : i32
    %c0_i32_0 = arith.constant 0 : i32
    %c0_i32_1 = arith.constant 0 : i32
    %c0_i32_2 = arith.constant 0 : i32
    return %c0_i32, %c0_i32_0, %c0_i32_1 : i32, i32, i32
  }
  func.func @transform_4(%arg0: i32) -> (i32, i32, i32) {
    %c0_i32 = arith.constant 0 : i32
    %c0_i32_0 = arith.constant 0 : i32
    %c0_i32_1 = arith.constant 0 : i32
    %c0_i32_2 = arith.constant 0 : i32
    return %c0_i32, %c0_i32_0, %c0_i32_1 : i32, i32, i32
  }
  func.func @transform_5(%arg0: i32) -> (i32, i32) {
    %c0_i32 = arith.constant 0 : i32
    %c0_i32_0 = arith.constant 0 : i32
    %c0_i32_1 = arith.constant 0 : i32
    return %c0_i32, %c0_i32_0 : i32, i32
  }
  func.func @transform_6(%arg0: i32) -> (i32, i32) {
    %c0_i32 = arith.constant 0 : i32
    %c0_i32_0 = arith.constant 0 : i32
    %c0_i32_1 = arith.constant 0 : i32
    return %c0_i32, %c0_i32_0 : i32, i32
  }
  func.func @transform_7(%arg0: i32) -> (i32, i32) {
    %c0_i32 = arith.constant 0 : i32
    %c0_i32_0 = arith.constant 0 : i32
    %c0_i32_1 = arith.constant 0 : i32
    return %c0_i32, %c0_i32_0 : i32, i32
  }
  func.func @transform_8(%arg0: i32) -> (i32, i32) {
    %c0_i32 = arith.constant 0 : i32
    %c0_i32_0 = arith.constant 0 : i32
    %c0_i32_1 = arith.constant 0 : i32
    return %c0_i32, %c0_i32_0 : i32, i32
  }
  func.func @transform_9(%arg0: i32) -> i32 {
    %c0_i32 = arith.constant 0 : i32
    %c0_i32_0 = arith.constant 0 : i32
    return %c0_i32 : i32
  }
  func.func @transform_10(%arg0: i32) -> (i32, i32, i32) {
    %c0_i32 = arith.constant 0 : i32
    %c0_i32_0 = arith.constant 0 : i32
    %c0_i32_1 = arith.constant 0 : i32
    return %arg0, %c0_i32, %c0_i32_0 : i32, i32, i32
  }
  func.func @transform_11(%arg0: i32) -> (i32, i32, i32) {
    %c0_i32 = arith.constant 0 : i32
    %c0_i32_0 = arith.constant 0 : i32
    %c0_i32_1 = arith.constant 0 : i32
    return %arg0, %c0_i32, %c0_i32_0 : i32, i32, i32
  }
  func.func @transform_12(%arg0: i32) -> (i32, i32, i32) {
    %c0_i32 = arith.constant 0 : i32
    %c0_i32_0 = arith.constant 0 : i32
    %c0_i32_1 = arith.constant 0 : i32
    return %arg0, %c0_i32, %c0_i32_0 : i32, i32, i32
  }
}

</mosaic_0001>

<bundles_post_ra>
// kernel: tpu_custom_call.1
= control target key start
LH: loop header
LB: loop body
LE: loop exit
PB: predicated region body
PF: predicated region fallthrough
CT: control target
= control target key end

     0   :  { %s8096_s0 = inlined_call_operand.hbm [shape: f32[2,32,288], index: 0, kind: input, shape index: {}]   ;;  %s8097_s1 = inlined_call_operand.vmem [shape: bf16[2,32,288], index: 1, kind: input, shape index: {}]   ;;  %s8098_s2 = inlined_call_operand.vmem [shape: f32[2,32,3], index: 2, kind: input, shape index: {}]   ;;  %s8099_s3 = inlined_call_operand.hbm [shape: bf16[2,32,288], index: 3, kind: input, shape index: {}]   ;;  %s8100_s4 = inlined_call_operand.vmem [shape: f32[2,32,3], index: 4, kind: input, shape index: {}]   ;;  %s8101_s5 = inlined_call_operand.vmem [shape: bf16[16,288], index: 5, kind: input, shape index: {}]   ;;  %s8102_s6 = inlined_call_operand.vmem [shape: f32[16,1], index: 6, kind: input, shape index: {}]   ;;  %s8103_s7 = inlined_call_operand.vmem [shape: bf16[8,288], index: 7, kind: input, shape index: {}]   ;;  %s8104_s8 = inlined_call_operand.vmem [shape: f32[8,1], index: 8, kind: input, shape index: {}]   ;;  %s8105_s9 = inlined_call_operand.<no memory space> [shape: f32[1], index: 9, kind: input, shape index: {}]   ;;  %s8106_s10 = inlined_call_operand.hbm [shape: f32[2,8,288], index: 10, kind: output, shape index: {0}]   ;;  %s8107_s11 = inlined_call_operand.hbm [shape: f32[2,1,288], index: 11, kind: output, shape index: {1}]   ;;  %s8108_s12 = inlined_call_operand.hbm [shape: f32[2,4,288], index: 12, kind: output, shape index: {2}]  }
   0x1   :  { %8149 = sst [smem:[#allocation21_spill]] %s8099_s3 }
   0x2   :  { %8150 = sst [smem:[#allocation22_spill]] %s8108_s12 }
   0x3   :  { %18 = sst [smem:[#allocation4]] %s8105_s9 }
   0x4   :  { %19 = vsyncpa [#allocation6], 0 }
   0x5   :  { %21 = vsyncpa [#allocation6 + $0x1], 0 }
   0x6   :  { %22 = vsyncpa [#allocation9], 0 }
   0x7   :  { %23 = vsyncpa [#allocation7], 0 }
   0x8   :  { %25 = vsyncpa [#allocation7 + $0x1], 0 }
   0x9   :  { %26 = vsyncpa [#allocation12], 0 }
   0xa   :  { %28 = vsyncpa [#allocation12 + $0x1], 0  ;;  %s5591_s23 = smov 0   ;;  %s5593_s24 = smov 0  }
   0xb   :  { %s5595_s25 = smov 0   ;;  %s5597_s26 = smov 0  }
   0xc LB: > { %8151 = sst [smem:[#allocation18_spill]] %s5484_s23  ;;  %s5612_s9 = sadd.s32 4294967295, %s5496_s26   ;;  %s5496_s26 = sphi %s5597_s26, %s8273_s26   ;;  %s5492_s25 = sphi %s5595_s25, %s8276_s25   ;;  %s5488_s24 = sphi %s5593_s24, %s8275_s24   ;;  %s5484_s23 = sphi %s5591_s23, %s8274_s23  }
   0xd   : > { %s8109_s27 = sadd.s32 4294967294, %s5496_s26   ;;  %p54_p0 = scmp.ne.s32.totalorder %s5488_s24, %s5484_s23 }
   0xe   : > { %p8113_p1 = scmp.eq.s32.totalorder %s5612_s9, 0  ;;  %p273_p3 = scmp.eq.s32.totalorder %s8109_s27, 1 }
   0xf   : > { %p4718_p5 = scmp.ge.s32.totalorder %s5496_s26, 1  ;;  %p332_p7 = scmp.lt.s32.totalorder %s5496_s26, 3 }
  0x10   : > { %p5623_p4 = por %p8113_p1, %p54_p0  ;;  %p5628_p6 = por %p273_p3, %p54_p0 }
  0x11   : > { %p5633_p8 = pnand %p4718_p5, %p332_p7  ;;  %s5498_s13 = smov [#allocation8]  }
  0x12   : > { %s8152_s28 = scalar_select %p5623_p4, 1, 0 }
  0x13   : > { %s8153_s29 = scalar_select %p5628_p6, 1, 0 }
  0x14   : > { %s8155_s30 = scalar_select %p5633_p8, 1, 0 }
  0x15   : > { %8154 = sst [smem:[#allocation19_spill]] %s8153_s29  ;;  %s350_s14 = sshll.u32 %s5498_s13, 4  ;;  %s5637_s14 = int_to_ptr.vmem [resolvable:$true] %s350_s14 }
  0x16   : > { %p5126_p9 = pneg %p5633_p8  ;;  %s5649_s16 = sadd.s32 1, %s5496_s26  }
  0x17   : > { %8157 = sst [smem:[#allocation20_spill]] %s5649_s16  ;;  %s41_s17 = sadd.s32 1, %s5492_s25 }
  0x18   : > { %p5644_p11 = pnand %p5126_p9, %p8113_p1  ;;  %s38_s18 = ssub.s32 %s5496_s26, %s5649_s16 }
  0x19   : > { %s8158_s3 = sld [smem:[#allocation21_spill]] }
  0x1a   : > { %p5310_p13 = pneg %p5644_p11 }
  0x1f   : > { %s5308_s21 = scalar_lea.hbm %s8158_s3, 1536 }
  0x20   : > { %p5309_p12 = scmp.ne.s32.totalorder %s8158_s3, %s5308_s21  ;;  %p5315_p5 = scmp.lt.u32.totalorder %s5308_s21, %s8158_s3 }
  0x22   : > { %p5311_p0 = pnand %p5310_p13, %p5309_p12 }
  0x24   : > { %p5312_p3 = pneg %p5311_p0 }
  0x26   : > { %p5317_p7 = pnand %p5315_p5, %p5312_p3 }
  0x28   : > { %5320 = shalt.err (!%p5317_p7)
}
  0x29   : > { %s5321_s16 = scalar_lea.vmem %s5637_s14, 1536  ;;  %p5329_p2 = scmp.lt.s32.totalorder %s5637_s14, %s5637_s14 }
  0x2a   : > { %p5322_p9 = scmp.ne.s32.totalorder %s5637_s14, %s5321_s16  ;;  %p5330_p6 = scmp.lt.s32.totalorder %s5321_s16, %s5321_s16 }
  0x2c   : > { %p5324_p10 = pnand %p5322_p9, %p5310_p13  ;;  %p5331_p4 = por %p5330_p6, %p5329_p2 }
  0x2e   : > { %p5325_p1 = pneg %p5324_p10 }
  0x30   : > { %p5332_p8 = pnand %p5331_p4, %p5325_p1 }
  0x32   : > { %5335 = shalt.err (!%p5332_p8)
}
  0x33   : > { %s5499_s19 = smov 192   ;;  %s5500_s27 = smov 12  }
  0x34   : > { %5129 = dma.hbm_to_vmem [thread:$0]  (!%p5644_p11), %s8158_s3, 1536, %s5637_s14, [#allocation9], %s5499_s19, %s5499_s19, %s5500_s27  }
  0x35   : > { %p39_p2 = scmp.eq.s32.totalorder %s38_s18, 0  ;;  %p48_p1 = scmp.ne.s32.totalorder %s5492_s25, %s5488_s24 }
  0x36   : > { %p49_p4 = scmp.eq.s32.totalorder %s5496_s26, 0  ;;  %p5145_p6 = scmp.lt.s32.totalorder %s5496_s26, 2 }
  0x37   : > { %s5680_s16 = scalar_select %p39_p2, %s5492_s25, %s41_s17  }
  0x38   : > { %p50_p8 = por %p49_p4, %p48_p1  ;;  %p8159_p10 = scmp.eq.s32.totalorder %s5612_s9, 1 }
  0x39   : > { %s382_s22 = sand.u32 1, %s5492_s25   ;;  %s5100_s13 = smul.u32 1536, %s5496_s26 }
  0x3a   : > { %p5684_p12 = por %p8159_p10, %p48_p1  ;;  %s5099_s23 = smul.u32 96, %s382_s22 }
  0x3b   : > { %s5693_s29 = scalar_lea.hbm %s8096_s0, %s5100_s13  ;;  %p5695_p11 = pnand %p5145_p6, %p50_p8 }
  0x3c   : > { %s386_s17 = scalar_lea.vmem [#allocation5], %s5099_s23  ;;  %s5701_s19 = scalar_lea.sflag [#allocation6], %s382_s22 }
  0x3d   : > { %s393_s18 = sshll.u32 %s386_s17, 4  ;;  %s5336_s27 = scalar_lea.hbm %s5693_s29, 1536  ;;  %s5699_s18 = int_to_ptr.vmem [resolvable:$true] %s393_s18 }
  0x3e   : > { %p5337_p13 = scmp.ne.s32.totalorder %s5693_s29, %s5336_s27  ;;  %p5338_p0 = pneg %p5695_p11 }
  0x3f   : > { %s5341_s13 = scalar_lea.hbm %s8096_s0, 3072  ;;  %p5342_p7 = scmp.lt.u32.totalorder %s5693_s29, %s8096_s0 }
  0x40   : > { %p5339_p3 = pnand %p5338_p0, %p5337_p13  ;;  %p5343_p9 = scmp.lt.u32.totalorder %s5341_s13, %s5336_s27 }
  0x41   : > { %p5345_p1 = scmp.lt.u32.totalorder %s5336_s27, %s5693_s29 }
  0x42   : > { %p5340_p5 = pneg %p5339_p3  ;;  %p5344_p2 = por %p5343_p9, %p5342_p7 }
  0x44   : > { %p5346_p4 = por %p5345_p1, %p5344_p2 }
  0x46   : > { %p5347_p6 = pnand %p5346_p4, %p5340_p5 }
  0x48   : > { %5350 = shalt.err (!%p5347_p6)
}
  0x49   : > { %s5351_s23 = scalar_lea.vmem %s5699_s18, 1536  ;;  %s5501_s22 = smov [#allocation5]  }
  0x4a   : > { %p5352_p8 = scmp.ne.s32.totalorder %s5699_s18, %s5351_s23  ;;  %s5356_s17 = sshll.u32 %s5501_s22, 4  ;;  %s5357_s17 = int_to_ptr.vmem [resolvable:$false] %s5356_s17 }
  0x4b   : > { %s5358_s3 = scalar_lea.vmem %s5357_s17, 3072  ;;  %p5359_p3 = scmp.lt.s32.totalorder %s5699_s18, %s5357_s17 }
  0x4c   : > { %p5354_p10 = pnand %p5352_p8, %p5338_p0  ;;  %p5360_p7 = scmp.lt.s32.totalorder %s5358_s3, %s5351_s23 }
  0x4e   : > { %p5355_p13 = pneg %p5354_p10  ;;  %p5361_p9 = por %p5360_p7, %p5359_p3 }
  0x50   : > { %p5362_p2 = pnand %p5361_p9, %p5355_p13 }
  0x52   : > { %5365 = shalt.err (!%p5362_p2)
}
  0x53   : > { %s5502_s27 = smov 384   ;;  %s5503_s12 = smov 24  }
  0x54   : > { %5133 = dma.hbm_to_vmem [thread:$0]  (!%p5695_p11), %s5693_s29, 1536, %s5699_s18, %s5701_s19, %s5502_s27, %s5502_s27, %s5503_s12  }
  0x55   : > { %p8162_p0 = scmp.ne.s32.totalorder %s8155_s30, 0 }
  0x56   : > { %s5732_s20 = sand.u32 (!%p8162_p0), 1, %s5488_s24   ;;  %p8163_p5 = scmp.ne.s32.totalorder (!%p8162_p0), %s8152_s28, 0 }
  0x57   : > { %405 = sbr.rel (%p8162_p0) target bundleno = 4459 (0x116b), region = 60  ;;  %s408_s15 = scalar_lea.sflag (!%p8162_p0), [#allocation6], %s5732_s20 }
  0x58   : > { %s5101_s13 = smul.u32 (!%p8162_p0), 96, %s5732_s20 }
  0x5a   : > { %s5736_s23 = scalar_lea.vmem (!%p8162_p0), [#allocation5], %s5101_s13 }
  0x5e   : > { %5467 = dma.done.wait (%p8163_p5), %s408_s15, 1536  }
  0x5f   : > { %5469 = vsyncadd (%p8163_p5), %s408_s15, 4294965760  ;;  %p8164_p11 = scmp.eq.s32.totalorder %s5612_s9, 0 }
  0x61   : > { %5471 = dma.done.wait (%p8164_p11), [#allocation9], 1536   ;;  %p8165_p1 = pmov %p8164_p11 }
  0x62   : > { %vm469_vm0 = vcmask 572416   ;;  %v5504_v0 = vmov 0.0   ;;  %vm8128_vm1 = vcmask 572816   ;;  %v554_v1 = vld [vmem:[%s5736_s23 + $0x10] sm:$0xff]  ;;  %v552_v2 = vld [vmem:[%s5736_s23] sm:$0xff]  ;;  %s8118_s28 = smov 18  }
  0x63   : > { %5473 = vsyncadd (%p8165_p1), [#allocation9], 4294965760  ;;  %467 = vst [vmem:[#allocation2] sm:$0xff] %v5504_v0  ;;  %580 = vrot.lane.b32.xlu1 %v554_v1, %s8118_s28  ;;  %576 = vrot.lane.b32.xlu0 %v552_v2, %s8118_s28  ;;  %v555_v3 = vld [vmem:[%s5736_s23 + $0x18] sm:$0xff]  ;;  %v553_v4 = vld [vmem:[%s5736_s23 + $0x8] sm:$0xff]  ;;  %vm8126_vm2 = vcmask 1047696  }
  0x64   : > { %471 = vst [vmem:[#allocation2 + $0x18] sm:$0xff] %v5504_v0  ;;  %474 = vst [vmem:[#allocation2 + $0x30] sm:$0xff] %v5504_v0  ;;  %v557_v5 = vld [vmem:[%s5736_s23 + $0x28] sm:$0xff]  ;;  %v556_v6 = vld [vmem:[%s5736_s23 + $0x20] sm:$0xff]  ;;  %vm8129_vm3 = vcmask 146432   ;;  %vm8127_vm4 = vcmask 408576  }
  0x65   : > { %477 = vst [vmem:[#allocation2 + $0x48] sm:$0xff] %v5504_v0  ;;  %480 = vst [vmem:[#allocation3] sm:$0xff] %v5504_v0  ;;  %v559_v7 = vld [vmem:[%s5736_s23 + $0x38] sm:$0xff]  ;;  %v558_v8 = vld [vmem:[%s5736_s23 + $0x30] sm:$0xff]  ;;  %s8144_s30 = smov 127   ;;  %s8142_s29 = smov 126  }
  0x66   : > { %483 = vst [vmem:[#allocation3 + $0x18] sm:$0xff] %v5504_v0  ;;  %486 = vst [vmem:[#allocation3 + $0x30] sm:$0xff] %v5504_v0  ;;  %v561_v9 = vld [vmem:[%s5736_s23 + $0x48] sm:$0xff]  ;;  %v560_v10 = vld [vmem:[%s5736_s23 + $0x40] sm:$0xff]  ;;  %s8134_s14 = smov 110   ;;  %s8137_s18 = smov 109  }
  0x67   : > { %489 = vst [vmem:[#allocation3 + $0x48] sm:$0xff] %v5504_v0  ;;  %470 = vst.msk [vmem:[#allocation2 + $0x10] sm:$0xff] %vm469_vm0, %v5504_v0  ;;  %582 = vrot.lane.b32.xlu1 %v555_v3, %s8118_s28  ;;  %578 = vrot.lane.b32.xlu0 %v553_v4, %s8118_s28  ;;  %v563_v11 = vld [vmem:[%s5736_s23 + $0x58] sm:$0xff]  ;;  %v562_v12 = vld [vmem:[%s5736_s23 + $0x50] sm:$0xff]  ;;  %s8132_s19 = smov 108   ;;  %s8124_s22 = smov 92  }
  0x68   : > { %473 = vst.msk [vmem:[#allocation2 + $0x28] sm:$0xff] %vm469_vm0, %v5504_v0  ;;  %476 = vst.msk [vmem:[#allocation2 + $0x40] sm:$0xff] %vm469_vm0, %v5504_v0  ;;  %s8120_s17 = smov 91   ;;  %v5233_v47 = vld [vmem:[%s8097_s1 + $0x4] ss:$12 sps:$4 sm:$0xff]   ;;  %s8122_s12 = smov 90  }
  0x69   : > { %479 = vst.msk [vmem:[#allocation2 + $0x58] sm:$0xff] %vm469_vm0, %v5504_v0  ;;  %482 = vst.msk [vmem:[#allocation3 + $0x10] sm:$0xff] %vm469_vm0, %v5504_v0  ;;  %1050 = vmatprep.mubr.bf16.mxu1 %v5233_v47  ;;  %944 = vmatprep.mubr.bf16.mxu0 %v5233_v47  ;;  %v5514_v48 = vmov 0   ;;  %v5927_v49 = vld [vmem:[%s8098_s2 + $0x8] sm:$0xff]  ;;  %v5932_v50 = vld [vmem:[%s8098_s2] sm:$0xff]  ;;  %vm671_vm5 = vcmask 1039360  }
  0x6a   : > { %485 = vst.msk [vmem:[#allocation3 + $0x28] sm:$0xff] %vm469_vm0, %v5504_v0  ;;  %488 = vst.msk [vmem:[#allocation3 + $0x40] sm:$0xff] %vm469_vm0, %v5504_v0  ;;  %5201 = vset.pattern.permute.xlu0 %v5514_v48  ;;  %5202 = vset.pattern.permute.xlu1 %v5514_v48  ;;  %v5939_v51 = vld [vmem:[%s8098_s2 + $0x10] sm:$0xff]  ;;  %v5944_v52 = vld [vmem:[%s8098_s2 + $0x18] sm:$0xff]  ;;  %vm694_vm6 = vcmask 1031168   ;;  %vm717_vm7 = vcmask 900096  }
  0x6b   : > { %491 = vst.msk [vmem:[#allocation3 + $0x58] sm:$0xff] %vm469_vm0, %v5504_v0  ;;  %586 = vrot.lane.b32.xlu1 %v557_v5, %s8118_s28  ;;  %584 = vrot.lane.b32.xlu0 %v556_v6, %s8118_s28  ;;  %vm740_vm8 = vcmask 891904   ;;  %vm8148_vm9 = vcmask 883712   ;;  %vm8136_vm10 = vcmask 752640   ;;  %vm8131_vm11 = vcmask 744448   ;;  %s8179_s13 = smov 91  }
  0x6c   : > { %548 = vst.msk [vmem:[#allocation2 + $0x10] sm:$0xff] %vm8128_vm1, %v5504_v0  ;;  %549 = vst.msk [vmem:[#allocation2 + $0x28] sm:$0xff] %vm8128_vm1, %v5504_v0  ;;  %vm8130_vm12 = vcmask 736256   ;;  %vm905_vm13 = vcmask 261120   ;;  %s8180_s27 = smov 90   ;;  %s8235_s15 = smov 109  }
  0x6d   : > { %550 = vst.msk [vmem:[#allocation2 + $0x40] sm:$0xff] %vm8128_vm1, %v5504_v0  ;;  %551 = vst.msk [vmem:[#allocation2 + $0x58] sm:$0xff] %vm8128_vm1, %v5504_v0 }
  0x6f   : > { %590 = vrot.lane.b32.xlu1 %v559_v7, %s8118_s28  ;;  %588 = vrot.lane.b32.xlu0 %v558_v8, %s8118_s28 }
  0x73   : > { %594 = vrot.lane.b32.xlu1 %v561_v9, %s8118_s28  ;;  %592 = vrot.lane.b32.xlu0 %v560_v10, %s8118_s28 }
  0x77   : > { %598 = vrot.lane.b32.xlu1 %v563_v11, %s8118_s28  ;;  %596 = vrot.lane.b32.xlu0 %v562_v12, %s8118_s28  ;;  %s8189_s28 = smov 18  }
  0xd5   : > { %v581_v13 = vpop.permute.xlu1 %580  ;;  %v577_v14 = vpop.permute.xlu0 %576 }
  0xd6   : > { %622 = vst.msk [vmem:[#allocation2] sm:$0xff] %vm8126_vm2, %v577_v14 }
  0xd9   : > { %v583_v15 = vpop.permute.xlu1 %582  ;;  %v579_v16 = vpop.permute.xlu0 %578 }
  0xda   : > { %626 = vst.msk [vmem:[#allocation2 + $0x18] sm:$0xff] %vm8126_vm2, %v583_v15  ;;  %v602_v17 = vsel %vm8129_vm3, %v579_v16, %v581_v13  ;;  %v601_v20 = vsel %vm8129_vm3, %v577_v14, %v579_v16 }
  0xdb   : > { %625 = vst.msk [vmem:[#allocation2 + $0x10] sm:$0xff] %vm8127_vm4, %v602_v17 }
  0xdd   : > { %v587_v18 = vpop.permute.xlu1 %586  ;;  %v585_v19 = vpop.permute.xlu0 %584  ;;  %v635_v23 = vld [vmem:[#allocation2] sm:$0xff] }
  0xde   : > { %v603_v21 = vsel %vm8129_vm3, %v583_v15, %v585_v19  ;;  %v604_v22 = vsel %vm8129_vm3, %v585_v19, %v587_v18 }
  0xdf   : > { %628 = vst.msk [vmem:[#allocation2 + $0x28] sm:$0xff] %vm8127_vm4, %v604_v22  ;;  %v5810_v24 = vpack.c.bf16 %v603_v21, %v601_v20 }
  0xe1   : > { %v638_v25 = vld [vmem:[#allocation2 + $0x18] sm:$0xff]  ;;  %v591_v26 = vpop.permute.xlu1 %590  ;;  %v589_v27 = vpop.permute.xlu0 %588  ;;  %912 = vmatprep.subr.bf16.mxu0 %v5810_v24 }
  0xe2   : > { %v5813_v28 = vpack.c.bf16 %v638_v25, %v635_v23  ;;  %629 = vst.msk [vmem:[#allocation2 + $0x30] sm:$0xff] %vm8126_vm2, %v589_v27  ;;  %v605_v34 = vsel %vm8129_vm3, %v589_v27, %v591_v26  ;;  %v637_v45 = vld [vmem:[#allocation2 + $0x10] sm:$0xff] }
  0xe4   : > { %659 = vrot.lane.b32.xlu0 %v5813_v28, %s8144_s30  ;;  %913 = vmatpush1.bf16.msra.mxu0 %v5813_v28 }
  0xe5   : > { %v595_v29 = vpop.permute.xlu1 %594  ;;  %v593_v30 = vpop.permute.xlu0 %592 }
  0xe6   : > { %632 = vst.msk [vmem:[#allocation2 + $0x48] sm:$0xff] %vm8126_vm2, %v595_v29  ;;  %v606_v31 = vsel %vm8129_vm3, %v591_v26, %v593_v30  ;;  %v640_v44 = vld [vmem:[#allocation2 + $0x28] sm:$0xff] }
  0xe7   : > { %631 = vst.msk [vmem:[#allocation2 + $0x40] sm:$0xff] %vm8127_vm4, %v606_v31  ;;  %v5853_v46 = vpack.c.bf16 %v640_v44, %v637_v45 }
  0xe8   : > { %682 = vrot.lane.b32.xlu0 %v5813_v28, %s8142_s29 }
  0xe9   : > { %v599_v32 = vpop.permute.xlu1 %598  ;;  %v597_v33 = vpop.permute.xlu0 %596  ;;  %v641_v37 = vld [vmem:[#allocation2 + $0x30] sm:$0xff] }
  0xea   : > { %v607_v35 = vsel %vm8129_vm3, %v595_v29, %v597_v33  ;;  %v608_v36 = vsel %vm8129_vm3, %v597_v33, %v599_v32 }
  0xeb   : > { %634 = vst.msk [vmem:[#allocation2 + $0x58] sm:$0xff] %vm8127_vm4, %v608_v36  ;;  %v5828_v38 = vpack.c.bf16 %v607_v35, %v605_v34 }
  0xec   : > { %705 = vrot.lane.b32.xlu0 %v5813_v28, %s8134_s14 }
  0xed   : > { %v644_v39 = vld [vmem:[#allocation2 + $0x48] sm:$0xff]  ;;  %914 = vmatprep.subr.bf16.mxu0 %v5828_v38 }
  0xee   : > { %v650_v40 = vpack.c.bf16 %v644_v39, %v641_v37  ;;  %v643_v42 = vld [vmem:[#allocation2 + $0x40] sm:$0xff] }
  0xf0   : > { %665 = vrot.lane.b32.xlu1 %v650_v40, %s8144_s30  ;;  %728 = vrot.lane.b32.xlu0 %v5813_v28, %s8137_s18 }
  0xf1   : > { %915 = vmatpush1.bf16.msra.mxu0 %v650_v40 }
  0xf2   : > { %v646_v41 = vld [vmem:[#allocation2 + $0x58] sm:$0xff] }
  0xf3   : > { %v5848_v43 = vpack.c.bf16 %v646_v41, %v643_v42 }
  0xf4   : > { %688 = vrot.lane.b32.xlu1 %v650_v40, %s8142_s29  ;;  %751 = vrot.lane.b32.xlu0 %v5813_v28, %s8132_s19 }
  0xf8   : > { %711 = vrot.lane.b32.xlu1 %v650_v40, %s8134_s14  ;;  %774 = vrot.lane.b32.xlu0 %v5813_v28, %s8124_s22 }
  0xfc   : > { %734 = vrot.lane.b32.xlu1 %v650_v40, %s8137_s18  ;;  %797 = vrot.lane.b32.xlu0 %v5813_v28, %s8120_s17 }
 0x100   : > { %757 = vrot.lane.b32.xlu1 %v650_v40, %s8132_s19  ;;  %661 = vrot.lane.b32.xlu0 %v5810_v24, %s8144_s30 }
 0x104   : > { %780 = vrot.lane.b32.xlu1 %v650_v40, %s8124_s22  ;;  %669 = vrot.lane.b32.xlu0 %v5848_v43, %s8144_s30 }
 0x108   : > { %663 = vrot.lane.b32.xlu1 %v5853_v46, %s8144_s30  ;;  %684 = vrot.lane.b32.xlu0 %v5810_v24, %s8142_s29 }
 0x10c   : > { %667 = vrot.lane.b32.xlu1 %v5828_v38, %s8144_s30  ;;  %692 = vrot.lane.b32.xlu0 %v5848_v43, %s8142_s29 }
 0x110   : > { %686 = vrot.lane.b32.xlu1 %v5853_v46, %s8142_s29  ;;  %707 = vrot.lane.b32.xlu0 %v5810_v24, %s8134_s14 }
 0x114   : > { %690 = vrot.lane.b32.xlu1 %v5828_v38, %s8142_s29  ;;  %715 = vrot.lane.b32.xlu0 %v5848_v43, %s8134_s14 }
 0x118   : > { %709 = vrot.lane.b32.xlu1 %v5853_v46, %s8134_s14  ;;  %730 = vrot.lane.b32.xlu0 %v5810_v24, %s8137_s18 }
 0x11c   : > { %713 = vrot.lane.b32.xlu1 %v5828_v38, %s8134_s14  ;;  %738 = vrot.lane.b32.xlu0 %v5848_v43, %s8137_s18 }
 0x120   : > { %732 = vrot.lane.b32.xlu1 %v5853_v46, %s8137_s18  ;;  %753 = vrot.lane.b32.xlu0 %v5810_v24, %s8132_s19 }
 0x124   : > { %736 = vrot.lane.b32.xlu1 %v5828_v38, %s8137_s18  ;;  %761 = vrot.lane.b32.xlu0 %v5848_v43, %s8132_s19 }
 0x128   : > { %755 = vrot.lane.b32.xlu1 %v5853_v46, %s8132_s19  ;;  %776 = vrot.lane.b32.xlu0 %v5810_v24, %s8124_s22 }
 0x12c   : > { %759 = vrot.lane.b32.xlu1 %v5828_v38, %s8132_s19  ;;  %784 = vrot.lane.b32.xlu0 %v5848_v43, %s8124_s22 }
 0x130   : > { %778 = vrot.lane.b32.xlu1 %v5853_v46, %s8124_s22  ;;  %799 = vrot.lane.b32.xlu0 %v5810_v24, %s8120_s17 }
 0x134   : > { %782 = vrot.lane.b32.xlu1 %v5828_v38, %s8124_s22  ;;  %807 = vrot.lane.b32.xlu0 %v5848_v43, %s8120_s17  ;;  %s8207_s22 = smov 108  }
 0x138   : > { %801 = vrot.lane.b32.xlu1 %v5853_v46, %s8120_s17  ;;  %820 = vrot.lane.b32.xlu0 %v5813_v28, %s8122_s12 }
 0x13c   : > { %805 = vrot.lane.b32.xlu1 %v5828_v38, %s8120_s17  ;;  %822 = vrot.lane.b32.xlu0 %v5810_v24, %s8122_s12 }
 0x140   : > { %803 = vrot.lane.b32.xlu1 %v650_v40, %s8120_s17  ;;  %830 = vrot.lane.b32.xlu0 %v5848_v43, %s8122_s12  ;;  %s8146_s17 = smov 19  }
 0x144   : > { %824 = vrot.lane.b32.xlu1 %v5853_v46, %s8122_s12  ;;  %857 = vperm.xlu0 %5201, %v5932_v50  }
 0x148   : > { %828 = vrot.lane.b32.xlu1 %v5828_v38, %s8122_s12  ;;  %872 = vperm.xlu0 %5201, %v5944_v52  }
 0x14c   : > { %826 = vrot.lane.b32.xlu1 %v650_v40, %s8122_s12  ;;  %s8178_s12 = smov 92  }
 0x150   : > { %862 = vperm.xlu1 %5202, %v5927_v49  }
 0x154   : > { %867 = vperm.xlu1 %5202, %v5939_v51  }
 0x156   : > { %v660_v53 = vpop.permute.xlu0 %659 }
 0x15a   : > { %v683_v54 = vpop.permute.xlu0 %682 }
 0x15e   : > { %v706_v55 = vpop.permute.xlu0 %705 }
 0x162   : > { %v666_v56 = vpop.permute.xlu1 %665  ;;  %v729_v57 = vpop.permute.xlu0 %728 }
 0x166   : > { %v689_v58 = vpop.permute.xlu1 %688  ;;  %v5948_v59 = vpop.permute.xlu0 %751 }
 0x16a   : > { %v712_v60 = vpop.permute.xlu1 %711  ;;  %v5950_v61 = vpop.permute.xlu0 %774 }
 0x16e   : > { %v735_v62 = vpop.permute.xlu1 %734  ;;  %v5952_v63 = vpop.permute.xlu0 %797 }
 0x172   : > { %v5954_v1 = vpop.permute.xlu1 %757  ;;  %v662_v2 = vpop.permute.xlu0 %661 }
 0x173   : > { %v672_v8 = vsel %vm671_vm5, %v660_v53, %v662_v2 }
 0x176   : > { %v5956_v3 = vpop.permute.xlu1 %780  ;;  %v5958_v4 = vpop.permute.xlu0 %669 }
 0x17a   : > { %v664_v5 = vpop.permute.xlu1 %663  ;;  %v685_v6 = vpop.permute.xlu0 %684 }
 0x17b   : > { %v673_v7 = vsel %vm671_vm5, %v662_v2, %v664_v5  ;;  %v695_v16 = vsel %vm694_vm6, %v683_v54, %v685_v6  ;;  %v5231_v2 = vld [vmem:[%s8097_s1] ss:$12 sps:$4 sm:$0xff]  }
 0x17c   : > { %916 = vmatprep.subr.bf16.mxu0 %v673_v7 }
 0x17d   : > { %917 = vmatpush1.bf16.msra.mxu0 %v672_v8  ;;  %v5236_v8 = vld [vmem:[%s8097_s1 + $0x18] ss:$12 sps:$4 sm:$0xff]  }
 0x17e   : > { %v668_v9 = vpop.permute.xlu1 %667  ;;  %v5962_v10 = vpop.permute.xlu0 %692 }
 0x17f   : > { %v675_v11 = vsel %vm671_vm5, %v668_v9, %v5958_v4  ;;  %v674_v12 = vsel %vm671_vm5, %v666_v56, %v668_v9 }
 0x180   : > { %918 = vmatprep.subr.bf16.mxu0 %v675_v11  ;;  %v5237_v11 = vld [vmem:[%s8097_s1 + $0x8] ss:$12 sps:$4 sm:$0xff]  }
 0x181   : > { %919 = vmatpush1.bf16.msra.mxu0 %v674_v12 }
 0x182   : > { %v5967_v13 = vpop.permute.xlu1 %686  ;;  %v708_v14 = vpop.permute.xlu0 %707 }
 0x183   : > { %v696_v15 = vsel %vm694_vm6, %v685_v6, %v5967_v13  ;;  %v718_v24 = vsel %vm717_vm7, %v706_v55, %v708_v14 }
 0x184   : > { %920 = vmatprep.subr.bf16.mxu0 %v696_v15 }
 0x185   : > { %921 = vmatpush1.bf16.msra.mxu0 %v695_v16  ;;  %v5238_v16 = vld [vmem:[%s8097_s1 + $0x20] ss:$12 sps:$4 sm:$0xff]  }
 0x186   : > { %v691_v17 = vpop.permute.xlu1 %690  ;;  %v5972_v18 = vpop.permute.xlu0 %715 }
 0x187   : > { %v698_v19 = vsel %vm694_vm6, %v691_v17, %v5962_v10  ;;  %v697_v20 = vsel %vm694_vm6, %v689_v58, %v691_v17  ;;  %v8139_v17 = vlaneseq }
 0x188   : > { %922 = vmatprep.subr.bf16.mxu0 %v698_v19 }
 0x189   : > { %923 = vmatpush1.bf16.msra.mxu0 %v697_v20 }
 0x18a   : > { %v5977_v21 = vpop.permute.xlu1 %709  ;;  %v731_v22 = vpop.permute.xlu0 %730 }
 0x18b   : > { %v719_v23 = vsel %vm717_vm7, %v708_v14, %v5977_v21  ;;  %v741_v32 = vsel %vm740_vm8, %v729_v57, %v731_v22 }
 0x18c   : > { %924 = vmatprep.subr.bf16.mxu0 %v719_v23 }
 0x18d   : > { %925 = vmatpush1.bf16.msra.mxu0 %v718_v24 }
 0x18e   : > { %v714_v25 = vpop.permute.xlu1 %713  ;;  %v739_v26 = vpop.permute.xlu0 %738 }
 0x18f   : > { %v721_v27 = vsel %vm717_vm7, %v714_v25, %v5972_v18  ;;  %v720_v28 = vsel %vm717_vm7, %v712_v60, %v714_v25 }
 0x190   : > { %926 = vmatprep.subr.bf16.mxu0 %v721_v27 }
 0x191   : > { %927 = vmatpush1.bf16.msra.mxu0 %v720_v28 }
 0x192   : > { %v733_v29 = vpop.permute.xlu1 %732  ;;  %v754_v30 = vpop.permute.xlu0 %753 }
 0x193   : > { %4795 = vmatprep.subr.bf16.mxu1 %v733_v29  ;;  %v742_v31 = vsel %vm740_vm8, %v731_v22, %v733_v29  ;;  %v764_v40 = vsel %vm8148_vm9, %v5948_v59, %v754_v30 }
 0x194   : > { %928 = vmatprep.subr.bf16.mxu0 %v742_v31  ;;  %4796 = vmatpush3.bf16.msra.mxu1 %v5853_v46 }
 0x195   : > { %929 = vmatpush1.bf16.msra.mxu0 %v741_v32  ;;  %4797 = vmatprep.subr.bf16.mxu1 %v739_v26 }
 0x196   : > { %v737_v33 = vpop.permute.xlu1 %736  ;;  %v762_v34 = vpop.permute.xlu0 %761 }
 0x197   : > { %v744_v35 = vsel %vm740_vm8, %v737_v33, %v739_v26  ;;  %v743_v36 = vsel %vm740_vm8, %v735_v62, %v737_v33 }
 0x198   : > { %930 = vmatprep.subr.bf16.mxu0 %v744_v35  ;;  %4798 = vmatpush3.bf16.msra.mxu1 %v5848_v43 }
 0x199   : > { %931 = vmatpush1.bf16.msra.mxu0 %v743_v36 }
 0x19a   : > { %v756_v37 = vpop.permute.xlu1 %755  ;;  %v777_v38 = vpop.permute.xlu0 %776 }
 0x19b   : > { %4799 = vmatprep.subr.bf16.mxu1 %v756_v37  ;;  %v765_v39 = vsel %vm8148_vm9, %v754_v30, %v756_v37  ;;  %v787_v53 = vsel %vm8136_vm10, %v5950_v61, %v777_v38 }
 0x19c   : > { %932 = vmatprep.subr.bf16.mxu0 %v765_v39  ;;  %4800 = vmatpush3.bf16.msra.mxu1 %v664_v5 }
 0x19d   : > { %933 = vmatpush1.bf16.msra.mxu0 %v764_v40  ;;  %4801 = vmatprep.subr.bf16.mxu1 %v762_v34 }
 0x19e   : > { %v760_v41 = vpop.permute.xlu1 %759  ;;  %v785_v42 = vpop.permute.xlu0 %784 }
 0x19f   : > { %v767_v44 = vsel %vm8148_vm9, %v760_v41, %v762_v34  ;;  %v766_v43 = vsel %vm8148_vm9, %v5954_v1, %v760_v41 }
 0x1a0   : > { %934 = vmatprep.subr.bf16.mxu0 %v767_v44  ;;  %4802 = vmatpush3.bf16.msra.mxu1 %v5958_v4 }
 0x1a1   : > { %935 = vmatpush1.bf16.msra.mxu0 %v766_v43 }
 0x1a2   : > { %v779_v45 = vpop.permute.xlu1 %778  ;;  %v800_v46 = vpop.permute.xlu0 %799 }
 0x1a3   : > { %4803 = vmatprep.subr.bf16.mxu1 %v779_v45  ;;  %v788_v47 = vsel %vm8136_vm10, %v777_v38, %v779_v45  ;;  %v810_v61 = vsel %vm8131_vm11, %v5952_v63, %v800_v46 }
 0x1a4   : > { %936 = vmatprep.subr.bf16.mxu0 %v788_v47  ;;  %4804 = vmatpush3.bf16.msra.mxu1 %v5967_v13 }
 0x1a5   : > { %937 = vmatpush1.bf16.msra.mxu0 %v787_v53  ;;  %4805 = vmatprep.subr.bf16.mxu1 %v785_v42 }
 0x1a6   : > { %v783_v54 = vpop.permute.xlu1 %782  ;;  %v808_v55 = vpop.permute.xlu0 %807 }
 0x1a7   : > { %v790_v56 = vsel %vm8136_vm10, %v783_v54, %v785_v42  ;;  %v789_v57 = vsel %vm8136_vm10, %v5956_v3, %v783_v54  ;;  %v5234_v3 = vld [vmem:[%s8097_s1 + $0x1c] ss:$12 sps:$4 sm:$0xff]  }
 0x1a8   : > { %938 = vmatprep.subr.bf16.mxu0 %v790_v56  ;;  %4806 = vmatpush3.bf16.msra.mxu1 %v5962_v10 }
 0x1a9   : > { %939 = vmatpush1.bf16.msra.mxu0 %v789_v57 }
 0x1aa   : > { %v802_v58 = vpop.permute.xlu1 %801  ;;  %v821_v60 = vpop.permute.xlu0 %820 }
 0x1ab   : > { %4807 = vmatprep.subr.bf16.mxu1 %v802_v58  ;;  %v811_v59 = vsel %vm8131_vm11, %v800_v46, %v802_v58 }
 0x1ac   : > { %940 = vmatprep.subr.bf16.mxu0 %v811_v59  ;;  %4808 = vmatpush3.bf16.msra.mxu1 %v5977_v21 }
 0x1ad   : > { %941 = vmatpush1.bf16.msra.mxu0 %v810_v61  ;;  %4809 = vmatprep.subr.bf16.mxu1 %v808_v55 }
 0x1ae   : > { %v806_v62 = vpop.permute.xlu1 %805  ;;  %v823_v4 = vpop.permute.xlu0 %822 }
 0x1af   : > { %v813_v1 = vsel %vm8131_vm11, %v806_v62, %v808_v55  ;;  %v833_v10 = vsel %vm8130_vm12, %v821_v60, %v823_v4 }
 0x1b0   : > { %942 = vmatprep.subr.bf16.mxu0 %v813_v1  ;;  %4810 = vmatpush3.bf16.msra.mxu1 %v5972_v18  ;;  %v493_v18 = vand.u32 127, %v8139_v17 }
 0x1b2   : > { %v804_v5 = vpop.permute.xlu1 %803  ;;  %v831_v9 = vpop.permute.xlu0 %830  ;;  %v495_v19 = vadd.s32 256, %v493_v18  ;;  %v494_v20 = vadd.s32 128, %v493_v18  ;;  %v6042_v23 = vmul.u32.u64.low 3817748708, %v493_v18  ;;  %v6043_v24 = vmul.u32.u64.high 3817748708, %v493_v18, %v6042_v23 }
 0x1b3   : > { %1051 = vmatmul.mubr.bf16.vlgmr.msra.gmra.mrb[0].mxu1 %v5231_v2  ;;  %v812_v63 = vsel %vm8131_vm11, %v804_v5, %v806_v62 }
 0x1b4   : > { %943 = vmatpush1.bf16.msra.mxu0 %v812_v63  ;;  %1058 = vmatprep.mubr.bf16.mxu1 %v5234_v3  ;;  %v6039_v21 = vmul.u32.u64.low 3817748708, %v495_v19  ;;  %v6040_v22 = vmul.u32.u64.high 3817748708, %v495_v19, %v6039_v21  ;;  %v6045_v25 = vmul.u32.u64.low 3817748708, %v494_v20  ;;  %v6046_v26 = vmul.u32.u64.high 3817748708, %v494_v20, %v6045_v25 }
 0x1b5   : > { %v502_v28 = vshrl.u32 %v6043_v24, 4 }
 0x1b6   : > { %v825_v6 = vpop.permute.xlu1 %824  ;;  %v524_v27 = vshrl.u32 %v6040_v22, 4  ;;  %v513_v30 = vshrl.u32 %v6046_v26, 4 }
 0x1b7   : > { %945 = vmatmul.mubr.bf16.vlgmr.msra.gmra.mrb[0].mxu0 %v5231_v2  ;;  %4973 = vmatprep.subr.bf16.mxu1 %v825_v6  ;;  %v834_v7 = vsel %vm8130_vm12, %v823_v4, %v825_v6  ;;  %v503_v36 = vmul.u32 18, %v502_v28  ;;  %v5515_v2 = vmov 1  }
 0x1b8   : > { %965 = vmatprep.subr.bf16.mxu0 %v834_v7  ;;  %4974 = vmatpush3.bf16.msra.mxu1 %v825_v6  ;;  %v525_v34 = vmul.u32 18, %v524_v27  ;;  %v514_v38 = vmul.u32 18, %v513_v30 }
 0x1b9   : > { %966 = vmatpush1.bf16.msra.mxu0 %v833_v10  ;;  %4975 = vmatprep.subr.bf16.mxu1 %v831_v9  ;;  %v504_v41 = vsub.s32 %v493_v18, %v503_v36 }
 0x1ba   : > { %v829_v12 = vpop.permute.xlu1 %828  ;;  %954 = vmatprep.mubr.bf16.mxu0 %v5234_v3  ;;  %v526_v40 = vsub.s32 %v495_v19, %v525_v34  ;;  %v515_v43 = vsub.s32 %v494_v20, %v514_v38  ;;  %5204 = vset.pattern.permute.xlu1 %v5515_v2 }
 0x1bb   : > { %1059 = vmatmul.mubr.bf16.gmra.mrb[4].mxu1 %v5236_v8  ;;  %v836_v13 = vsel %vm8130_vm12, %v829_v12, %v831_v9  ;;  %vm529_vm0 = vcmp.ne.s32.totalorder %v504_v41, 0  ;;  %vm532_vm2 = vcmp.lt.s32.totalorder %v504_v41, 0  ;;  %v538_v60 = vadd.s32 18, %v504_v41  ;;  %5203 = vset.pattern.permute.xlu0 %v5515_v2 }
 0x1bc   : > { %967 = vmatprep.subr.bf16.mxu0 %v836_v13  ;;  %4976 = vmatpush3.bf16.msra.mxu1 %v831_v9  ;;  %vm531_vm14 = vcmp.ne.s32.totalorder %v526_v40, 0  ;;  %vm534_vm15 = vcmp.lt.s32.totalorder %v526_v40, 0  ;;  %vm530_vm4 = vcmp.ne.s32.totalorder %v515_v43, 0  ;;  %vm533_vm1 = vcmp.lt.s32.totalorder %v515_v43, 0 }
 0x1bd   : > { %4977 = vmatprep.mubr.msk.bf16.mxu1 %vm905_vm13, %v5237_v11  ;;  %vm6051_vm3 = vmand %vm534_vm15, %vm531_vm14  ;;  %v540_v58 = vadd.s32 18, %v526_v40  ;;  %v539_v62 = vadd.s32 18, %v515_v43  ;;  %vm8181_vm14 = vcmask 744448  }
 0x1be   : > { %v827_v14 = vpop.permute.xlu1 %826  ;;  %vm6059_vm11 = vmand %vm533_vm1, %vm530_vm4  ;;  %vm1375_vm4 = vcmask 1047704  }
 0x1bf   : > { %v835_v15 = vsel %vm8130_vm12, %v827_v14, %v829_v12  ;;  %955 = vmatmul.mubr.bf16.gmra.mrb[4].mxu0 %v5236_v8  ;;  %vm6055_vm12 = vmand %vm532_vm2, %vm529_vm0  ;;  %v543_v5 = vsel %vm6051_vm3, %v540_v58, %v526_v40 }
 0x1c0   : > { %968 = vmatpush1.bf16.msra.mxu0 %v835_v15  ;;  %997 = vmatprep.mubr.bf16.mxu0 %v5514_v48  ;;  %v541_v7 = vsel %vm6055_vm12, %v538_v60, %v504_v41  ;;  %vm6073_vm1 = vcmp.lt.s32.totalorder %v543_v5, 16  ;;  %vm1354_vm12 = vcmask 154624   ;;  %vm8182_vm15 = vmmov %vm8181_vm14 }
 0x1c1   : > { %vm6077_vm2 = vcmp.lt.s32.totalorder %v541_v7, 16  ;;  %vm8183_vm0 = vmmov %vm8181_vm14 }
 0x1c3   : > { %4978 = vmatmul.mubr.msk.bf16.vlgmr.msra.gmra.mrb[8].mxu1 %vm905_vm13, %v5238_v16  ;;  %v858_v42 = vpop.permute.xlu0 %857 }
 0x1c7   : > { %4730 = vmatmul.mubr.msk.bf16.vlgmr.msra.gmra.mrb[0].mxu0 %vm905_vm13, %v5237_v11  ;;  %v873_v56 = vpop.permute.xlu0 %872  ;;  %v542_v11 = vsel %vm6059_vm11, %v539_v62, %v515_v43  ;;  %vm1378_vm11 = vcmask 416768  }
 0x1c8   : > { %1007 = vmatprep.mubr.bf16.mxu0 %v5514_v48  ;;  %vm6081_vm3 = vcmp.lt.s32.totalorder %v542_v11, 16 }
 0x1cf   : > { %4731 = vmatmul.mubr.msk.bf16.gmra.mrb[4].mxu0 %vm905_vm13, %v5238_v16  ;;  %v863_v39 = vpop.permute.xlu1 %862 }
 0x1d3   : > { %v868_v53 = vpop.permute.xlu1 %867 }
 0x286   : > { %v4811_v29 = vpop.f32.mrb[0].mxu1 }
 0x287   : > { %v4812_v31 = vpop.f32.mrb[1].mxu1 }
 0x288   : > { %v4813_v32 = vadd.f32 %v4812_v31, %v4811_v29  ;;  %v4814_v33 = vpop.f32.mrb[2].mxu1 }
 0x289   : > { %v4815_v35 = vpop.f32.mrb[3].mxu1 }
 0x28a   : > { %v4816_v37 = vadd.f32 %v4815_v35, %v4814_v33  ;;  %v1053_v4 = vadd.f32 %v4813_v32, %v858_v42 }
 0x28c   : > { %v1056_v10 = vadd.f32 %v4816_v37, %v863_v39 }
 0x28e   : > { %v4817_v44 = vpop.f32.mrb[4].mxu1 }
 0x28f   : > { %v4818_v45 = vpop.f32.mrb[5].mxu1 }
 0x290   : > { %v4819_v46 = vadd.f32 %v4818_v45, %v4817_v44  ;;  %v4820_v47 = vpop.f32.mrb[6].mxu1 }
 0x291   : > { %v4821_v54 = vpop.f32.mrb[7].mxu1 }
 0x292   : > { %v4822_v55 = vadd.f32 %v4821_v54, %v4820_v47  ;;  %v1061_v59 = vadd.f32 %v4819_v46, %v868_v53 }
 0x294   : > { %v1064_v1 = vadd.f32 %v4822_v55, %v873_v56 }
 0x296   : > { %v4979_v3 = vpop.f32.mrb[8].mxu1 }
 0x297   : > { %v6065_v63 = vadd.f32 %v4979_v3, %v1061_v59  ;;  %v1101_v6 = vpop.f32.mrb[9].mxu1 }
 0x298   : > { %v1102_v8 = vadd.f32 %v1101_v6, %v1053_v4  ;;  %v4980_v9 = vpop.f32.mrb[10].mxu1 }
 0x299   : > { %v6071_v12 = vadd.f32 %v4980_v9, %v1064_v1  ;;  %v1104_v13 = vpop.f32.mrb[11].mxu1  ;;  %v1130_v43 = vsel %vm6073_vm1, %v6065_v63, 0.0 }
 0x29a   : > { %v1105_v15 = vadd.f32 %v1104_v13, %v1056_v10  ;;  %v999_v18 = vpop.f32.mrb[0].mxu0  ;;  %v1124_v24 = vsel %vm6073_vm1, %v1102_v8, 0.0  ;;  %v1145_v60 = vsel %vm905_vm13, %v1130_v43, 0.0 }
 0x29b   : > { %v5021_v19 = vadd.f32 %v999_v18, %v858_v42  ;;  %v1001_v21 = vpop.f32.mrb[1].mxu0  ;;  %v1135_v34 = vsel %vm905_vm13, %v1124_v24, 0.0 }
 0x29c   : > { %v5022_v22 = vadd.f32 %v1001_v21, %v858_v42  ;;  %v1003_v23 = vpop.f32.mrb[2].mxu0  ;;  %v1127_v30 = vsel %vm6073_vm1, %v1105_v15, 0.0 }
 0x29d   : > { %v1122_v25 = vsel %vm6077_vm2, %v5021_v19, 0.0  ;;  %v5023_v26 = vadd.f32 %v1003_v23, %v863_v39  ;;  %v1005_v27 = vpop.f32.mrb[3].mxu0  ;;  %v1140_v38 = vsel %vm905_vm13, %v1127_v30, 0.0 }
 0x29e   : > { %v1123_v28 = vsel %vm6081_vm3, %v5022_v22, 0.0  ;;  %v5024_v29 = vadd.f32 %v1005_v27, %v863_v39 }
 0x29f   : > { %v1125_v31 = vsel %vm6077_vm2, %v5023_v26, 0.0  ;;  %v1134_v32 = vadd.f32 %v1123_v28, %v1122_v25 }
 0x2a0   : > { %v1126_v33 = vsel %vm6081_vm3, %v5024_v29, 0.0 }
 0x2a1   : > { %v1136_v35 = vadd.f32 %v1135_v34, %v1134_v32  ;;  %v1139_v36 = vadd.f32 %v1126_v33, %v1125_v31 }
 0x2a2   : > { %v1009_v37 = vpop.f32.mrb[4].mxu0 }
 0x2a3   : > { %v5025_v40 = vadd.f32 %v1009_v37, %v868_v53  ;;  %v1011_v41 = vpop.f32.mrb[5].mxu0  ;;  %1137 = vadd.xlane.f32.xlu1 %v1136_v35  ;;  %v1141_v39 = vadd.f32 %v1140_v38, %v1139_v36 }
 0x2a4   : > { %v5026_v42 = vadd.f32 %v1011_v41, %v868_v53  ;;  %v1013_v44 = vpop.f32.mrb[6].mxu0  ;;  %v1133_v53 = vsel %vm6073_vm1, %v6071_v12, 0.0 }
 0x2a5   : > { %v1128_v45 = vsel %vm6077_vm2, %v5025_v40, 0.0  ;;  %v6104_v46 = vadd.f32 %v1013_v44, %v873_v56  ;;  %v1015_v47 = vpop.f32.mrb[7].mxu0  ;;  %1142 = vadd.xlane.f32.xlu0 %v1141_v39 }
 0x2a6   : > { %v1129_v54 = vsel %vm6081_vm3, %v5026_v42, 0.0  ;;  %v6108_v55 = vadd.f32 %v1015_v47, %v873_v56  ;;  %v1150_v56 = vsel %vm905_vm13, %v1133_v53, 0.0 }
 0x2a7   : > { %v1131_v57 = vsel %vm6077_vm2, %v6104_v46, 0.0  ;;  %v1144_v58 = vadd.f32 %v1129_v54, %v1128_v45 }
 0x2a8   : > { %v1132_v59 = vsel %vm6081_vm3, %v6108_v55, 0.0 }
 0x2a9   : > { %v1146_v61 = vadd.f32 %v1145_v60, %v1144_v58  ;;  %v1149_v62 = vadd.f32 %v1132_v59, %v1131_v57  ;;  %v5516_v57 = vmov 2  }
 0x2ab   : > { %1147 = vadd.xlane.f32.xlu0 %v1146_v61  ;;  %v1151_v1 = vadd.f32 %v1150_v56, %v1149_v62 }
 0x2ad   : > { %1152 = vadd.xlane.f32.xlu1 %v1151_v1 }
 0x330   : > { %v1138_v3 = vpop.xlane.xlu1 %1137 }
 0x331   : > { %v1154_v4 = vmul.f32 0.00390625, %v1138_v3 }
 0x332   : > { %v1143_v5 = vpop.xlane.xlu0 %1142 }
 0x333   : > { %v6123_v6 = vsub.f32 %v5021_v19, %v1154_v4  ;;  %v6125_v7 = vsub.f32 %v5022_v22, %v1154_v4  ;;  %v6127_v9 = vsub.f32 %v1102_v8, %v1154_v4  ;;  %v1155_v10 = vmul.f32 0.00390625, %v1143_v5 }
 0x335   : > { %v6129_v11 = vsub.f32 %v5023_v26, %v1155_v10  ;;  %v6131_v13 = vsub.f32 %v5024_v29, %v1155_v10  ;;  %v6133_v18 = vsub.f32 %v1105_v15, %v1155_v10  ;;  %v1170_v21 = vsel %vm6077_vm2, %v6123_v6, 0.0 }
 0x336   : > { %v1171_v19 = vsel %vm6081_vm3, %v6125_v7, 0.0  ;;  %v1172_v8 = vsel %vm6073_vm1, %v6127_v9, 0.0  ;;  %v1182_v22 = vmul.f32 %v1170_v21, %v1170_v21 }
 0x337   : > { %v1183_v23 = vmul.f32 %v1171_v19, %v1171_v19  ;;  %v1184_v24 = vmul.f32 %v1172_v8, %v1172_v8  ;;  %v1173_v15 = vsel %vm6077_vm2, %v6129_v11, 0.0  ;;  %v1174_v25 = vsel %vm6081_vm3, %v6131_v13, 0.0 }
 0x338   : > { %v1148_v26 = vpop.xlane.xlu0 %1147  ;;  %v1175_v27 = vsel %vm6073_vm1, %v6133_v18, 0.0  ;;  %v1185_v28 = vmul.f32 %v1173_v15, %v1173_v15  ;;  %v1186_v29 = vmul.f32 %v1174_v25, %v1174_v25 }
 0x339   : > { %v1156_v30 = vmul.f32 0.00390625, %v1148_v26  ;;  %v1194_v31 = vadd.f32 %v1183_v23, %v1182_v22  ;;  %v1195_v32 = vsel %vm905_vm13, %v1184_v24, 0.0  ;;  %v1187_v33 = vmul.f32 %v1175_v27, %v1175_v27 }
 0x33a   : > { %v1199_v34 = vadd.f32 %v1186_v29, %v1185_v28  ;;  %v1153_v58 = vpop.xlane.xlu1 %1152 }
 0x33b   : > { %v6154_v35 = vsub.f32 %v5025_v40, %v1156_v30  ;;  %v6156_v36 = vsub.f32 %v5026_v42, %v1156_v30  ;;  %v6159_v37 = vsub.f32 %v6065_v63, %v1156_v30  ;;  %v1196_v38 = vadd.f32 %v1195_v32, %v1194_v31 }
 0x33c   : > { %v1200_v41 = vsel %vm905_vm13, %v1187_v33, 0.0  ;;  %v1157_v59 = vmul.f32 0.00390625, %v1153_v58 }
 0x33d   : > { %v1201_v39 = vadd.f32 %v1200_v41, %v1199_v34  ;;  %1197 = vadd.xlane.f32.xlu0 %v1196_v38  ;;  %v1176_v44 = vsel %vm6077_vm2, %v6154_v35, 0.0  ;;  %v1177_v43 = vsel %vm6081_vm3, %v6156_v36, 0.0  ;;  %v1178_v40 = vsel %vm6073_vm1, %v6159_v37, 0.0 }
 0x33e   : > { %v1188_v63 = vmul.f32 %v1176_v44, %v1176_v44  ;;  %v1189_v42 = vmul.f32 %v1177_v43, %v1177_v43  ;;  %v1190_v45 = vmul.f32 %v1178_v40, %v1178_v40  ;;  %v6184_v60 = vsub.f32 %v6104_v46, %v1157_v59 }
 0x33f   : > { %1202 = vadd.xlane.f32.xlu1 %v1201_v39 }
 0x340   : > { %v1204_v47 = vadd.f32 %v1189_v42, %v1188_v63  ;;  %v1205_v54 = vsel %vm905_vm13, %v1190_v45, 0.0  ;;  %v1179_v61 = vsel %vm6077_vm2, %v6184_v60, 0.0 }
 0x341   : > { %v1191_v46 = vmul.f32 %v1179_v61, %v1179_v61 }
 0x342   : > { %v1206_v53 = vadd.f32 %v1205_v54, %v1204_v47 }
 0x344   : > { %1207 = vadd.xlane.f32.xlu0 %v1206_v53 }
 0x350   : > { %1243 = vperm.xlu1 %5204, %v5927_v49  }
 0x354   : > { %5205 = vset.pattern.permute.xlu1 %v5516_v57 }
 0x355   : > { %1267 = vperm.xlu1 %5205, %v5932_v50  }
 0x359   : > { %1271 = vperm.xlu1 %5205, %v5927_v49   ;;  %v6187_v49 = vsub.f32 %v6108_v55, %v1157_v59 }
 0x35a   : > { %1239 = vperm.xlu0 %5203, %v5932_v50   ;;  %v6190_v50 = vsub.f32 %v6071_v12, %v1157_v59 }
 0x35b   : > { %v1180_v62 = vsel %vm6081_vm3, %v6187_v49, 0.0 }
 0x35c   : > { %v1192_v56 = vmul.f32 %v1180_v62, %v1180_v62 }
 0x35d   : > { %5206 = vset.pattern.permute.xlu1 %v5515_v2 }
 0x35e   : > { %1247 = vperm.xlu1 %5206, %v5939_v51   ;;  %5209 = vset.pattern.permute.xlu0 %v5514_v48  ;;  %v1209_v55 = vadd.f32 %v1192_v56, %v1191_v46 }
 0x362   : > { %1251 = vperm.xlu1 %5206, %v5944_v52  }
 0x366   : > { %5207 = vset.pattern.permute.xlu1 %v5516_v57 }
 0x367   : > { %1275 = vperm.xlu1 %5207, %v5939_v51   ;;  %v1181_v51 = vsel %vm6073_vm1, %v6190_v50, 0.0 }
 0x368   : > { %v1193_v1 = vmul.f32 %v1181_v51, %v1181_v51 }
 0x36a   : > { %v1210_v3 = vsel %vm905_vm13, %v1193_v1, 0.0 }
 0x36b   : > { %v1211_v12 = vadd.f32 %v1210_v3, %v1209_v55 }
 0x38b   : > { %1212 = vadd.xlane.f32.xlu1 %v1211_v12 }
 0x39c   : > { %1279 = vperm.xlu1 %5207, %v5944_v52  }
 0x3a0   : > { %5208 = vset.pattern.permute.xlu1 %v5514_v48 }
 0x3ca   : > { %v1198_v4 = vpop.xlane.xlu0 %1197 }
 0x3cb   : > { %v1214_v5 = vmul.f32 0.00390625, %v1198_v4 }
 0x3cc   : > { %v1203_v10 = vpop.xlane.xlu1 %1202 }
 0x3cd   : > { %v1215_v21 = vmul.f32 0.00390625, %v1203_v10  ;;  %v1218_v19 = vadd.f32 1e-05, %v1214_v5 }
 0x3cf   : > { %v1219_v8 = vadd.f32 1e-05, %v1215_v21  ;;  %5270 = vrsqrt.f32 %v1218_v19 }
 0x3d0   : > { %v1244_v22 = vpop.permute.xlu1 %1243 }
 0x3d1   : > { %5272 = vrsqrt.f32 %v1219_v8  ;;  %v1208_v23 = vpop.xlane.xlu0 %1207 }
 0x3d2   : > { %v1216_v24 = vmul.f32 0.00390625, %v1208_v23 }
 0x3d4   : > { %v1268_v15 = vpop.permute.xlu1 %1267  ;;  %v1220_v25 = vadd.f32 1e-05, %v1216_v24 }
 0x3d6   : > { %5274 = vrsqrt.f32 %v1220_v25 }
 0x3d8   : > { %v1272_v26 = vpop.permute.xlu1 %1271 }
 0x3d9   : > { %v5271_v27 = vpop.eup %5270  ;;  %v1240_v28 = vpop.permute.xlu0 %1239 }
 0x3da   : > { %v1226_v29 = vmul.f32 %v5271_v27, %v6123_v6  ;;  %v1227_v30 = vmul.f32 %v5271_v27, %v6125_v7  ;;  %v1228_v31 = vmul.f32 %v5271_v27, %v6127_v9 }
 0x3db   : > { %v5273_v52 = vpop.eup %5272 }
 0x3dc   : > { %v1229_v32 = vmul.f32 %v5273_v52, %v6129_v11  ;;  %v1230_v33 = vmul.f32 %v5273_v52, %v6131_v13  ;;  %v1231_v34 = vmul.f32 %v5273_v52, %v6133_v18  ;;  %v1254_v38 = vmul.f32 %v1240_v28, %v1226_v29 }
 0x3dd   : > { %v1255_v41 = vmul.f32 %v1240_v28, %v1227_v30  ;;  %v1256_v39 = vmul.f32 %v1240_v28, %v1228_v31  ;;  %v1248_v44 = vpop.permute.xlu1 %1247 }
 0x3de   : > { %v1257_v43 = vmul.f32 %v1244_v22, %v1229_v32  ;;  %v1258_v40 = vmul.f32 %v1244_v22, %v1230_v33  ;;  %v1259_v63 = vmul.f32 %v1244_v22, %v1231_v34  ;;  %v1282_v45 = vadd.f32 %v1268_v15, %v1254_v38 }
 0x3df   : > { %v1283_v42 = vadd.f32 %v1268_v15, %v1255_v41  ;;  %v1284_v6 = vadd.f32 %v1268_v15, %v1256_v39 }
 0x3e0   : > { %v1285_v47 = vadd.f32 %v1272_v26, %v1257_v43  ;;  %v5275_v7 = vpop.eup %5274  ;;  %v1294_v53 = vmax.f32 %v1282_v45, 0.0  ;;  %v1286_v11 = vadd.f32 %v1272_v26, %v1258_v40  ;;  %v1287_v46 = vadd.f32 %v1272_v26, %v1259_v63 }
 0x3e1   : > { %v1252_v54 = vpop.permute.xlu1 %1251  ;;  %v1295_v9 = vmax.f32 %v1283_v42, 0.0  ;;  %v1232_v13 = vmul.f32 %v5275_v7, %v6154_v35  ;;  %v1233_v18 = vmul.f32 %v5275_v7, %v6156_v36  ;;  %v1234_v58 = vmul.f32 %v5275_v7, %v6159_v37 }
 0x3e2   : > { %v1296_v59 = vmax.f32 %v1284_v6, 0.0  ;;  %v1306_v62 = vsel %vm6077_vm2, %v1294_v53, 0.0  ;;  %v1297_v51 = vmax.f32 %v1285_v47, 0.0  ;;  %v1298_v55 = vmax.f32 %v1286_v11, 0.0 }
 0x3e3   : > { %v1307_v61 = vsel %vm6081_vm3, %v1295_v9, 0.0  ;;  %v1260_v56 = vmul.f32 %v1248_v44, %v1232_v13  ;;  %v1261_v1 = vmul.f32 %v1248_v44, %v1233_v18  ;;  %1330 = vrot.lane.b32.xlu1 %v1306_v62, %s8146_s17  ;;  %v1262_v35 = vmul.f32 %v1248_v44, %v1234_v58 }
 0x3e4   : > { %1332 = vrot.lane.b32.xlu0 %v1307_v61, %s8146_s17  ;;  %v1308_v37 = vsel %vm6073_vm1, %v1296_v59, 0.0  ;;  %v1309_v3 = vsel %vm6077_vm2, %v1297_v51, 0.0  ;;  %v1299_v12 = vmax.f32 %v1287_v46, 0.0  ;;  %v1310_v10 = vsel %vm6081_vm3, %v1298_v55, 0.0 }
 0x3e6   : > { %v1276_v36 = vpop.permute.xlu1 %1275  ;;  %v1311_v21 = vsel %vm6073_vm1, %v1299_v12, 0.0 }
 0x3e7   : > { %v1289_v4 = vadd.f32 %v1276_v36, %v1261_v1  ;;  %v1288_v5 = vadd.f32 %v1276_v36, %v1260_v56  ;;  %1334 = vrot.lane.b32.xlu1 %v1308_v37, %s8146_s17  ;;  %v1290_v22 = vadd.f32 %v1276_v36, %v1262_v35 }
 0x3e8   : > { %1336 = vrot.lane.b32.xlu0 %v1309_v3, %s8146_s17 }
 0x3e9   : > { %v1301_v19 = vmax.f32 %v1289_v4, 0.0  ;;  %v1300_v8 = vmax.f32 %v1288_v5, 0.0  ;;  %v1302_v15 = vmax.f32 %v1290_v22, 0.0 }
 0x3eb   : > { %1338 = vrot.lane.b32.xlu1 %v1310_v10, %s8146_s17  ;;  %v1313_v23 = vsel %vm6081_vm3, %v1301_v19, 0.0  ;;  %v1312_v24 = vsel %vm6077_vm2, %v1300_v8, 0.0  ;;  %v1314_v25 = vsel %vm6073_vm1, %v1302_v15, 0.0 }
 0x3ec   : > { %1340 = vrot.lane.b32.xlu0 %v1311_v21, %s8146_s17 }
 0x3ef   : > { %1342 = vrot.lane.b32.xlu1 %v1312_v24, %s8146_s17 }
 0x3f0   : > { %1344 = vrot.lane.b32.xlu0 %v1313_v23, %s8146_s17 }
 0x3f3   : > { %1346 = vrot.lane.b32.xlu1 %v1314_v25, %s8146_s17 }
 0x418   : > { %v1213_v26 = vpop.xlane.xlu1 %1212 }
 0x419   : > { %v1217_v27 = vmul.f32 0.00390625, %v1213_v26 }
 0x41b   : > { %v1221_v28 = vadd.f32 1e-05, %v1217_v27 }
 0x41c   : > { %v1280_v38 = vpop.permute.xlu1 %1279 }
 0x41d   : > { %5276 = vrsqrt.f32 %v1221_v28  ;;  %v5241_v28 = vld [vmem:[%s8097_s1 + $0x34] ss:$12 sps:$4 sm:$0xff]  }
 0x41e   : > { %1797 = vmatprep.mubr.bf16.mxu0 %v5241_v28  ;;  %1691 = vmatprep.mubr.bf16.mxu1 %v5241_v28 }
 0x427   : > { %v5277_v52 = vpop.eup %5276 }
 0x428   : > { %v1236_v29 = vmul.f32 %v5277_v52, %v6187_v49  ;;  %v1235_v30 = vmul.f32 %v5277_v52, %v6184_v60  ;;  %v1237_v31 = vmul.f32 %v5277_v52, %v6190_v50 }
 0x42a   : > { %v1264_v32 = vmul.f32 %v1252_v54, %v1236_v29  ;;  %v1263_v33 = vmul.f32 %v1252_v54, %v1235_v30  ;;  %v1265_v34 = vmul.f32 %v1252_v54, %v1237_v31 }
 0x42c   : > { %v1292_v41 = vadd.f32 %v1280_v38, %v1264_v32  ;;  %v1291_v39 = vadd.f32 %v1280_v38, %v1263_v33  ;;  %v1293_v44 = vadd.f32 %v1280_v38, %v1265_v34  ;;  %v6392_v38 = vld [vmem:[%s8098_s2 + $0x20] sm:$0xff] }
 0x42e   : > { %v1304_v43 = vmax.f32 %v1292_v41, 0.0  ;;  %v1303_v40 = vmax.f32 %v1291_v39, 0.0  ;;  %v1305_v49 = vmax.f32 %v1293_v44, 0.0  ;;  %v6397_v41 = vld [vmem:[%s8098_s2 + $0x28] sm:$0xff]  ;;  %v6404_v39 = vld [vmem:[%s8098_s2 + $0x30] sm:$0xff]  ;;  %v6411_v44 = vld [vmem:[%s8098_s2 + $0x38] sm:$0xff] }
 0x430   : > { %v1316_v63 = vsel %vm6081_vm3, %v1304_v43, 0.0  ;;  %v1315_v42 = vsel %vm6077_vm2, %v1303_v40, 0.0  ;;  %v1317_v60 = vsel %vm6073_vm1, %v1305_v49, 0.0 }
 0x431   : > { %1350 = vrot.lane.b32.xlu1 %v1316_v63, %s8146_s17  ;;  %1348 = vrot.lane.b32.xlu0 %v1315_v42, %s8146_s17 }
 0x435   : > { %1352 = vrot.lane.b32.xlu0 %v1317_v60, %s8146_s17 }
 0x455   : > { %v1331_v45 = vpop.permute.xlu1 %1330 }
 0x456   : > { %v1333_v50 = vpop.permute.xlu0 %1332  ;;  %1376 = vst.msk [vmem:[#allocation3] sm:$0xff] %vm1375_vm4, %v1331_v45 }
 0x457   : > { %v1355_v53 = vsel %vm1354_vm12, %v1331_v45, %v1333_v50 }
 0x459   : > { %v1335_v47 = vpop.permute.xlu1 %1334 }
 0x45a   : > { %v1337_v6 = vpop.permute.xlu0 %1336  ;;  %v1356_v7 = vsel %vm1354_vm12, %v1333_v50, %v1335_v47 }
 0x45b   : > { %1380 = vst.msk [vmem:[#allocation3 + $0x18] sm:$0xff] %vm1375_vm4, %v1337_v6 }
 0x45c   : > { %1379 = vst.msk [vmem:[#allocation3 + $0x10] sm:$0xff] %vm1378_vm11, %v1356_v7 }
 0x45d   : > { %v1339_v9 = vpop.permute.xlu1 %1338  ;;  %v1389_v58 = vld [vmem:[#allocation3] sm:$0xff] }
 0x45e   : > { %v1341_v54 = vpop.permute.xlu0 %1340  ;;  %v1357_v11 = vsel %vm1354_vm12, %v1337_v6, %v1339_v9 }
 0x45f   : > { %v1358_v13 = vsel %vm1354_vm12, %v1339_v9, %v1341_v54  ;;  %v6260_v18 = vpack.c.bf16 %v1357_v11, %v1355_v53 }
 0x460   : > { %1382 = vst.msk [vmem:[#allocation3 + $0x28] sm:$0xff] %vm1378_vm11, %v1358_v13 }
 0x461   : > { %v1343_v61 = vpop.permute.xlu1 %1342  ;;  %1659 = vmatprep.subr.bf16.mxu1 %v6260_v18 }
 0x462   : > { %v1392_v59 = vld [vmem:[#allocation3 + $0x18] sm:$0xff]  ;;  %1383 = vst.msk [vmem:[#allocation3 + $0x30] sm:$0xff] %vm1375_vm4, %v1343_v61  ;;  %v1345_v51 = vpop.permute.xlu0 %1344 }
 0x463   : > { %v6263_v62 = vpack.c.bf16 %v1392_v59, %v1389_v58  ;;  %v1391_v56 = vld [vmem:[#allocation3 + $0x10] sm:$0xff]  ;;  %v1359_v3 = vsel %vm1354_vm12, %v1343_v61, %v1345_v51 }
 0x465   : > { %1413 = vrot.lane.b32.xlu1 %v6263_v62, %s8144_s30  ;;  %1660 = vmatpush1.bf16.msra.mxu1 %v6263_v62  ;;  %v1347_v46 = vpop.permute.xlu1 %1346 }
 0x466   : > { %v1360_v35 = vsel %vm1354_vm12, %v1345_v51, %v1347_v46 }
 0x467   : > { %v1394_v1 = vld [vmem:[#allocation3 + $0x28] sm:$0xff]  ;;  %1385 = vst.msk [vmem:[#allocation3 + $0x40] sm:$0xff] %vm1378_vm11, %v1360_v35 }
 0x468   : > { %v6271_v36 = vpack.c.bf16 %v1394_v1, %v1391_v56 }
 0x469   : > { %1435 = vrot.lane.b32.xlu1 %v6263_v62, %s8142_s29  ;;  %v1395_v21 = vld [vmem:[#allocation3 + $0x30] sm:$0xff] }
 0x46a   : > { %1417 = vrot.lane.b32.xlu0 %v6271_v36, %s8144_s30 }
 0x46d   : > { %1457 = vrot.lane.b32.xlu1 %v6263_v62, %s8134_s14 }
 0x46e   : > { %1439 = vrot.lane.b32.xlu0 %v6271_v36, %s8142_s29  ;;  %v1397_v22 = vld [vmem:[#allocation3 + $0x40] sm:$0xff] }
 0x471   : > { %1479 = vrot.lane.b32.xlu1 %v6263_v62, %s8137_s18 }
 0x472   : > { %1461 = vrot.lane.b32.xlu0 %v6271_v36, %s8134_s14 }
 0x475   : > { %1415 = vrot.lane.b32.xlu1 %v6260_v18, %s8144_s30 }
 0x476   : > { %1483 = vrot.lane.b32.xlu0 %v6271_v36, %s8137_s18 }
 0x479   : > { %1437 = vrot.lane.b32.xlu1 %v6260_v18, %s8142_s29 }
 0x47d   : > { %1459 = vrot.lane.b32.xlu1 %v6260_v18, %s8134_s14 }
 0x481   : > { %1481 = vrot.lane.b32.xlu1 %v6260_v18, %s8137_s18 }
 0x4a3   : > { %v1349_v37 = vpop.permute.xlu0 %1348  ;;  %v1351_v55 = vpop.permute.xlu1 %1350 }
 0x4a4   : > { %1386 = vst.msk [vmem:[#allocation3 + $0x48] sm:$0xff] %vm1375_vm4, %v1349_v37  ;;  %v1361_v12 = vsel %vm1354_vm12, %v1349_v37, %v1351_v55 }
 0x4a5   : > { %v6298_v4 = vpack.c.bf16 %v1361_v12, %v1359_v3 }
 0x4a7   : > { %v1353_v5 = vpop.permute.xlu0 %1352  ;;  %1661 = vmatprep.subr.bf16.mxu1 %v6298_v4 }
 0x4a8   : > { %v1362_v10 = vsel %vm1354_vm12, %v1351_v55, %v1353_v5 }
 0x4a9   : > { %1388 = vst.msk [vmem:[#allocation3 + $0x58] sm:$0xff] %vm1378_vm11, %v1362_v10 }
 0x4ab   : > { %v1398_v19 = vld [vmem:[#allocation3 + $0x48] sm:$0xff] }
 0x4ac   : > { %v1404_v8 = vpack.c.bf16 %v1398_v19, %v1395_v21 }
 0x4ae   : > { %1419 = vrot.lane.b32.xlu0 %v1404_v8, %s8144_s30  ;;  %1662 = vmatpush1.bf16.msra.mxu1 %v1404_v8 }
 0x4b0   : > { %v1400_v23 = vld [vmem:[#allocation3 + $0x58] sm:$0xff] }
 0x4b1   : > { %v6304_v24 = vpack.c.bf16 %v1400_v23, %v1397_v22 }
 0x4b2   : > { %1441 = vrot.lane.b32.xlu0 %v1404_v8, %s8142_s29 }
 0x4b3   : > { %1423 = vrot.lane.b32.xlu1 %v6304_v24, %s8144_s30 }
 0x4b6   : > { %1463 = vrot.lane.b32.xlu0 %v1404_v8, %s8134_s14 }
 0x4b7   : > { %1503 = vrot.lane.b32.xlu1 %v6260_v18, %s8132_s19 }
 0x4ba   : > { %1421 = vrot.lane.b32.xlu0 %v6298_v4, %s8144_s30 }
 0x4bb   : > { %1445 = vrot.lane.b32.xlu1 %v6304_v24, %s8142_s29 }
 0x4be   : > { %1485 = vrot.lane.b32.xlu0 %v1404_v8, %s8137_s18 }
 0x4bf   : > { %1501 = vrot.lane.b32.xlu1 %v6263_v62, %s8132_s19 }
 0x4c2   : > { %1443 = vrot.lane.b32.xlu0 %v6298_v4, %s8142_s29 }
 0x4c3   : > { %1467 = vrot.lane.b32.xlu1 %v6304_v24, %s8134_s14 }
 0x4c6   : > { %1505 = vrot.lane.b32.xlu0 %v6271_v36, %s8132_s19 }
 0x4c7   : > { %1525 = vrot.lane.b32.xlu1 %v6260_v18, %s8178_s12 }
 0x4ca   : > { %1465 = vrot.lane.b32.xlu0 %v6298_v4, %s8134_s14 }
 0x4cb   : > { %1489 = vrot.lane.b32.xlu1 %v6304_v24, %s8137_s18 }
 0x4ce   : > { %1507 = vrot.lane.b32.xlu0 %v1404_v8, %s8132_s19 }
 0x4cf   : > { %1523 = vrot.lane.b32.xlu1 %v6263_v62, %s8178_s12 }
 0x4d2   : > { %1487 = vrot.lane.b32.xlu0 %v6298_v4, %s8137_s18 }
 0x4d3   : > { %1511 = vrot.lane.b32.xlu1 %v6304_v24, %s8132_s19 }
 0x4d6   : > { %1527 = vrot.lane.b32.xlu0 %v6271_v36, %s8178_s12 }
 0x4d7   : > { %v1414_v15 = vpop.permute.xlu1 %1413  ;;  %1547 = vrot.lane.b32.xlu1 %v6260_v18, %s8179_s13 }
 0x4da   : > { %1509 = vrot.lane.b32.xlu0 %v6298_v4, %s8132_s19  ;;  %s5102_s19 = smul.u32 24, %s5732_s20 }
 0x4db   : > { %v1436_v25 = vpop.permute.xlu1 %1435  ;;  %1533 = vrot.lane.b32.xlu1 %v6304_v24, %s8178_s12 }
 0x4dc   : > { %v6346_v26 = vpop.permute.xlu0 %1417 }
 0x4de   : > { %1529 = vrot.lane.b32.xlu0 %v1404_v8, %s8178_s12 }
 0x4df   : > { %v6349_v27 = vpop.permute.xlu1 %1457  ;;  %1545 = vrot.lane.b32.xlu1 %v6263_v62, %s8179_s13 }
 0x4e0   : > { %v6356_v52 = vpop.permute.xlu0 %1439 }
 0x4e2   : > { %1531 = vrot.lane.b32.xlu0 %v6298_v4, %s8178_s12 }
 0x4e3   : > { %v6360_v29 = vpop.permute.xlu1 %1479  ;;  %1555 = vrot.lane.b32.xlu1 %v6304_v24, %s8179_s13 }
 0x4e4   : > { %v6364_v30 = vpop.permute.xlu0 %1461 }
 0x4e6   : > { %1549 = vrot.lane.b32.xlu0 %v6271_v36, %s8179_s13 }
 0x4e7   : > { %v1416_v31 = vpop.permute.xlu1 %1415  ;;  %1569 = vrot.lane.b32.xlu1 %v6260_v18, %s8180_s27 }
 0x4e8   : > { %v6370_v32 = vpop.permute.xlu0 %1483  ;;  %v1426_v33 = vsel %vm671_vm5, %v1416_v31, %v6346_v26  ;;  %v1425_v34 = vsel %vm671_vm5, %v1414_v15, %v1416_v31 }
 0x4e9   : > { %1663 = vmatprep.subr.bf16.mxu1 %v1426_v33  ;;  %4827 = vmatprep.subr.bf16.mxu0 %v6370_v32 }
 0x4ea   : > { %1664 = vmatpush1.bf16.msra.mxu1 %v1425_v34  ;;  %4828 = vmatpush3.bf16.msra.mxu0 %v6271_v36 }
 0x4eb   : > { %1553 = vrot.lane.b32.xlu0 %v6298_v4, %s8179_s13  ;;  %1567 = vrot.lane.b32.xlu1 %v6263_v62, %s8180_s27  ;;  %v1438_v43 = vpop.permute.xlu1 %1437 }
 0x4ec   : > { %v1448_v9 = vsel %vm694_vm6, %v1438_v43, %v6356_v52  ;;  %v1447_v13 = vsel %vm694_vm6, %v1436_v25, %v1438_v43 }
 0x4ef   : > { %1551 = vrot.lane.b32.xlu0 %v1404_v8, %s8179_s13  ;;  %1577 = vrot.lane.b32.xlu1 %v6304_v24, %s8180_s27  ;;  %v1460_v40 = vpop.permute.xlu1 %1459 }
 0x4f0   : > { %v1470_v62 = vsel %vm717_vm7, %v1460_v40, %v6364_v30  ;;  %v1469_v56 = vsel %vm717_vm7, %v6349_v27, %v1460_v40 }
 0x4f3   : > { %1571 = vrot.lane.b32.xlu0 %v6271_v36, %s8180_s27  ;;  %1605 = vperm.xlu1 %5208, %v6392_v38   ;;  %v1482_v42 = vpop.permute.xlu1 %1481 }
 0x4f4   : > { %v1492_v55 = vsel %vm740_vm8, %v1482_v42, %v6370_v32 }
 0x4f7   : > { %1575 = vrot.lane.b32.xlu0 %v6298_v4, %s8180_s27  ;;  %1615 = vperm.xlu1 %5208, %v6404_v39   ;;  %v1491_v4 = vsel %vm740_vm8, %v6360_v29, %v1482_v42 }
 0x4fb   : > { %1573 = vrot.lane.b32.xlu0 %v1404_v8, %s8180_s27  ;;  %1620 = vperm.xlu1 %5208, %v6411_v44  }
 0x4ff   : > { %1610 = vperm.xlu0 %5209, %v6397_v41   ;;  %5210 = vset.pattern.permute.xlu1 %v5515_v2 }
 0x503   : > { %5211 = vset.pattern.permute.xlu0 %v5515_v2 }
 0x520   : > { %v1420_v63 = vpop.permute.xlu0 %1419 }
 0x524   : > { %v1442_v49 = vpop.permute.xlu0 %1441 }
 0x525   : > { %v1424_v60 = vpop.permute.xlu1 %1423 }
 0x528   : > { %v1464_v50 = vpop.permute.xlu0 %1463 }
 0x529   : > { %v1504_v45 = vpop.permute.xlu1 %1503 }
 0x52c   : > { %v1422_v6 = vpop.permute.xlu0 %1421 }
 0x52d   : > { %v1446_v47 = vpop.permute.xlu1 %1445  ;;  %v1428_v7 = vsel %vm671_vm5, %v1422_v6, %v1424_v60  ;;  %v1427_v54 = vsel %vm671_vm5, %v1420_v63, %v1422_v6  ;;  %v5242_v6 = vld [vmem:[%s8097_s1 + $0x4c] ss:$12 sps:$4 sm:$0xff]  }
 0x52e   : > { %1665 = vmatprep.subr.bf16.mxu1 %v1428_v7 }
 0x52f   : > { %1666 = vmatpush1.bf16.msra.mxu1 %v1427_v54 }
 0x530   : > { %v1486_v53 = vpop.permute.xlu0 %1485  ;;  %1667 = vmatprep.subr.bf16.mxu1 %v1448_v9  ;;  %v5244_v9 = vld [vmem:[%s8097_s1 + $0x48] ss:$12 sps:$4 sm:$0xff]  }
 0x531   : > { %v1502_v11 = vpop.permute.xlu1 %1501 }
 0x533   : > { %1668 = vmatpush1.bf16.msra.mxu1 %v1447_v13 }
 0x534   : > { %v1444_v18 = vpop.permute.xlu0 %1443 }
 0x535   : > { %v6420_v58 = vpop.permute.xlu1 %1467  ;;  %v1450_v59 = vsel %vm694_vm6, %v1444_v18, %v1446_v47  ;;  %v1449_v61 = vsel %vm694_vm6, %v1442_v49, %v1444_v18 }
 0x536   : > { %1669 = vmatprep.subr.bf16.mxu1 %v1450_v59 }
 0x537   : > { %1670 = vmatpush1.bf16.msra.mxu1 %v1449_v61 }
 0x538   : > { %v1506_v51 = vpop.permute.xlu0 %1505  ;;  %1671 = vmatprep.subr.bf16.mxu1 %v1470_v62  ;;  %v5246_v62 = vld [vmem:[%s8097_s1 + $0x50] ss:$12 sps:$4 sm:$0xff]  }
 0x539   : > { %v1526_v46 = vpop.permute.xlu1 %1525  ;;  %v1514_v8 = vsel %vm8148_vm9, %v1504_v45, %v1506_v51 }
 0x53b   : > { %1672 = vmatpush1.bf16.msra.mxu1 %v1469_v56 }
 0x53c   : > { %v1466_v1 = vpop.permute.xlu0 %1465 }
 0x53d   : > { %v1490_v35 = vpop.permute.xlu1 %1489  ;;  %v1472_v36 = vsel %vm717_vm7, %v1466_v1, %v6420_v58  ;;  %v1471_v37 = vsel %vm717_vm7, %v1464_v50, %v1466_v1  ;;  %v5239_v50 = vld [vmem:[%s8097_s1 + $0x30] ss:$12 sps:$4 sm:$0xff]  }
 0x53e   : > { %1673 = vmatprep.subr.bf16.mxu1 %v1472_v36  ;;  %4829 = vmatprep.subr.bf16.mxu0 %v1490_v35 }
 0x53f   : > { %1674 = vmatpush1.bf16.msra.mxu1 %v1471_v37  ;;  %4830 = vmatpush3.bf16.msra.mxu0 %v6304_v24  ;;  %v1513_v24 = vsel %vm8148_vm9, %v1502_v11, %v1504_v45  ;;  %v5245_v11 = vld [vmem:[%s8097_s1 + $0x38] ss:$12 sps:$4 sm:$0xff]  }
 0x540   : > { %v1508_v3 = vpop.permute.xlu0 %1507  ;;  %1675 = vmatprep.subr.bf16.mxu1 %v1492_v55  ;;  %4831 = vmatprep.subr.bf16.mxu0 %v1506_v51 }
 0x541   : > { %v1524_v12 = vpop.permute.xlu1 %1523 }
 0x542   : > { %v1535_v32 = vsel %vm8136_vm10, %v1524_v12, %v1526_v46 }
 0x543   : > { %1676 = vmatpush1.bf16.msra.mxu1 %v1491_v4  ;;  %4832 = vmatpush3.bf16.msra.mxu0 %v6346_v26 }
 0x544   : > { %v1488_v5 = vpop.permute.xlu0 %1487 }
 0x545   : > { %v1512_v10 = vpop.permute.xlu1 %1511  ;;  %v1494_v21 = vsel %vm740_vm8, %v1488_v5, %v1490_v35  ;;  %v1493_v19 = vsel %vm740_vm8, %v1486_v53, %v1488_v5 }
 0x546   : > { %1677 = vmatprep.subr.bf16.mxu1 %v1494_v21  ;;  %4833 = vmatprep.subr.bf16.mxu0 %v1512_v10 }
 0x547   : > { %1678 = vmatpush1.bf16.msra.mxu1 %v1493_v19  ;;  %4834 = vmatpush3.bf16.msra.mxu0 %v1424_v60 }
 0x548   : > { %v1528_v22 = vpop.permute.xlu0 %1527  ;;  %1679 = vmatprep.subr.bf16.mxu1 %v1514_v8 }
 0x549   : > { %4835 = vmatprep.subr.bf16.mxu0 %v1528_v22  ;;  %v1548_v23 = vpop.permute.xlu1 %1547  ;;  %v1536_v28 = vsel %vm8136_vm10, %v1526_v46, %v1528_v22 }
 0x54b   : > { %1680 = vmatpush1.bf16.msra.mxu1 %v1513_v24  ;;  %4836 = vmatpush3.bf16.msra.mxu0 %v6356_v52 }
 0x54c   : > { %v1510_v15 = vpop.permute.xlu0 %1509 }
 0x54d   : > { %v1534_v25 = vpop.permute.xlu1 %1533  ;;  %v1516_v26 = vsel %vm8148_vm9, %v1510_v15, %v1512_v10  ;;  %v1515_v27 = vsel %vm8148_vm9, %v1508_v3, %v1510_v15 }
 0x54e   : > { %1681 = vmatprep.subr.bf16.mxu1 %v1516_v26  ;;  %4837 = vmatprep.subr.bf16.mxu0 %v1534_v25 }
 0x54f   : > { %1682 = vmatpush1.bf16.msra.mxu1 %v1515_v27  ;;  %4838 = vmatpush3.bf16.msra.mxu0 %v1446_v47 }
 0x550   : > { %v1530_v29 = vpop.permute.xlu0 %1529  ;;  %1683 = vmatprep.subr.bf16.mxu1 %v1536_v28 }
 0x551   : > { %v1546_v31 = vpop.permute.xlu1 %1545 }
 0x552   : > { %v1557_v42 = vsel %vm8182_vm15, %v1546_v31, %v1548_v23  ;;  %vm8185_vm15 = vcmask 736256  }
 0x553   : > { %1684 = vmatpush1.bf16.msra.mxu1 %v1535_v32 }
 0x554   : > { %v1532_v33 = vpop.permute.xlu0 %1531 }
 0x555   : > { %v1556_v52 = vpop.permute.xlu1 %1555  ;;  %v1538_v34 = vsel %vm8136_vm10, %v1532_v33, %v1534_v25  ;;  %v1537_v43 = vsel %vm8136_vm10, %v1530_v29, %v1532_v33  ;;  %vm8193_vm10 = vcmask 1047696  }
 0x556   : > { %1685 = vmatprep.subr.bf16.mxu1 %v1538_v34 }
 0x557   : > { %1686 = vmatpush1.bf16.msra.mxu1 %v1537_v43 }
 0x558   : > { %v1550_v40 = vpop.permute.xlu0 %1549 }
 0x559   : > { %4839 = vmatprep.subr.bf16.mxu0 %v1550_v40  ;;  %v1558_v63 = vsel %vm8181_vm14, %v1548_v23, %v1550_v40  ;;  %v1570_v49 = vpop.permute.xlu1 %1569  ;;  %vm8184_vm14 = vmmov %vm8183_vm0 }
 0x55a   : > { %1687 = vmatprep.subr.bf16.mxu1 %v1558_v63  ;;  %4840 = vmatpush3.bf16.msra.mxu0 %v6364_v30 }
 0x55b   : > { %1688 = vmatpush1.bf16.msra.mxu1 %v1557_v42  ;;  %4841 = vmatprep.subr.bf16.mxu0 %v1556_v52 }
 0x55d   : > { %v1554_v60 = vpop.permute.xlu0 %1553  ;;  %v1568_v47 = vpop.permute.xlu1 %1567 }
 0x55e   : > { %v1560_v45 = vsel %vm8183_vm0, %v1554_v60, %v1556_v52  ;;  %4842 = vmatpush3.bf16.msra.mxu0 %v6420_v58  ;;  %vm8186_vm0 = vmmov %vm8185_vm15 }
 0x55f   : > { %1689 = vmatprep.subr.bf16.mxu1 %v1560_v45  ;;  %v1579_v13 = vsel %vm8186_vm0, %v1568_v47, %v1570_v49 }
 0x561   : > { %v1552_v7 = vpop.permute.xlu0 %1551  ;;  %1798 = vmatmul.mubr.bf16.vlgmr.msra.gmra.mrb[8].mxu0 %v5239_v50  ;;  %v1578_v18 = vpop.permute.xlu1 %1577 }
 0x562   : > { %v1559_v30 = vsel %vm8184_vm14, %v1552_v7, %v1554_v60  ;;  %1805 = vmatprep.mubr.bf16.mxu0 %v5242_v6  ;;  %vm8187_vm14 = vmmov %vm8186_vm0 }
 0x563   : > { %1690 = vmatpush1.bf16.msra.mxu1 %v1559_v30 }
 0x565   : > { %v1572_v54 = vpop.permute.xlu0 %1571 }
 0x566   : > { %1692 = vmatmul.mubr.bf16.vlgmr.msra.gmra.mrb[12].mxu1 %v5239_v50  ;;  %4981 = vmatprep.subr.bf16.mxu0 %v1572_v54  ;;  %v1580_v53 = vsel %vm8185_vm15, %v1570_v49, %v1572_v54  ;;  %vm8188_vm15 = vmmov %vm8186_vm0  ;;  %vm8190_vm0 = vcmask 146432  }
 0x567   : > { %1712 = vmatprep.subr.bf16.mxu1 %v1580_v53  ;;  %4982 = vmatpush3.bf16.msra.mxu0 %v1572_v54 }
 0x568   : > { %1713 = vmatpush1.bf16.msra.mxu1 %v1579_v13  ;;  %4983 = vmatprep.subr.bf16.mxu0 %v1578_v18 }
 0x569   : > { %v1576_v58 = vpop.permute.xlu0 %1575  ;;  %1806 = vmatmul.mubr.bf16.gmra.mrb[12].mxu0 %v5244_v9  ;;  %1701 = vmatprep.mubr.bf16.mxu1 %v5242_v6 }
 0x56a   : > { %v1582_v59 = vsel %vm8187_vm14, %v1576_v58, %v1578_v18  ;;  %4985 = vmatprep.mubr.msk.bf16.mxu0 %vm905_vm13, %v5245_v11  ;;  %vm8191_vm14 = vcmask 572816  }
 0x56b   : > { %1714 = vmatprep.subr.bf16.mxu1 %v1582_v59  ;;  %4984 = vmatpush3.bf16.msra.mxu0 %v1578_v18 }
 0x56d   : > { %v1574_v61 = vpop.permute.xlu0 %1573 }
 0x56e   : > { %v1581_v51 = vsel %vm8188_vm15, %v1574_v61, %v1576_v58  ;;  %1702 = vmatmul.mubr.bf16.gmra.mrb[16].mxu1 %v5244_v9  ;;  %vm8192_vm15 = vcmask 408576  }
 0x56f   : > { %1715 = vmatpush1.bf16.msra.mxu1 %v1581_v51  ;;  %1744 = vmatprep.mubr.bf16.mxu1 %v5514_v48 }
 0x571   : > { %4986 = vmatmul.mubr.msk.bf16.vlgmr.msra.gmra.mrb[16].mxu0 %vm905_vm13, %v5246_v62 }
 0x572   : > { %v1606_v56 = vpop.permute.xlu1 %1605 }
 0x576   : > { %4752 = vmatmul.mubr.msk.bf16.vlgmr.msra.gmra.mrb[12].mxu1 %vm905_vm13, %v5245_v11  ;;  %v1616_v3 = vpop.permute.xlu1 %1615 }
 0x577   : > { %1754 = vmatprep.mubr.bf16.mxu1 %v5514_v48 }
 0x57a   : > { %v1621_v8 = vpop.permute.xlu1 %1620 }
 0x57e   : > { %4753 = vmatmul.mubr.msk.bf16.gmra.mrb[16].mxu1 %vm905_vm13, %v5246_v62  ;;  %v1611_v23 = vpop.permute.xlu0 %1610 }
 0x634   : > { %v4843_v46 = vpop.f32.mrb[8].mxu0 }
 0x635   : > { %v4844_v1 = vpop.f32.mrb[9].mxu0 }
 0x636   : > { %v4845_v35 = vadd.f32 %v4844_v1, %v4843_v46  ;;  %v4846_v36 = vpop.f32.mrb[10].mxu0 }
 0x637   : > { %v4847_v37 = vpop.f32.mrb[11].mxu0 }
 0x638   : > { %v4848_v55 = vadd.f32 %v4847_v37, %v4846_v36  ;;  %v1800_v25 = vadd.f32 %v4845_v35, %v1606_v56 }
 0x63a   : > { %v1803_v31 = vadd.f32 %v4848_v55, %v1611_v23 }
 0x63c   : > { %v4849_v12 = vpop.f32.mrb[12].mxu0 }
 0x63d   : > { %v4850_v4 = vpop.f32.mrb[13].mxu0 }
 0x63e   : > { %v4851_v5 = vadd.f32 %v4850_v4, %v4849_v12  ;;  %v4852_v10 = vpop.f32.mrb[14].mxu0 }
 0x63f   : > { %v4853_v21 = vpop.f32.mrb[15].mxu0 }
 0x640   : > { %v4854_v19 = vadd.f32 %v4853_v21, %v4852_v10  ;;  %v1808_v22 = vadd.f32 %v4851_v5, %v1616_v3 }
 0x642   : > { %v1811_v24 = vadd.f32 %v4854_v19, %v1621_v8 }
 0x644   : > { %v4987_v15 = vpop.f32.mrb[16].mxu0 }
 0x645   : > { %v6479_v26 = vadd.f32 %v4987_v15, %v1808_v22  ;;  %v1848_v27 = vpop.f32.mrb[17].mxu0 }
 0x646   : > { %v1849_v28 = vadd.f32 %v1848_v27, %v1800_v25  ;;  %v4988_v29 = vpop.f32.mrb[18].mxu0 }
 0x647   : > { %v6481_v32 = vadd.f32 %v4988_v29, %v1811_v24  ;;  %v1851_v33 = vpop.f32.mrb[19].mxu0 }
 0x648   : > { %v1852_v52 = vadd.f32 %v1851_v33, %v1803_v31  ;;  %v1865_v49 = vsel %vm6073_vm1, %v1849_v28, 0.0 }
 0x649   : > { %v1746_v34 = vpop.f32.mrb[12].mxu1  ;;  %v1876_v9 = vsel %vm905_vm13, %v1865_v49, 0.0  ;;  %v1874_v10 = vsel %vm6073_vm1, %v6481_v32, 0.0 }
 0x64a   : > { %v5029_v43 = vadd.f32 %v1746_v34, %v1606_v56  ;;  %v1748_v40 = vpop.f32.mrb[13].mxu1  ;;  %v1868_v7 = vsel %vm6073_vm1, %v1852_v52, 0.0  ;;  %v1891_v22 = vsel %vm905_vm13, %v1874_v10, 0.0 }
 0x64b   : > { %v5030_v63 = vadd.f32 %v1748_v40, %v1606_v56  ;;  %v1750_v42 = vpop.f32.mrb[14].mxu1  ;;  %v1881_v18 = vsel %vm905_vm13, %v1868_v7, 0.0  ;;  %v1871_v56 = vsel %vm6073_vm1, %v6479_v26, 0.0 }
 0x64c   : > { %v1863_v60 = vsel %vm6077_vm2, %v5029_v43, 0.0  ;;  %v5031_v50 = vadd.f32 %v1750_v42, %v1611_v23  ;;  %v1752_v45 = vpop.f32.mrb[15].mxu1 }
 0x64d   : > { %v1864_v6 = vsel %vm6081_vm3, %v5030_v63, 0.0  ;;  %v5032_v47 = vadd.f32 %v1752_v45, %v1611_v23 }
 0x64e   : > { %v1875_v30 = vadd.f32 %v1864_v6, %v1863_v60  ;;  %v1866_v54 = vsel %vm6077_vm2, %v5031_v50, 0.0 }
 0x64f   : > { %v1867_v53 = vsel %vm6081_vm3, %v5032_v47, 0.0 }
 0x650   : > { %v1880_v11 = vadd.f32 %v1867_v53, %v1866_v54  ;;  %v1877_v13 = vadd.f32 %v1876_v9, %v1875_v30 }
 0x651   : > { %v1756_v58 = vpop.f32.mrb[16].mxu1 }
 0x652   : > { %v5033_v59 = vadd.f32 %v1756_v58, %v1616_v3  ;;  %v1758_v61 = vpop.f32.mrb[17].mxu1  ;;  %1878 = vadd.xlane.f32.xlu0 %v1877_v13  ;;  %v1882_v62 = vadd.f32 %v1881_v18, %v1880_v11 }
 0x653   : > { %v5034_v51 = vadd.f32 %v1758_v61, %v1616_v3  ;;  %v1760_v46 = vpop.f32.mrb[18].mxu1  ;;  %v1886_v3 = vsel %vm905_vm13, %v1871_v56, 0.0 }
 0x654   : > { %v1869_v1 = vsel %vm6077_vm2, %v5033_v59, 0.0  ;;  %v5035_v35 = vadd.f32 %v1760_v46, %v1621_v8  ;;  %v1762_v36 = vpop.f32.mrb[19].mxu1  ;;  %1883 = vadd.xlane.f32.xlu1 %v1882_v62 }
 0x655   : > { %v1870_v37 = vsel %vm6081_vm3, %v5034_v51, 0.0  ;;  %v5036_v55 = vadd.f32 %v1762_v36, %v1621_v8 }
 0x656   : > { %v1885_v12 = vadd.f32 %v1870_v37, %v1869_v1  ;;  %v1872_v4 = vsel %vm6077_vm2, %v5035_v35, 0.0 }
 0x657   : > { %v1873_v5 = vsel %vm6081_vm3, %v5036_v55, 0.0 }
 0x658   : > { %v1890_v21 = vadd.f32 %v1873_v5, %v1872_v4  ;;  %v1887_v19 = vadd.f32 %v1886_v3, %v1885_v12 }
 0x65a   : > { %1888 = vadd.xlane.f32.xlu0 %v1887_v19  ;;  %v1892_v23 = vadd.f32 %v1891_v22, %v1890_v21 }
 0x65e   : > { %1893 = vadd.xlane.f32.xlu0 %v1892_v23 }
 0x665   : > { %1980 = vperm.xlu1 %5210, %v6392_v38  }
 0x669   : > { %5212 = vset.pattern.permute.xlu1 %v5516_v57 }
 0x6df   : > { %v1879_v8 = vpop.xlane.xlu0 %1878 }
 0x6e0   : > { %v1895_v24 = vmul.f32 0.00390625, %v1879_v8 }
 0x6e1   : > { %v1884_v15 = vpop.xlane.xlu1 %1883 }
 0x6e2   : > { %v6515_v25 = vsub.f32 %v5029_v43, %v1895_v24  ;;  %v6517_v27 = vsub.f32 %v5030_v63, %v1895_v24  ;;  %v6519_v29 = vsub.f32 %v1849_v28, %v1895_v24  ;;  %v1896_v31 = vmul.f32 0.00390625, %v1884_v15 }
 0x6e4   : > { %v6521_v33 = vsub.f32 %v5031_v50, %v1896_v31  ;;  %v6523_v34 = vsub.f32 %v5032_v47, %v1896_v31  ;;  %v6525_v40 = vsub.f32 %v1852_v52, %v1896_v31  ;;  %v1911_v42 = vsel %vm6077_vm2, %v6515_v25, 0.0 }
 0x6e5   : > { %v1912_v43 = vsel %vm6081_vm3, %v6517_v27, 0.0  ;;  %v1913_v28 = vsel %vm6073_vm1, %v6519_v29, 0.0  ;;  %v1923_v63 = vmul.f32 %v1911_v42, %v1911_v42  ;;  %v2569_v42 = vld [vmem:[%s5736_s23 + $0x8] sm:$0xff] }
 0x6e6   : > { %v1924_v49 = vmul.f32 %v1912_v43, %v1912_v43  ;;  %v1925_v60 = vmul.f32 %v1913_v28, %v1913_v28  ;;  %v1914_v52 = vsel %vm6077_vm2, %v6521_v33, 0.0  ;;  %v1915_v50 = vsel %vm6081_vm3, %v6523_v34, 0.0  ;;  %v2571_v43 = vld [vmem:[%s5736_s23 + $0x18] sm:$0xff]  ;;  %v2568_v28 = vld [vmem:[%s5736_s23] sm:$0xff] }
 0x6e7   : > { %v1889_v45 = vpop.xlane.xlu0 %1888  ;;  %v1916_v6 = vsel %vm6073_vm1, %v6525_v40, 0.0  ;;  %v1926_v47 = vmul.f32 %v1914_v52, %v1914_v52  ;;  %v1927_v7 = vmul.f32 %v1915_v50, %v1915_v50  ;;  %v2576_v52 = vld [vmem:[%s5736_s23 + $0x40] sm:$0xff]  ;;  %v2578_v50 = vld [vmem:[%s5736_s23 + $0x50] sm:$0xff] }
 0x6e8   : > { %v1897_v30 = vmul.f32 0.00390625, %v1889_v45  ;;  %v1935_v54 = vadd.f32 %v1924_v49, %v1923_v63  ;;  %v1936_v9 = vsel %vm905_vm13, %v1925_v60, 0.0  ;;  %v1928_v53 = vmul.f32 %v1916_v6, %v1916_v6  ;;  %v2577_v63 = vld [vmem:[%s5736_s23 + $0x48] sm:$0xff]  ;;  %v2570_v49 = vld [vmem:[%s5736_s23 + $0x10] sm:$0xff]  ;;  %v2572_v60 = vld [vmem:[%s5736_s23 + $0x20] sm:$0xff]  ;;  %v1981_v45 = vpop.permute.xlu1 %1980 }
 0x6e9   : > { %v1940_v11 = vadd.f32 %v1927_v7, %v1926_v47 }
 0x6ea   : > { %v6546_v13 = vsub.f32 %v5033_v59, %v1897_v30  ;;  %v6548_v18 = vsub.f32 %v5034_v51, %v1897_v30  ;;  %v6551_v58 = vsub.f32 %v6479_v26, %v1897_v30  ;;  %v1937_v61 = vadd.f32 %v1936_v9, %v1935_v54 }
 0x6eb   : > { %v1894_v62 = vpop.xlane.xlu0 %1893  ;;  %v1941_v46 = vsel %vm905_vm13, %v1928_v53, 0.0 }
 0x6ec   : > { %1938 = vadd.xlane.f32.xlu1 %v1937_v61  ;;  %v1898_v56 = vmul.f32 0.00390625, %v1894_v62  ;;  %v1942_v1 = vadd.f32 %v1941_v46, %v1940_v11  ;;  %v1917_v36 = vsel %vm6077_vm2, %v6546_v13, 0.0  ;;  %v1918_v59 = vsel %vm6081_vm3, %v6548_v18, 0.0 }
 0x6ed   : > { %v1919_v26 = vsel %vm6073_vm1, %v6551_v58, 0.0  ;;  %v1929_v51 = vmul.f32 %v1917_v36, %v1917_v36  ;;  %v1930_v37 = vmul.f32 %v1918_v59, %v1918_v59 }
 0x6ee   : > { %v6563_v12 = vsub.f32 %v5035_v35, %v1898_v56  ;;  %v6565_v4 = vsub.f32 %v5036_v55, %v1898_v56  ;;  %v6568_v3 = vsub.f32 %v6481_v32, %v1898_v56  ;;  %1943 = vadd.xlane.f32.xlu0 %v1942_v1  ;;  %v1931_v5 = vmul.f32 %v1919_v26, %v1919_v26 }
 0x6ef   : > { %v1945_v10 = vadd.f32 %v1930_v37, %v1929_v51 }
 0x6f0   : > { %v1946_v21 = vsel %vm905_vm13, %v1931_v5, 0.0  ;;  %v1920_v19 = vsel %vm6077_vm2, %v6563_v12, 0.0  ;;  %v1921_v22 = vsel %vm6081_vm3, %v6565_v4, 0.0  ;;  %v1922_v35 = vsel %vm6073_vm1, %v6568_v3, 0.0 }
 0x6f1   : > { %v1947_v32 = vadd.f32 %v1946_v21, %v1945_v10  ;;  %v1932_v55 = vmul.f32 %v1920_v19, %v1920_v19  ;;  %v1933_v23 = vmul.f32 %v1921_v22, %v1921_v22  ;;  %v1934_v8 = vmul.f32 %v1922_v35, %v1922_v35 }
 0x6f3   : > { %1948 = vadd.xlane.f32.xlu1 %v1947_v32  ;;  %v1950_v24 = vadd.f32 %v1933_v23, %v1932_v55  ;;  %v1951_v15 = vsel %vm905_vm13, %v1934_v8, 0.0 }
 0x6f5   : > { %v1952_v31 = vadd.f32 %v1951_v15, %v1950_v24 }
 0x6f7   : > { %1953 = vadd.xlane.f32.xlu0 %v1952_v31 }
 0x704   : > { %2008 = vperm.xlu1 %5212, %v6392_v38   ;;  %v2573_v38 = vld [vmem:[%s5736_s23 + $0x28] sm:$0xff] }
 0x708   : > { %2012 = vperm.xlu1 %5212, %v6397_v41  }
 0x70c   : > { %5213 = vset.pattern.permute.xlu1 %v5515_v2 }
 0x70d   : > { %1988 = vperm.xlu1 %5213, %v6404_v39   ;;  %1984 = vperm.xlu0 %5211, %v6397_v41   ;;  %v2575_v41 = vld [vmem:[%s5736_s23 + $0x38] sm:$0xff] }
 0x711   : > { %1992 = vperm.xlu1 %5213, %v6411_v44   ;;  %2594 = vrot.lane.b32.xlu0 %v2569_v42, %s8189_s28 }
 0x712   : > { %5216 = vset.pattern.permute.xlu0 %v5514_v48 }
 0x715   : > { %5214 = vset.pattern.permute.xlu1 %v5516_v57  ;;  %2598 = vrot.lane.b32.xlu0 %v2571_v43, %s8189_s28 }
 0x716   : > { %2016 = vperm.xlu1 %5214, %v6404_v39   ;;  %v2579_v39 = vld [vmem:[%s5736_s23 + $0x58] sm:$0xff] }
 0x719   : > { %2602 = vrot.lane.b32.xlu0 %v2573_v38, %s8189_s28 }
 0x71a   : > { %2020 = vperm.xlu1 %5214, %v6411_v44   ;;  %v2574_v44 = vld [vmem:[%s5736_s23 + $0x30] sm:$0xff]  ;;  %s8202_s23 = smov 110  }
 0x71d   : > { %2606 = vrot.lane.b32.xlu0 %v2575_v41, %s8189_s28 }
 0x71e   : > { %2592 = vrot.lane.b32.xlu1 %v2568_v28, %s8189_s28 }
 0x71f   : > { %5215 = vset.pattern.permute.xlu1 %v5514_v48 }
 0x721   : > { %2610 = vrot.lane.b32.xlu0 %v2577_v63, %s8189_s28 }
 0x722   : > { %2596 = vrot.lane.b32.xlu1 %v2570_v49, %s8189_s28 }
 0x725   : > { %2614 = vrot.lane.b32.xlu0 %v2579_v39, %s8189_s28 }
 0x726   : > { %2600 = vrot.lane.b32.xlu1 %v2572_v60, %s8189_s28 }
 0x72a   : > { %2604 = vrot.lane.b32.xlu1 %v2574_v44, %s8189_s28 }
 0x72e   : > { %2608 = vrot.lane.b32.xlu1 %v2576_v52, %s8189_s28 }
 0x732   : > { %2612 = vrot.lane.b32.xlu1 %v2578_v50, %s8189_s28 }
 0x779   : > { %v1939_v6 = vpop.xlane.xlu1 %1938 }
 0x77a   : > { %v1955_v47 = vmul.f32 0.00390625, %v1939_v6 }
 0x77b   : > { %v1944_v7 = vpop.xlane.xlu0 %1943 }
 0x77c   : > { %v1959_v30 = vadd.f32 1e-05, %v1955_v47  ;;  %v1956_v54 = vmul.f32 0.00390625, %v1944_v7 }
 0x77e   : > { %5278 = vrsqrt.f32 %v1959_v30  ;;  %v1960_v9 = vadd.f32 1e-05, %v1956_v54 }
 0x780   : > { %5280 = vrsqrt.f32 %v1960_v9  ;;  %v1949_v53 = vpop.xlane.xlu1 %1948 }
 0x781   : > { %v1957_v11 = vmul.f32 0.00390625, %v1949_v53 }
 0x783   : > { %v1961_v61 = vadd.f32 1e-05, %v1957_v11 }
 0x784   : > { %v1954_v62 = vpop.xlane.xlu0 %1953  ;;  %v2009_v46 = vpop.permute.xlu1 %2008 }
 0x785   : > { %5282 = vrsqrt.f32 %v1961_v61  ;;  %v1958_v56 = vmul.f32 0.00390625, %v1954_v62 }
 0x787   : > { %v1962_v1 = vadd.f32 1e-05, %v1958_v56 }
 0x788   : > { %v5279_v36 = vpop.eup %5278  ;;  %v2013_v59 = vpop.permute.xlu1 %2012 }
 0x789   : > { %5284 = vrsqrt.f32 %v1962_v1  ;;  %v1967_v26 = vmul.f32 %v5279_v36, %v6515_v25  ;;  %v1968_v51 = vmul.f32 %v5279_v36, %v6517_v27  ;;  %v1969_v37 = vmul.f32 %v5279_v36, %v6519_v29 }
 0x78a   : > { %v5281_v5 = vpop.eup %5280 }
 0x78b   : > { %v1995_v10 = vmul.f32 %v1981_v45, %v1967_v26  ;;  %v1996_v21 = vmul.f32 %v1981_v45, %v1968_v51  ;;  %v1997_v19 = vmul.f32 %v1981_v45, %v1969_v37  ;;  %v1970_v22 = vmul.f32 %v5281_v5, %v6521_v33 }
 0x78c   : > { %v1971_v35 = vmul.f32 %v5281_v5, %v6523_v34  ;;  %v1972_v32 = vmul.f32 %v5281_v5, %v6525_v40  ;;  %v1985_v55 = vpop.permute.xlu0 %1984  ;;  %v1989_v23 = vpop.permute.xlu1 %1988 }
 0x78d   : > { %v2023_v8 = vadd.f32 %v2009_v46, %v1995_v10  ;;  %v2024_v24 = vadd.f32 %v2009_v46, %v1996_v21  ;;  %v2025_v15 = vadd.f32 %v2009_v46, %v1997_v19  ;;  %v1998_v25 = vmul.f32 %v1985_v55, %v1970_v22 }
 0x78e   : > { %v1999_v31 = vmul.f32 %v1985_v55, %v1971_v35  ;;  %v2000_v27 = vmul.f32 %v1985_v55, %v1972_v32 }
 0x78f   : > { %v5283_v42 = vpop.eup %5282  ;;  %v2037_v29 = vmax.f32 %v2025_v15, 0.0  ;;  %v2036_v43 = vmax.f32 %v2024_v24, 0.0  ;;  %v2035_v28 = vmax.f32 %v2023_v8, 0.0  ;;  %v2026_v63 = vadd.f32 %v2013_v59, %v1998_v25 }
 0x790   : > { %v1974_v38 = vmul.f32 %v5283_v42, %v6548_v18  ;;  %v1993_v41 = vpop.permute.xlu1 %1992  ;;  %v2028_v33 = vadd.f32 %v2013_v59, %v2000_v27  ;;  %v1975_v34 = vmul.f32 %v5283_v42, %v6551_v58  ;;  %v2027_v39 = vadd.f32 %v2013_v59, %v1999_v31  ;;  %v6666_v24 = vpop.permute.xlu0 %2594 }
 0x791   : > { %v2049_v40 = vsel %vm6073_vm1, %v2037_v29, 0.0  ;;  %v2048_v49 = vsel %vm6081_vm3, %v2036_v43, 0.0  ;;  %v1973_v60 = vmul.f32 %v5283_v42, %v6546_v13  ;;  %v2047_v58 = vsel %vm6077_vm2, %v2035_v28, 0.0 }
 0x792   : > { %2075 = vrot.lane.b32.xlu0 %v2049_v40, %s8146_s17  ;;  %2073 = vrot.lane.b32.xlu1 %v2048_v49, %s8146_s17  ;;  %v2040_v18 = vmax.f32 %v2028_v33, 0.0  ;;  %v2002_v45 = vmul.f32 %v1989_v23, %v1974_v38  ;;  %v2003_v6 = vmul.f32 %v1989_v23, %v1975_v34  ;;  %v2039_v7 = vmax.f32 %v2027_v39, 0.0 }
 0x793   : > { %v5285_v44 = vpop.eup %5284  ;;  %v2038_v30 = vmax.f32 %v2026_v63, 0.0  ;;  %v2001_v13 = vmul.f32 %v1989_v23, %v1973_v60 }
 0x794   : > { %v1978_v52 = vmul.f32 %v5285_v44, %v6568_v3  ;;  %v2052_v50 = vsel %vm6073_vm1, %v2040_v18, 0.0  ;;  %v1976_v54 = vmul.f32 %v5285_v44, %v6563_v12  ;;  %v1977_v3 = vmul.f32 %v5285_v44, %v6565_v4  ;;  %v6668_v25 = vpop.permute.xlu0 %2598 }
 0x795   : > { %v2017_v47 = vpop.permute.xlu1 %2016  ;;  %v2051_v62 = vsel %vm6081_vm3, %v2039_v7, 0.0  ;;  %v2050_v46 = vsel %vm6077_vm2, %v2038_v30, 0.0 }
 0x796   : > { %2071 = vrot.lane.b32.xlu1 %v2047_v58, %s8146_s17  ;;  %2081 = vrot.lane.b32.xlu0 %v2052_v50, %s8146_s17  ;;  %v2030_v9 = vadd.f32 %v2017_v47, %v2002_v45  ;;  %v2031_v53 = vadd.f32 %v2017_v47, %v2003_v6  ;;  %v2006_v11 = vmul.f32 %v1993_v41, %v1978_v52 }
 0x797   : > { %v2029_v61 = vadd.f32 %v2017_v47, %v2001_v13  ;;  %v2004_v12 = vmul.f32 %v1993_v41, %v1976_v54  ;;  %v2005_v4 = vmul.f32 %v1993_v41, %v1977_v3 }
 0x798   : > { %v2043_v1 = vmax.f32 %v2031_v53, 0.0  ;;  %v2042_v36 = vmax.f32 %v2030_v9, 0.0  ;;  %v2603_v27 = vpop.permute.xlu0 %2602 }
 0x799   : > { %v2021_v56 = vpop.permute.xlu1 %2020  ;;  %v2041_v51 = vmax.f32 %v2029_v61, 0.0 }
 0x79a   : > { %2079 = vrot.lane.b32.xlu1 %v2051_v62, %s8146_s17  ;;  %2077 = vrot.lane.b32.xlu0 %v2050_v46, %s8146_s17  ;;  %v2034_v59 = vadd.f32 %v2021_v56, %v2006_v11  ;;  %v2032_v26 = vadd.f32 %v2021_v56, %v2004_v12  ;;  %v2033_v37 = vadd.f32 %v2021_v56, %v2005_v4  ;;  %v2055_v5 = vsel %vm6073_vm1, %v2043_v1, 0.0 }
 0x79b   : > { %v2054_v10 = vsel %vm6081_vm3, %v2042_v36, 0.0  ;;  %v2053_v19 = vsel %vm6077_vm2, %v2041_v51, 0.0 }
 0x79c   : > { %v2046_v21 = vmax.f32 %v2034_v59, 0.0  ;;  %v2045_v35 = vmax.f32 %v2033_v37, 0.0  ;;  %v2044_v32 = vmax.f32 %v2032_v26, 0.0  ;;  %v6674_v29 = vpop.permute.xlu0 %2606 }
 0x79d   : > { %v6664_v8 = vpop.permute.xlu1 %2592 }
 0x79e   : > { %2087 = vrot.lane.b32.xlu0 %v2055_v5, %s8146_s17  ;;  %2085 = vrot.lane.b32.xlu1 %v2054_v10, %s8146_s17  ;;  %v2058_v22 = vsel %vm6073_vm1, %v2046_v21, 0.0  ;;  %v2057_v55 = vsel %vm6081_vm3, %v2045_v35, 0.0  ;;  %v2056_v23 = vsel %vm6077_vm2, %v2044_v32, 0.0 }
 0x7a0   : > { %v6676_v38 = vpop.permute.xlu0 %2610 }
 0x7a1   : > { %v2597_v15 = vpop.permute.xlu1 %2596 }
 0x7a2   : > { %2083 = vrot.lane.b32.xlu1 %v2053_v19, %s8146_s17  ;;  %2093 = vrot.lane.b32.xlu0 %v2058_v22, %s8146_s17  ;;  %v2617_v50 = vsel %vm8190_vm0, %v6666_v24, %v2597_v15  ;;  %vm8194_vm0 = vmmov %vm8193_vm10 }
 0x7a4   : > { %v6678_v41 = vpop.permute.xlu0 %2614 }
 0x7a5   : > { %v6670_v31 = vpop.permute.xlu1 %2600 }
 0x7a6   : > { %2091 = vrot.lane.b32.xlu1 %v2057_v55, %s8146_s17  ;;  %2089 = vrot.lane.b32.xlu0 %v2056_v23, %s8146_s17  ;;  %v5249_v23 = vld [vmem:[%s8101_s5 + $0x4] ss:$12 sps:$4 sm:$0xff]  }
 0x7a7   : > { %2479 = vmatprep.mubr.bf16.mxu1 %v5249_v23  ;;  %2393 = vmatprep.mubr.bf16.mxu0 %v5249_v23 }
 0x7a9   : > { %v6672_v42 = vpop.permute.xlu1 %2604 }
 0x7ad   : > { %v2609_v43 = vpop.permute.xlu1 %2608 }
 0x7b1   : > { %v6680_v28 = vpop.permute.xlu1 %2612 }
 0x804   : > { %v2076_v33 = vpop.permute.xlu0 %2075  ;;  %v2074_v63 = vpop.permute.xlu1 %2073 }
 0x805   : > { %v2096_v34 = vsel %vm1354_vm12, %v2074_v63, %v2076_v33 }
 0x806   : > { %2117 = vst.msk [vmem:[#allocation2 + $0x10] sm:$0xff] %vm1378_vm11, %v2096_v34 }
 0x808   : > { %v2082_v40 = vpop.permute.xlu0 %2081  ;;  %v2072_v49 = vpop.permute.xlu1 %2071 }
 0x809   : > { %2115 = vst.msk [vmem:[#allocation2] sm:$0xff] %vm1375_vm4, %v2072_v49  ;;  %v2095_v44 = vsel %vm1354_vm12, %v2072_v49, %v2074_v63 }
 0x80c   : > { %v2078_v39 = vpop.permute.xlu0 %2077  ;;  %v2080_v60 = vpop.permute.xlu1 %2079 }
 0x80d   : > { %v2129_v18 = vld [vmem:[#allocation2 + $0x10] sm:$0xff]  ;;  %2118 = vst.msk [vmem:[#allocation2 + $0x18] sm:$0xff] %vm1375_vm4, %v2078_v39  ;;  %v2097_v52 = vsel %vm1354_vm12, %v2078_v39, %v2080_v60  ;;  %v2098_v58 = vsel %vm1354_vm12, %v2080_v60, %v2082_v40 }
 0x80e   : > { %2564 = vst.msk [vmem:[#allocation2 + $0x10] sm:$0xff] %vm8191_vm14, %v5504_v0  ;;  %v6694_v45 = vpack.c.bf16 %v2097_v52, %v2095_v44  ;;  %vm8195_vm14 = vcmask 146432  }
 0x80f   : > { %2120 = vst.msk [vmem:[#allocation2 + $0x28] sm:$0xff] %vm1378_vm11, %v2098_v58  ;;  %v2619_v11 = vsel %vm8195_vm14, %v6670_v31, %v2603_v27 }
 0x810   : > { %2638 = vst.msk [vmem:[#allocation2 + $0x10] sm:$0xff] %vm8192_vm15, %v2617_v50  ;;  %v2127_v6 = vld [vmem:[#allocation2] sm:$0xff]  ;;  %v2088_v47 = vpop.permute.xlu0 %2087  ;;  %v2086_v7 = vpop.permute.xlu1 %2085  ;;  %2361 = vmatprep.subr.bf16.mxu0 %v6694_v45  ;;  %vm8196_vm15 = vcmask 572816  }
 0x811   : > { %2636 = vst.msk [vmem:[#allocation2] sm:$0xff] %vm8193_vm10, %v6664_v8  ;;  %v2100_v30 = vsel %vm1354_vm12, %v2086_v7, %v2088_v47  ;;  %vm8197_vm10 = vcmask 408576  }
 0x812   : > { %2123 = vst.msk [vmem:[#allocation2 + $0x40] sm:$0xff] %vm1378_vm11, %v2100_v30 }
 0x814   : > { %v2130_v13 = vld [vmem:[#allocation2 + $0x18] sm:$0xff]  ;;  %v2094_v54 = vpop.permute.xlu0 %2093  ;;  %v2084_v3 = vpop.permute.xlu1 %2083 }
 0x815   : > { %v2139_v9 = vpack.c.bf16 %v2130_v13, %v2127_v6  ;;  %2639 = vst.msk [vmem:[#allocation2 + $0x18] sm:$0xff] %vm8194_vm0, %v6668_v25  ;;  %v2099_v56 = vsel %vm1354_vm12, %v2084_v3, %v2086_v7  ;;  %vm8198_vm0 = vmmov %vm8195_vm14 }
 0x816   : > { %v2132_v53 = vld [vmem:[#allocation2 + $0x28] sm:$0xff]  ;;  %2121 = vst.msk [vmem:[#allocation2 + $0x30] sm:$0xff] %vm1375_vm4, %v2084_v3  ;;  %v2621_v12 = vsel %vm8198_vm0, %v6674_v29, %v2609_v43  ;;  %vm8199_vm14 = vmmov %vm8196_vm15 }
 0x817   : > { %2565 = vst.msk [vmem:[#allocation2 + $0x28] sm:$0xff] %vm8196_vm15, %v5504_v0  ;;  %2217 = vrot.lane.b32.xlu1 %v2139_v9, %s8137_s18  ;;  %2151 = vrot.lane.b32.xlu0 %v2139_v9, %s8144_s30  ;;  %vm8200_vm15 = vmmov %vm8197_vm10  ;;  %v6731_v51 = vpack.c.bf16 %v2132_v53, %v2129_v18 }
 0x818   : > { %2641 = vst.msk [vmem:[#allocation2 + $0x28] sm:$0xff] %vm8197_vm10, %v2619_v11  ;;  %v2090_v61 = vpop.permute.xlu0 %2089  ;;  %v2092_v62 = vpop.permute.xlu1 %2091  ;;  %2362 = vmatpush1.bf16.msra.mxu0 %v2139_v9  ;;  %vm8201_vm10 = vcmask 1047696   ;;  %v2648_v19 = vld [vmem:[#allocation2] sm:$0xff] }
 0x819   : > { %v2135_v46 = vld [vmem:[#allocation2 + $0x40] sm:$0xff]  ;;  %2124 = vst.msk [vmem:[#allocation2 + $0x48] sm:$0xff] %vm1375_vm4, %v2090_v61  ;;  %v2101_v1 = vsel %vm1354_vm12, %v2090_v61, %v2092_v62  ;;  %v2102_v36 = vsel %vm1354_vm12, %v2092_v62, %v2094_v54  ;;  %vm8203_vm0 = vmmov %vm8201_vm10 }
 0x81a   : > { %2566 = vst.msk [vmem:[#allocation2 + $0x40] sm:$0xff] %vm8199_vm14, %v5504_v0  ;;  %v6721_v59 = vpack.c.bf16 %v2101_v1, %v2099_v56  ;;  %vm8204_vm14 = vcmask 146432  }
 0x81b   : > { %2126 = vst.msk [vmem:[#allocation2 + $0x58] sm:$0xff] %vm1378_vm11, %v2102_v36  ;;  %2261 = vrot.lane.b32.xlu1 %v2139_v9, %s8178_s12  ;;  %2173 = vrot.lane.b32.xlu0 %v2139_v9, %s8142_s29  ;;  %v2623_v10 = vsel %vm8204_vm14, %v6680_v28, %v6678_v41 }
 0x81c   : > { %2644 = vst.msk [vmem:[#allocation2 + $0x40] sm:$0xff] %vm8200_vm15, %v2621_v12  ;;  %2363 = vmatprep.subr.bf16.mxu0 %v6721_v59  ;;  %vm8205_vm15 = vcmask 572816   ;;  %v2651_v21 = vld [vmem:[#allocation2 + $0x18] sm:$0xff] }
 0x81d   : > { %v2133_v4 = vld [vmem:[#allocation2 + $0x30] sm:$0xff]  ;;  %v6775_v22 = vpack.c.bf16 %v2651_v21, %v2648_v19 }
 0x81e   : > { %2642 = vst.msk [vmem:[#allocation2 + $0x30] sm:$0xff] %vm8201_vm10, %v6672_v42  ;;  %vm8206_vm10 = vcmask 408576  }
 0x81f   : > { %2283 = vrot.lane.b32.xlu1 %v2139_v9, %s8179_s13  ;;  %2195 = vrot.lane.b32.xlu0 %v2139_v9, %s8202_s23  ;;  %v2653_v27 = vld [vmem:[#allocation2 + $0x28] sm:$0xff] }
 0x820   : > { %v2136_v26 = vld [vmem:[#allocation2 + $0x48] sm:$0xff] }
 0x821   : > { %v2142_v37 = vpack.c.bf16 %v2136_v26, %v2133_v4  ;;  %2645 = vst.msk [vmem:[#allocation2 + $0x48] sm:$0xff] %vm8203_vm0, %v6676_v38  ;;  %vm8208_vm0 = vmmov %vm8204_vm14 }
 0x822   : > { %v2138_v5 = vld [vmem:[#allocation2 + $0x58] sm:$0xff]  ;;  %v2616_v32 = vsel %vm8208_vm0, %v6664_v8, %v6666_v24  ;;  %vm8209_vm14 = vmmov %vm8208_vm0  ;;  %v2650_v8 = vld [vmem:[#allocation2 + $0x10] sm:$0xff] }
 0x823   : > { %2567 = vst.msk [vmem:[#allocation2 + $0x58] sm:$0xff] %vm8205_vm15, %v5504_v0  ;;  %2239 = vrot.lane.b32.xlu0 %v2139_v9, %s8207_s22  ;;  %2221 = vrot.lane.b32.xlu1 %v6731_v51, %s8137_s18  ;;  %v6788_v35 = vpack.c.bf16 %v2138_v5, %v2135_v46  ;;  %v2618_v55 = vsel %vm8209_vm14, %v6668_v25, %v6670_v31  ;;  %vm8210_vm15 = vmmov %vm8208_vm0  ;;  %vm8212_vm14 = vcmask 752640  }
 0x824   : > { %2647 = vst.msk [vmem:[#allocation2 + $0x58] sm:$0xff] %vm8206_vm10, %v2623_v10  ;;  %2364 = vmatpush1.bf16.msra.mxu0 %v2142_v37  ;;  %v6828_v15 = vpack.c.bf16 %v2618_v55, %v2616_v32  ;;  %v6834_v24 = vpack.c.bf16 %v2653_v27, %v2650_v8  ;;  %v2620_v40 = vsel %vm8210_vm15, %v6672_v42, %v6674_v29  ;;  %vm8211_vm10 = vmmov %vm8208_vm0  ;;  %v2656_v42 = vld [vmem:[#allocation2 + $0x40] sm:$0xff]  ;;  %vm8141_vm0 = vmmov 0  }
 0x825   : > { %v2654_v31 = vld [vmem:[#allocation2 + $0x30] sm:$0xff]  ;;  %v2622_v49 = vsel %vm8211_vm10, %v6676_v38, %v6680_v28  ;;  %v7018_v8 = vld [vmem:[%s8100_s4] sm:$0xff]  ;;  %vm8213_vm15 = vmmov %vm8212_vm14 }
 0x826   : > { %v6878_v18 = vpack.c.bf16 %v2622_v49, %v2620_v40  ;;  %v7032_v40 = vld [vmem:[%s8100_s4 + $0x10] sm:$0xff]  ;;  %vm8214_vm10 = vmmov %vm8212_vm14 }
 0x827   : > { %2305 = vrot.lane.b32.xlu0 %v2139_v9, %s8180_s27  ;;  %2243 = vrot.lane.b32.xlu1 %v6731_v51, %s8207_s22 }
 0x828   : > { %v2657_v25 = vld [vmem:[#allocation2 + $0x48] sm:$0xff] }
 0x829   : > { %v6854_v33 = vpack.c.bf16 %v2657_v25, %v2654_v31  ;;  %v7023_v25 = vld [vmem:[%s8100_s4 + $0x8] sm:$0xff] }
 0x82b   : > { %2155 = vrot.lane.b32.xlu1 %v6731_v51, %s8144_s30  ;;  %2153 = vrot.lane.b32.xlu0 %v6694_v45, %s8144_s30  ;;  %v2659_v44 = vld [vmem:[#allocation2 + $0x58] sm:$0xff] }
 0x82c   : > { %v6888_v28 = vpack.c.bf16 %v2659_v44, %v2656_v42 }
 0x82f   : > { %2265 = vrot.lane.b32.xlu1 %v6731_v51, %s8178_s12  ;;  %2175 = vrot.lane.b32.xlu0 %v6694_v45, %s8142_s29 }
 0x833   : > { %2177 = vrot.lane.b32.xlu1 %v6731_v51, %s8142_s29  ;;  %2197 = vrot.lane.b32.xlu0 %v6694_v45, %s8202_s23 }
 0x837   : > { %2287 = vrot.lane.b32.xlu1 %v6731_v51, %s8179_s13  ;;  %2309 = vrot.lane.b32.xlu0 %v6731_v51, %s8180_s27 }
 0x83b   : > { %2199 = vrot.lane.b32.xlu1 %v6731_v51, %s8202_s23  ;;  %2263 = vrot.lane.b32.xlu0 %v6694_v45, %s8178_s12 }
 0x83f   : > { %2219 = vrot.lane.b32.xlu1 %v6694_v45, %s8137_s18  ;;  %2285 = vrot.lane.b32.xlu0 %v6694_v45, %s8179_s13 }
 0x843   : > { %2241 = vrot.lane.b32.xlu1 %v6694_v45, %s8207_s22  ;;  %2307 = vrot.lane.b32.xlu0 %v6694_v45, %s8180_s27 }
 0x847   : > { %2672 = vrot.lane.b32.xlu1 %v6775_v22, %s8144_s30  ;;  %2157 = vrot.lane.b32.xlu0 %v2142_v37, %s8144_s30 }
 0x84b   : > { %2694 = vrot.lane.b32.xlu1 %v6775_v22, %s8142_s29  ;;  %2179 = vrot.lane.b32.xlu0 %v2142_v37, %s8142_s29 }
 0x84f   : > { %2716 = vrot.lane.b32.xlu1 %v6775_v22, %s8202_s23  ;;  %2201 = vrot.lane.b32.xlu0 %v2142_v37, %s8202_s23 }
 0x853   : > { %2311 = vrot.lane.b32.xlu1 %v2142_v37, %s8180_s27  ;;  %2223 = vrot.lane.b32.xlu0 %v2142_v37, %s8137_s18 }
 0x857   : > { %2245 = vrot.lane.b32.xlu0 %v2142_v37, %s8207_s22  ;;  %2249 = vrot.lane.b32.xlu1 %v6788_v35, %s8207_s22 }
 0x85b   : > { %2267 = vrot.lane.b32.xlu0 %v2142_v37, %s8178_s12  ;;  %2161 = vrot.lane.b32.xlu1 %v6788_v35, %s8144_s30 }
 0x85f   : > { %2289 = vrot.lane.b32.xlu0 %v2142_v37, %s8179_s13  ;;  %2271 = vrot.lane.b32.xlu1 %v6788_v35, %s8178_s12 }
 0x863   : > { %2738 = vrot.lane.b32.xlu0 %v6775_v22, %s8137_s18  ;;  %2183 = vrot.lane.b32.xlu1 %v6788_v35, %s8142_s29 }
 0x867   : > { %2293 = vrot.lane.b32.xlu1 %v6788_v35, %s8179_s13  ;;  %2227 = vrot.lane.b32.xlu0 %v6788_v35, %s8137_s18 }
 0x86b   : > { %2205 = vrot.lane.b32.xlu1 %v6788_v35, %s8202_s23  ;;  %2159 = vrot.lane.b32.xlu0 %v6721_v59, %s8144_s30 }
 0x86f   : > { %2315 = vrot.lane.b32.xlu1 %v6788_v35, %s8180_s27  ;;  %2181 = vrot.lane.b32.xlu0 %v6721_v59, %s8142_s29 }
 0x873   : > { %2247 = vrot.lane.b32.xlu1 %v6721_v59, %s8207_s22  ;;  %2203 = vrot.lane.b32.xlu0 %v6721_v59, %s8202_s23 }
 0x877   : > { %2674 = vrot.lane.b32.xlu1 %v6828_v15, %s8144_s30  ;;  %2225 = vrot.lane.b32.xlu0 %v6721_v59, %s8137_s18 }
 0x87b   : > { %2269 = vrot.lane.b32.xlu1 %v6721_v59, %s8178_s12  ;;  %2676 = vrot.lane.b32.xlu0 %v6834_v24, %s8144_s30 }
 0x87f   : > { %2696 = vrot.lane.b32.xlu1 %v6828_v15, %s8142_s29  ;;  %2698 = vrot.lane.b32.xlu0 %v6834_v24, %s8142_s29 }
 0x883   : > { %2291 = vrot.lane.b32.xlu1 %v6721_v59, %s8179_s13  ;;  %2720 = vrot.lane.b32.xlu0 %v6834_v24, %s8202_s23 }
 0x887   : > { %2718 = vrot.lane.b32.xlu1 %v6828_v15, %s8202_s23  ;;  %2742 = vrot.lane.b32.xlu0 %v6834_v24, %s8137_s18 }
 0x889   : > { %v2152_v43 = vpop.permute.xlu0 %2151  ;;  %v6852_v41 = vpop.permute.xlu1 %2217 }
 0x88b   : > { %2740 = vrot.lane.b32.xlu1 %v6828_v15, %s8137_s18  ;;  %2678 = vrot.lane.b32.xlu0 %v6854_v33, %s8144_s30 }
 0x88d   : > { %v6860_v63 = vpop.permute.xlu0 %2173  ;;  %v6862_v34 = vpop.permute.xlu1 %2261 }
 0x88f   : > { %2313 = vrot.lane.b32.xlu1 %v6721_v59, %s8180_s27  ;;  %2700 = vrot.lane.b32.xlu0 %v6854_v33, %s8142_s29 }
 0x891   : > { %v6874_v39 = vpop.permute.xlu0 %2195  ;;  %v6876_v60 = vpop.permute.xlu1 %2283 }
 0x893   : > { %2722 = vrot.lane.b32.xlu1 %v6854_v33, %s8202_s23  ;;  %2680 = vrot.lane.b32.xlu0 %v6878_v18, %s8144_s30 }
 0x895   : > { %v6884_v29 = vpop.permute.xlu0 %2239  ;;  %v6886_v38 = vpop.permute.xlu1 %2221 }
 0x896   : > { %4859 = vmatprep.subr.bf16.mxu1 %v6886_v38 }
 0x897   : > { %2682 = vrot.lane.b32.xlu1 %v6888_v28, %s8144_s30  ;;  %2744 = vrot.lane.b32.xlu0 %v6854_v33, %s8137_s18 }
 0x898   : > { %4860 = vmatpush3.bf16.msra.mxu1 %v6731_v51 }
 0x899   : > { %v6896_v52 = vpop.permute.xlu0 %2305  ;;  %v6898_v58 = vpop.permute.xlu1 %2243 }
 0x89b   : > { %2762 = vrot.lane.b32.xlu1 %v6828_v15, %s8207_s22  ;;  %2702 = vrot.lane.b32.xlu0 %v6878_v18, %s8142_s29 }
 0x89d   : > { %v2154_v50 = vpop.permute.xlu0 %2153  ;;  %v6904_v45 = vpop.permute.xlu1 %2155 }
 0x89e   : > { %v2164_v6 = vsel %vm671_vm5, %v2154_v50, %v6904_v45  ;;  %v2163_v47 = vsel %vm671_vm5, %v2152_v43, %v2154_v50 }
 0x89f   : > { %2704 = vrot.lane.b32.xlu1 %v6888_v28, %s8142_s29  ;;  %2724 = vrot.lane.b32.xlu0 %v6878_v18, %s8202_s23 }
 0x8a0   : > { %2365 = vmatprep.subr.bf16.mxu0 %v2164_v6  ;;  %v7043_v6 = vld [vmem:[%s8100_s4 + $0x18] sm:$0xff] }
 0x8a1   : > { %2366 = vmatpush1.bf16.msra.mxu0 %v2163_v47  ;;  %v6913_v7 = vpop.permute.xlu0 %2175  ;;  %v6915_v30 = vpop.permute.xlu1 %2265 }
 0x8a3   : > { %2760 = vrot.lane.b32.xlu1 %v6775_v22, %s8207_s22  ;;  %2746 = vrot.lane.b32.xlu0 %v6878_v18, %s8137_s18 }
 0x8a5   : > { %v6921_v13 = vpop.permute.xlu0 %2197  ;;  %v6923_v54 = vpop.permute.xlu1 %2177 }
 0x8a7   : > { %2726 = vrot.lane.b32.xlu1 %v6888_v28, %s8202_s23  ;;  %2764 = vrot.lane.b32.xlu0 %v6834_v24, %s8207_s22 }
 0x8a9   : > { %v6929_v3 = vpop.permute.xlu0 %2309  ;;  %v6931_v9 = vpop.permute.xlu1 %2287 }
 0x8ab   : > { %2784 = vrot.lane.b32.xlu1 %v6828_v15, %s8178_s12  ;;  %2768 = vrot.lane.b32.xlu0 %v6878_v18, %s8207_s22 }
 0x8ad   : > { %v6937_v53 = vpop.permute.xlu0 %2263  ;;  %v6939_v11 = vpop.permute.xlu1 %2199 }
 0x8af   : > { %2748 = vrot.lane.b32.xlu1 %v6888_v28, %s8137_s18  ;;  %2766 = vrot.lane.b32.xlu0 %v6854_v33, %s8207_s22 }
 0x8b1   : > { %v6945_v61 = vpop.permute.xlu0 %2285  ;;  %v6947_v62 = vpop.permute.xlu1 %2219 }
 0x8b3   : > { %2782 = vrot.lane.b32.xlu1 %v6775_v22, %s8178_s12  ;;  %2786 = vrot.lane.b32.xlu0 %v6834_v24, %s8178_s12 }
 0x8b5   : > { %v6953_v46 = vpop.permute.xlu0 %2307  ;;  %v6955_v56 = vpop.permute.xlu1 %2241 }
 0x8b7   : > { %2770 = vrot.lane.b32.xlu1 %v6888_v28, %s8207_s22  ;;  %2790 = vrot.lane.b32.xlu0 %v6878_v18, %s8178_s12 }
 0x8b9   : > { %v2158_v1 = vpop.permute.xlu0 %2157  ;;  %v6961_v36 = vpop.permute.xlu1 %2672 }
 0x8bb   : > { %2806 = vrot.lane.b32.xlu1 %v6828_v15, %s8179_s13  ;;  %2788 = vrot.lane.b32.xlu0 %v6854_v33, %s8178_s12 }
 0x8bd   : > { %v6967_v12 = vpop.permute.xlu0 %2179  ;;  %v6969_v59 = vpop.permute.xlu1 %2694 }
 0x8bf   : > { %2792 = vrot.lane.b32.xlu1 %v6888_v28, %s8178_s12  ;;  %2808 = vrot.lane.b32.xlu0 %v6834_v24, %s8179_s13 }
 0x8c1   : > { %v6975_v4 = vpop.permute.xlu0 %2201  ;;  %v6977_v26 = vpop.permute.xlu1 %2716 }
 0x8c3   : > { %2804 = vrot.lane.b32.xlu1 %v6775_v22, %s8179_s13  ;;  %2812 = vrot.lane.b32.xlu0 %v6878_v18, %s8179_s13 }
 0x8c5   : > { %v6983_v51 = vpop.permute.xlu0 %2223  ;;  %v6985_v37 = vpop.permute.xlu1 %2311 }
 0x8c7   : > { %2814 = vrot.lane.b32.xlu1 %v6888_v28, %s8179_s13  ;;  %2810 = vrot.lane.b32.xlu0 %v6854_v33, %s8179_s13 }
 0x8c9   : > { %v6991_v5 = vpop.permute.xlu0 %2245  ;;  %v6993_v10 = vpop.permute.xlu1 %2249 }
 0x8cb   : > { %2828 = vrot.lane.b32.xlu1 %v6828_v15, %s8180_s27  ;;  %2830 = vrot.lane.b32.xlu0 %v6834_v24, %s8180_s27 }
 0x8cd   : > { %v6999_v21 = vpop.permute.xlu0 %2267  ;;  %v2162_v19 = vpop.permute.xlu1 %2161 }
 0x8cf   : > { %2826 = vrot.lane.b32.xlu1 %v6775_v22, %s8180_s27  ;;  %2834 = vrot.lane.b32.xlu0 %v6878_v18, %s8180_s27 }
 0x8d1   : > { %v7005_v32 = vpop.permute.xlu0 %2289  ;;  %v7007_v55 = vpop.permute.xlu1 %2271 }
 0x8d3   : > { %2836 = vrot.lane.b32.xlu1 %v6888_v28, %s8180_s27  ;;  %2832 = vrot.lane.b32.xlu0 %v6854_v33, %s8180_s27 }
 0x8d5   : > { %v7013_v23 = vpop.permute.xlu0 %2738  ;;  %v2184_v27 = vpop.permute.xlu1 %2183 }
 0x8d7   : > { %2862 = vperm.xlu1 %5215, %v7018_v8   ;;  %2867 = vperm.xlu0 %5216, %v7023_v25  }
 0x8d9   : > { %v2228_v31 = vpop.permute.xlu0 %2227  ;;  %v7027_v43 = vpop.permute.xlu1 %2293 }
 0x8da   : > { %4861 = vmatprep.subr.bf16.mxu1 %v2228_v31 }
 0x8db   : > { %4862 = vmatpush3.bf16.msra.mxu1 %v6788_v35  ;;  %2872 = vperm.xlu1 %5215, %v7032_v40   ;;  %v2186_v35 = vsel %vm694_vm6, %v6913_v7, %v6923_v54 }
 0x8dc   : > { %4863 = vmatprep.subr.bf16.mxu1 %v6898_v58  ;;  %5218 = vset.pattern.permute.xlu0 %v5515_v2 }
 0x8dd   : > { %v2160_v49 = vpop.permute.xlu0 %2159  ;;  %v2206_v44 = vpop.permute.xlu1 %2205 }
 0x8de   : > { %v2166_v42 = vsel %vm671_vm5, %v2160_v49, %v2162_v19  ;;  %v2165_v50 = vsel %vm671_vm5, %v2158_v1, %v2160_v49  ;;  %v2185_v1 = vsel %vm694_vm6, %v6860_v63, %v6913_v7  ;;  %v2208_v63 = vsel %vm717_vm7, %v6921_v13, %v6939_v11 }
 0x8df   : > { %2367 = vmatprep.subr.bf16.mxu0 %v2166_v42  ;;  %4864 = vmatpush3.bf16.msra.mxu1 %v6904_v45 }
 0x8e0   : > { %2368 = vmatpush1.bf16.msra.mxu0 %v2165_v50  ;;  %4865 = vmatprep.subr.bf16.mxu1 %v6993_v10 }
 0x8e1   : > { %v2182_v47 = vpop.permute.xlu0 %2181  ;;  %2369 = vmatprep.subr.bf16.mxu0 %v2186_v35  ;;  %v7050_v17 = vpop.permute.xlu1 %2315  ;;  %2877 = vperm.xlu1 %5215, %v7043_v6   ;;  %v2207_v35 = vsel %vm717_vm7, %v6874_v39, %v6921_v13  ;;  %v2230_v39 = vsel %vm740_vm8, %v6947_v62, %v6886_v38 }
 0x8e2   : > { %v2188_v45 = vsel %vm694_vm6, %v2182_v47, %v2184_v27  ;;  %v2187_v50 = vsel %vm694_vm6, %v6967_v12, %v2182_v47 }
 0x8e3   : > { %4866 = vmatpush3.bf16.msra.mxu1 %v2162_v19 }
 0x8e4   : > { %2370 = vmatpush1.bf16.msra.mxu0 %v2185_v1  ;;  %4867 = vmatprep.subr.bf16.mxu1 %v6915_v30 }
 0x8e5   : > { %v2204_v49 = vpop.permute.xlu0 %2203  ;;  %2371 = vmatprep.subr.bf16.mxu0 %v2188_v45  ;;  %v2248_v42 = vpop.permute.xlu1 %2247  ;;  %5217 = vset.pattern.permute.xlu1 %v5515_v2  ;;  %v7089_v45 = vld [vmem:[%s8101_s5] ss:$12 sps:$4 sm:$0xff]  }
 0x8e6   : > { %v2209_v1 = vsel %vm717_vm7, %v6975_v4, %v2204_v49 }
 0x8e7   : > { %4868 = vmatpush3.bf16.msra.mxu1 %v6923_v54  ;;  %v2210_v54 = vsel %vm717_vm7, %v2204_v49, %v2206_v44 }
 0x8e8   : > { %2372 = vmatpush1.bf16.msra.mxu0 %v2187_v50  ;;  %4869 = vmatprep.subr.bf16.mxu1 %v7007_v55  ;;  %v2251_v50 = vsel %vm8148_vm9, %v6884_v29, %v6955_v56  ;;  %v2253_v29 = vsel %vm8148_vm9, %v6991_v5, %v2248_v42 }
 0x8e9   : > { %v2226_v7 = vpop.permute.xlu0 %2225  ;;  %2373 = vmatprep.subr.bf16.mxu0 %v2208_v63  ;;  %v7066_v19 = vpop.permute.xlu1 %2674  ;;  %v7121_v63 = vld [vmem:[#allocation8 + $0x4] ss:$12 sps:$4 sm:$0xff]  }
 0x8ea   : > { %v2232_v4 = vsel %vm740_vm8, %v2226_v7, %v2228_v31 }
 0x8eb   : > { %4870 = vmatpush3.bf16.msra.mxu1 %v2184_v27 }
 0x8ec   : > { %2374 = vmatpush1.bf16.msra.mxu0 %v2207_v35  ;;  %4871 = vmatprep.subr.bf16.mxu1 %v6931_v9 }
 0x8ed   : > { %v7073_v12 = vpop.permute.xlu0 %2676  ;;  %2375 = vmatprep.subr.bf16.mxu0 %v2210_v54  ;;  %v2270_v47 = vpop.permute.xlu1 %2269 }
 0x8ee   : > { %v2685_v5 = vsel %vm671_vm5, %v7066_v19, %v7073_v12 }
 0x8ef   : > { %4872 = vmatpush3.bf16.msra.mxu1 %v6939_v11  ;;  %v2229_v11 = vsel %vm740_vm8, %v6852_v41, %v6947_v62  ;;  %v2252_v41 = vsel %vm8148_vm9, %v6955_v56, %v6898_v58  ;;  %v2254_v58 = vsel %vm8148_vm9, %v2248_v42, %v6993_v10 }
 0x8f0   : > { %2376 = vmatpush1.bf16.msra.mxu0 %v2209_v1  ;;  %4873 = vmatprep.subr.bf16.mxu1 %v7027_v43 }
 0x8f1   : > { %v7082_v13 = vpop.permute.xlu0 %2698  ;;  %2377 = vmatprep.subr.bf16.mxu0 %v2230_v39  ;;  %v7084_v27 = vpop.permute.xlu1 %2696 }
 0x8f3   : > { %4874 = vmatpush3.bf16.msra.mxu1 %v2206_v44  ;;  %v2231_v44 = vsel %vm740_vm8, %v6983_v51, %v2226_v7  ;;  %v7115_v51 = vld [vmem:[%s8101_s5 + $0x8] ss:$12 sps:$4 sm:$0xff]  }
 0x8f4   : > { %2378 = vmatpush1.bf16.msra.mxu0 %v2229_v11  ;;  %4989 = vmatprep.subr.bf16.mxu1 %v5504_v0 }
 0x8f5   : > { %v7096_v38 = vpop.permute.xlu0 %2720  ;;  %2379 = vmatprep.subr.bf16.mxu0 %v2232_v4  ;;  %v2292_v49 = vpop.permute.xlu1 %2291 }
 0x8f6   : > { %2480 = vmatmul.mubr.bf16.vlgmr.msra.gmra.mrb[20].mxu1 %v7089_v45 }
 0x8f7   : > { %4990 = vmatpush3.bf16.msra.mxu1 %v6929_v3  ;;  %4993 = vmatprep.mubr.msk.bf16.mxu1 %vm8141_vm0, %v5504_v0 }
 0x8f8   : > { %2380 = vmatpush1.bf16.msra.mxu0 %v2231_v44  ;;  %4991 = vmatprep.subr.bf16.mxu1 %v5504_v0 }
 0x8f9   : > { %v7108_v62 = vpop.permute.xlu0 %2742  ;;  %2381 = vmatprep.subr.bf16.mxu0 %v2252_v41  ;;  %v7110_v31 = vpop.permute.xlu1 %2718 }
 0x8fb   : > { %4992 = vmatpush3.bf16.msra.mxu1 %v7050_v17 }
 0x8fc   : > { %2382 = vmatpush1.bf16.msra.mxu0 %v2251_v50  ;;  %2916 = vmatprep.subr.bf16.mxu1 %v6828_v15  ;;  %v2274_v15 = vsel %vm8212_vm14, %v6937_v53, %v6915_v30  ;;  %vm8215_vm14 = vmmov %vm8214_vm10 }
 0x8fd   : > { %v2679_v7 = vpop.permute.xlu0 %2678  ;;  %2383 = vmatprep.subr.bf16.mxu0 %v2254_v58  ;;  %v7126_v35 = vpop.permute.xlu1 %2740 }
 0x8fe   : > { %4994 = vmatmul.mubr.msk.bf16.vlgmr.msra.gmra.mrb[24].mxu1 %vm905_vm13, %v7115_v51 }
 0x8ff   : > { %2917 = vmatpush1.bf16.msra.mxu1 %v6775_v22  ;;  %2948 = vmatprep.mubr.bf16.mxu1 %v7121_v63  ;;  %v2273_v22 = vsel %vm8213_vm15, %v6862_v34, %v6937_v53  ;;  %v2275_v34 = vsel %vm8215_vm14, %v6999_v21, %v2270_v47  ;;  %vm8216_vm15 = vcmask 744448  }
 0x900   : > { %2384 = vmatpush1.bf16.msra.mxu0 %v2253_v29  ;;  %2918 = vmatprep.subr.bf16.mxu1 %v6878_v18  ;;  %v2276_v18 = vsel %vm8214_vm10, %v2270_v47, %v7007_v55  ;;  %v2296_v53 = vsel %vm8216_vm15, %v6945_v61, %v6931_v9  ;;  %vm8217_vm10 = vmmov %vm8216_vm15 }
 0x901   : > { %v2701_v56 = vpop.permute.xlu0 %2700  ;;  %2385 = vmatprep.subr.bf16.mxu0 %v2274_v15  ;;  %v2314_v10 = vpop.permute.xlu1 %2313  ;;  %vm8218_vm14 = vmmov %vm8217_vm10 }
 0x902   : > { %v2298_v9 = vsel %vm8218_vm14, %v2292_v49, %v7027_v43  ;;  %vm8219_vm15 = vmmov %vm8217_vm10 }
 0x903   : > { %2919 = vmatpush1.bf16.msra.mxu1 %v6854_v33  ;;  %v2684_v33 = vsel %vm671_vm5, %v6961_v36, %v7066_v19  ;;  %v2295_v36 = vsel %vm8217_vm10, %v6876_v60, %v6945_v61  ;;  %v2707_v19 = vsel %vm694_vm6, %v7084_v27, %v7082_v13  ;;  %v2297_v11 = vsel %vm8219_vm15, %v7005_v32, %v2292_v49 }
 0x904   : > { %2386 = vmatpush1.bf16.msra.mxu0 %v2273_v22  ;;  %2920 = vmatprep.subr.bf16.mxu1 %v2685_v5  ;;  %v2706_v60 = vsel %vm694_vm6, %v6969_v59, %v7084_v27  ;;  %vm8220_vm10 = vcmask 736256   ;;  %v2729_v27 = vsel %vm717_vm7, %v7110_v31, %v7096_v38 }
 0x905   : > { %v2681_v42 = vpop.permute.xlu0 %2680  ;;  %2387 = vmatprep.subr.bf16.mxu0 %v2276_v18  ;;  %v2723_v30 = vpop.permute.xlu1 %2722  ;;  %v2318_v61 = vsel %vm8220_vm10, %v6953_v46, %v6929_v3  ;;  %vm8221_vm14 = vmmov %vm8220_vm10 }
 0x906   : > { %v2686_v21 = vsel %vm671_vm5, %v2679_v7, %v2681_v42  ;;  %v2317_v59 = vsel %vm8221_vm14, %v6896_v52, %v6953_v46  ;;  %vm8222_vm15 = vmmov %vm8220_vm10  ;;  %v2319_v52 = vsel %vm8220_vm10, %v6985_v37, %v2314_v10  ;;  %v2728_v46 = vsel %vm717_vm7, %v6977_v26, %v7110_v31 }
 0x907   : > { %2921 = vmatpush1.bf16.msra.mxu1 %v2684_v33  ;;  %v2320_v3 = vsel %vm8222_vm15, %v2314_v10, %v7050_v17  ;;  %v2751_v37 = vsel %vm740_vm8, %v7126_v35, %v7108_v62  ;;  %v2750_v31 = vsel %vm740_vm8, %v7013_v23, %v7126_v35  ;;  %vm8223_vm14 = vcmask 752640  }
 0x908   : > { %2388 = vmatpush1.bf16.msra.mxu0 %v2275_v34  ;;  %vm8224_vm15 = vmmov %vm8223_vm14 }
 0x909   : > { %v7155_v54 = vpop.permute.xlu0 %2744  ;;  %2389 = vmatprep.subr.bf16.mxu0 %v2296_v53  ;;  %v7157_v55 = vpop.permute.xlu1 %2682  ;;  %vm8225_vm10 = vmmov %vm8223_vm14 }
 0x90a   : > { %v2687_v1 = vsel %vm671_vm5, %v2681_v42, %v7157_v55  ;;  %vm8226_vm0 = vmmov %vm8225_vm10 }
 0x90b   : > { %2922 = vmatprep.subr.bf16.mxu1 %v2687_v1 }
 0x90c   : > { %2390 = vmatpush1.bf16.msra.mxu0 %v2295_v36  ;;  %2923 = vmatpush1.bf16.msra.mxu1 %v2686_v21 }
 0x90d   : > { %v2703_v47 = vpop.permute.xlu0 %2702  ;;  %2391 = vmatprep.subr.bf16.mxu0 %v2298_v9  ;;  %2924 = vmatprep.subr.bf16.mxu1 %v2707_v19  ;;  %v2763_v39 = vpop.permute.xlu1 %2762 }
 0x90e   : > { %v2708_v32 = vsel %vm694_vm6, %v2701_v56, %v2703_v47 }
 0x910   : > { %2392 = vmatpush1.bf16.msra.mxu0 %v2297_v11  ;;  %2925 = vmatpush1.bf16.msra.mxu1 %v2706_v60  ;;  %v5254_v60 = vld [vmem:[#allocation8 + $0x1c] ss:$12 sps:$4 sm:$0xff]  }
 0x911   : > { %v2725_v43 = vpop.permute.xlu0 %2724  ;;  %2404 = vmatprep.subr.bf16.mxu0 %v2318_v61  ;;  %v7178_v4 = vpop.permute.xlu1 %2704 }
 0x912   : > { %v2709_v44 = vsel %vm694_vm6, %v2703_v47, %v7178_v4  ;;  %v2730_v58 = vsel %vm717_vm7, %v2723_v30, %v2725_v43  ;;  %v5251_v47 = vld [vmem:[#allocation8] ss:$12 sps:$4 sm:$0xff]  }
 0x913   : > { %2394 = vmatmul.mubr.bf16.vlgmr.msra.gmra.mrb[20].mxu0 %v7089_v45  ;;  %2926 = vmatprep.subr.bf16.mxu1 %v2709_v44  ;;  %v5256_v44 = vld [vmem:[#allocation8 + $0x18] ss:$12 sps:$4 sm:$0xff]  }
 0x914   : > { %2405 = vmatpush1.bf16.msra.mxu0 %v2317_v59  ;;  %2927 = vmatpush1.bf16.msra.mxu1 %v2708_v32 }
 0x915   : > { %v2747_v49 = vpop.permute.xlu0 %2746  ;;  %2406 = vmatprep.subr.bf16.mxu0 %v2320_v3  ;;  %2928 = vmatprep.subr.bf16.mxu1 %v2729_v27  ;;  %v2761_v45 = vpop.permute.xlu1 %2760  ;;  %v5257_v3 = vld [vmem:[#allocation8 + $0x8] ss:$12 sps:$4 sm:$0xff]  }
 0x916   : > { %2436 = vmatprep.mubr.bf16.mxu0 %v5514_v48  ;;  %v2752_v56 = vsel %vm740_vm8, %v7155_v54, %v2747_v49  ;;  %v2772_v35 = vsel %vm8148_vm9, %v2761_v45, %v2763_v39  ;;  %v5258_v45 = vld [vmem:[#allocation8 + $0x20] ss:$12 sps:$4 sm:$0xff]  }
 0x918   : > { %2407 = vmatpush1.bf16.msra.mxu0 %v2319_v52  ;;  %2929 = vmatpush1.bf16.msra.mxu1 %v2728_v46 }
 0x919   : > { %v2765_v17 = vpop.permute.xlu0 %2764  ;;  %4884 = vmatprep.subr.bf16.mxu0 %v7108_v62  ;;  %v7199_v41 = vpop.permute.xlu1 %2726 }
 0x91a   : > { %v2731_v50 = vsel %vm717_vm7, %v2725_v43, %v7199_v41 }
 0x91b   : > { %2930 = vmatprep.subr.bf16.mxu1 %v2731_v50 }
 0x91c   : > { %2931 = vmatpush1.bf16.msra.mxu1 %v2730_v58 }
 0x91d   : > { %v2769_v7 = vpop.permute.xlu0 %2768  ;;  %2932 = vmatprep.subr.bf16.mxu1 %v2751_v37  ;;  %v2785_v26 = vpop.permute.xlu1 %2784 }
 0x91f   : > { %4759 = vmatmul.mubr.msk.bf16.vlgmr.msra.gmra.mrb[20].mxu0 %vm905_vm13, %v7115_v51  ;;  %v2773_v51 = vsel %vm8148_vm9, %v2763_v39, %v2765_v17 }
 0x920   : > { %4885 = vmatpush3.bf16.msra.mxu0 %v6834_v24  ;;  %2933 = vmatpush1.bf16.msra.mxu1 %v2750_v31 }
 0x921   : > { %v2767_v29 = vpop.permute.xlu0 %2766  ;;  %v2749_v15 = vpop.permute.xlu1 %2748  ;;  %3054 = vmatprep.mubr.bf16.mxu0 %v7121_v63 }
 0x922   : > { %4886 = vmatprep.subr.bf16.mxu0 %v2749_v15  ;;  %v2753_v62 = vsel %vm740_vm8, %v2747_v49, %v2749_v15  ;;  %v2774_v5 = vsel %vm8148_vm9, %v2767_v29, %v2769_v7 }
 0x923   : > { %2934 = vmatprep.subr.bf16.mxu1 %v2753_v62 }
 0x924   : > { %4887 = vmatpush3.bf16.msra.mxu0 %v6888_v28  ;;  %2935 = vmatpush1.bf16.msra.mxu1 %v2752_v56 }
 0x925   : > { %4888 = vmatprep.subr.bf16.mxu0 %v2765_v17  ;;  %v2787_v23 = vpop.permute.xlu0 %2786  ;;  %2936 = vmatprep.subr.bf16.mxu1 %v2773_v51  ;;  %v2783_v24 = vpop.permute.xlu1 %2782 }
 0x926   : > { %v2795_v28 = vsel %vm8223_vm14, %v2785_v26, %v2787_v23  ;;  %vm8227_vm14 = vcmask 744448  }
 0x928   : > { %4889 = vmatpush3.bf16.msra.mxu0 %v7073_v12  ;;  %2937 = vmatpush1.bf16.msra.mxu1 %v2772_v35  ;;  %v2794_v12 = vsel %vm8224_vm15, %v2783_v24, %v2785_v26  ;;  %vm8228_vm15 = vmmov %vm8227_vm14 }
 0x929   : > { %v2791_v63 = vpop.permute.xlu0 %2790  ;;  %v2771_v10 = vpop.permute.xlu1 %2770 }
 0x92a   : > { %4890 = vmatprep.subr.bf16.mxu0 %v2771_v10  ;;  %v2775_v22 = vsel %vm8148_vm9, %v2769_v7, %v2771_v10 }
 0x92b   : > { %2938 = vmatprep.subr.bf16.mxu1 %v2775_v22 }
 0x92c   : > { %4891 = vmatpush3.bf16.msra.mxu0 %v7157_v55  ;;  %2939 = vmatpush1.bf16.msra.mxu1 %v2774_v5 }
 0x92d   : > { %4892 = vmatprep.subr.bf16.mxu0 %v2787_v23  ;;  %v2789_v18 = vpop.permute.xlu0 %2788  ;;  %2940 = vmatprep.subr.bf16.mxu1 %v2795_v28  ;;  %v2807_v42 = vpop.permute.xlu1 %2806 }
 0x92e   : > { %v2796_v53 = vsel %vm8226_vm0, %v2789_v18, %v2791_v63 }
 0x930   : > { %4893 = vmatpush3.bf16.msra.mxu0 %v7082_v13  ;;  %2941 = vmatpush1.bf16.msra.mxu1 %v2794_v12 }
 0x931   : > { %v2809_v30 = vpop.permute.xlu0 %2808  ;;  %v2793_v33 = vpop.permute.xlu1 %2792 }
 0x932   : > { %4894 = vmatprep.subr.bf16.mxu0 %v2793_v33  ;;  %v2797_v34 = vsel %vm8225_vm10, %v2791_v63, %v2793_v33  ;;  %v2817_v54 = vsel %vm8227_vm14, %v2807_v42, %v2809_v30  ;;  %vm8229_vm10 = vmmov %vm8227_vm14  ;;  %vm8231_vm14 = vcmask 736256  }
 0x933   : > { %2942 = vmatprep.subr.bf16.mxu1 %v2797_v34  ;;  %vm8230_vm0 = vmmov %vm8229_vm10 }
 0x934   : > { %4895 = vmatpush3.bf16.msra.mxu0 %v7178_v4  ;;  %2943 = vmatpush1.bf16.msra.mxu1 %v2796_v53 }
 0x935   : > { %4896 = vmatprep.subr.bf16.mxu0 %v2809_v30  ;;  %v2813_v55 = vpop.permute.xlu0 %2812  ;;  %2944 = vmatprep.subr.bf16.mxu1 %v2817_v54  ;;  %v2805_v1 = vpop.permute.xlu1 %2804 }
 0x936   : > { %v2816_v13 = vsel %vm8228_vm15, %v2805_v1, %v2807_v42  ;;  %vm8232_vm15 = vmmov %vm8231_vm14 }
 0x938   : > { %4897 = vmatpush3.bf16.msra.mxu0 %v7096_v38  ;;  %2945 = vmatpush1.bf16.msra.mxu1 %v2816_v13 }
 0x939   : > { %v2811_v36 = vpop.permute.xlu0 %2810  ;;  %v2815_v21 = vpop.permute.xlu1 %2814 }
 0x93a   : > { %v2818_v9 = vsel %vm8229_vm10, %v2811_v36, %v2813_v55  ;;  %4898 = vmatprep.subr.bf16.mxu0 %v2815_v21  ;;  %v2819_v19 = vsel %vm8230_vm0, %v2813_v55, %v2815_v21  ;;  %vm8233_vm10 = vmmov %vm8231_vm14 }
 0x93b   : > { %2946 = vmatprep.subr.bf16.mxu1 %v2819_v19  ;;  %vm8234_vm0 = vmmov %vm8233_vm10 }
 0x93c   : > { %4899 = vmatpush3.bf16.msra.mxu0 %v7199_v41  ;;  %2947 = vmatpush1.bf16.msra.mxu1 %v2818_v9 }
 0x93d   : > { %v2831_v39 = vpop.permute.xlu0 %2830  ;;  %v2829_v11 = vpop.permute.xlu1 %2828 }
 0x93e   : > { %4997 = vmatprep.subr.bf16.mxu0 %v2831_v39  ;;  %v2839_v61 = vsel %vm8231_vm14, %v2829_v11, %v2831_v39  ;;  %vm8236_vm14 = vcmask 752640  }
 0x93f   : > { %3055 = vmatmul.mubr.bf16.vlgmr.msra.gmra.mrb[24].mxu0 %v5251_v47  ;;  %2949 = vmatmul.mubr.bf16.vlgmr.msra.gmra.mrb[28].mxu1 %v5251_v47 }
 0x940   : > { %2969 = vmatprep.subr.bf16.mxu1 %v2839_v61  ;;  %4998 = vmatpush3.bf16.msra.mxu0 %v2831_v39 }
 0x941   : > { %v2835_v38 = vpop.permute.xlu0 %2834  ;;  %v2827_v43 = vpop.permute.xlu1 %2826  ;;  %3062 = vmatprep.mubr.bf16.mxu0 %v5254_v60  ;;  %2958 = vmatprep.mubr.bf16.mxu1 %v5254_v60 }
 0x942   : > { %v2838_v4 = vsel %vm8232_vm15, %v2827_v43, %v2829_v11  ;;  %vm8237_vm15 = vmmov %vm8236_vm14 }
 0x943   : > { %2970 = vmatpush1.bf16.msra.mxu1 %v2838_v4 }
 0x945   : > { %v2833_v59 = vpop.permute.xlu0 %2832  ;;  %v2837_v32 = vpop.permute.xlu1 %2836 }
 0x946   : > { %v2840_v27 = vsel %vm8233_vm10, %v2833_v59, %v2835_v38  ;;  %4999 = vmatprep.subr.bf16.mxu0 %v2837_v32  ;;  %v2841_v49 = vsel %vm8234_vm0, %v2835_v38, %v2837_v32  ;;  %vm8238_vm10 = vmmov %vm8236_vm14 }
 0x947   : > { %3063 = vmatmul.mubr.bf16.gmra.mrb[28].mxu0 %v5256_v44  ;;  %2959 = vmatmul.mubr.bf16.gmra.mrb[32].mxu1 %v5256_v44  ;;  %vm8239_vm0 = vmmov %vm8238_vm10 }
 0x948   : > { %2971 = vmatprep.subr.bf16.mxu1 %v2841_v49  ;;  %5000 = vmatpush3.bf16.msra.mxu0 %v2837_v32 }
 0x949   : > { %2972 = vmatpush1.bf16.msra.mxu1 %v2840_v27  ;;  %5001 = vmatprep.mubr.msk.bf16.mxu0 %vm905_vm13, %v5257_v3 }
 0x94a   : > { %3001 = vmatprep.mubr.bf16.mxu1 %v5514_v48 }
 0x94f   : > { %5002 = vmatmul.mubr.msk.bf16.vlgmr.msra.gmra.mrb[32].mxu0 %vm905_vm13, %v5258_v45  ;;  %4767 = vmatmul.mubr.msk.bf16.vlgmr.msra.gmra.mrb[28].mxu1 %vm905_vm13, %v5257_v3 }
 0x950   : > { %3011 = vmatprep.mubr.bf16.mxu1 %v5514_v48 }
 0x956   : > { %v2863_v63 = vpop.permute.xlu1 %2862  ;;  %v2868_v53 = vpop.permute.xlu0 %2867 }
 0x957   : > { %4768 = vmatmul.mubr.msk.bf16.gmra.mrb[32].mxu1 %vm905_vm13, %v5258_v45 }
 0x95a   : > { %v2873_v28 = vpop.permute.xlu1 %2872 }
 0x960   : > { %v2878_v34 = vpop.permute.xlu1 %2877 }
 0x9c9   : > { %v4875_v52 = vpop.f32.mrb[20].mxu1 }
 0x9ca   : > { %v4876_v46 = vpop.f32.mrb[21].mxu1 }
 0x9cb   : > { %v7246_v17 = vadd.f32 %v4876_v46, %v4875_v52  ;;  %v4878_v41 = vpop.f32.mrb[22].mxu1 }
 0x9cc   : > { %v4879_v50 = vpop.f32.mrb[23].mxu1 }
 0x9cd   : > { %v7248_v58 = vadd.f32 %v4879_v50, %v4878_v41 }
 0x9d1   : > { %v7250_v37 = vpop.f32.mrb[24].mxu1 }
 0x9d2   : > { %v4995_v7 = vpop.f32.mrb[25].mxu1 }
 0x9d3   : > { %v7252_v26 = vpop.f32.mrb[26].mxu1 }
 0x9d4   : > { %v4996_v31 = vpop.f32.mrb[27].mxu1 }
 0x9f2   : > { %v7254_v29 = vpop.f32.mrb[20].mxu0 }
 0x9f3   : > { %v7256_v15 = vpop.f32.mrb[21].mxu0 }
 0x9f4   : > { %v7258_v62 = vpop.f32.mrb[22].mxu0 }
 0x9f5   : > { %v7260_v56 = vpop.f32.mrb[23].mxu0 }
 0xa12   : > { %v4900_v51 = vpop.f32.mrb[24].mxu0 }
 0xa13   : > { %v4901_v23 = vpop.f32.mrb[25].mxu0 }
 0xa14   : > { %v4902_v24 = vadd.f32 %v4901_v23, %v4900_v51  ;;  %v4903_v35 = vpop.f32.mrb[26].mxu0 }
 0xa15   : > { %v4904_v10 = vpop.f32.mrb[27].mxu0 }
 0xa16   : > { %v4905_v22 = vadd.f32 %v4904_v10, %v4903_v35  ;;  %v3057_v13 = vadd.f32 %v4902_v24, %v2863_v63 }
 0xa18   : > { %v3060_v38 = vadd.f32 %v4905_v22, %v2868_v53 }
 0xa1a   : > { %v4906_v5 = vpop.f32.mrb[28].mxu0 }
 0xa1b   : > { %v4907_v18 = vpop.f32.mrb[29].mxu0 }
 0xa1c   : > { %v4908_v42 = vadd.f32 %v4907_v18, %v4906_v5  ;;  %v4909_v12 = vpop.f32.mrb[30].mxu0 }
 0xa1d   : > { %v4910_v30 = vpop.f32.mrb[31].mxu0 }
 0xa1e   : > { %v4911_v33 = vadd.f32 %v4910_v30, %v4909_v12  ;;  %v3065_v54 = vadd.f32 %v4908_v42, %v2873_v28 }
 0xa20   : > { %v3068_v47 = vadd.f32 %v4911_v33, %v2878_v34 }
 0xa22   : > { %v5003_v55 = vpop.f32.mrb[32].mxu0  ;;  %v3003_v1 = vpop.f32.mrb[28].mxu1 }
 0xa23   : > { %v7262_v36 = vadd.f32 %v5003_v55, %v3065_v54  ;;  %v5041_v21 = vadd.f32 %v3003_v1, %v2863_v63  ;;  %v3105_v9 = vpop.f32.mrb[33].mxu0  ;;  %v3005_v19 = vpop.f32.mrb[29].mxu1 }
 0xa24   : > { %v3106_v39 = vadd.f32 %v3105_v9, %v3057_v13  ;;  %v5042_v11 = vadd.f32 %v3005_v19, %v2863_v63  ;;  %v5004_v60 = vpop.f32.mrb[34].mxu0  ;;  %v3007_v61 = vpop.f32.mrb[30].mxu1 }
 0xa25   : > { %v3120_v43 = vsel %vm6077_vm2, %v5041_v21, 0.0  ;;  %v7266_v4 = vadd.f32 %v5004_v60, %v3068_v47  ;;  %v5043_v44 = vadd.f32 %v3007_v61, %v2868_v53  ;;  %v3108_v59 = vpop.f32.mrb[35].mxu0  ;;  %v3009_v32 = vpop.f32.mrb[31].mxu1  ;;  %v3128_v5 = vsel %vm6073_vm1, %v7262_v36, 0.0 }
 0xa26   : > { %v3122_v3 = vsel %vm6073_vm1, %v3106_v39, 0.0  ;;  %v3121_v27 = vsel %vm6081_vm3, %v5042_v11, 0.0  ;;  %v3109_v49 = vadd.f32 %v3108_v59, %v3060_v38  ;;  %v5044_v41 = vadd.f32 %v3009_v32, %v2868_v53 }
 0xa27   : > { %v3132_v45 = vadd.f32 %v3121_v27, %v3120_v43  ;;  %v3133_v52 = vsel %vm905_vm13, %v3122_v3, 0.0  ;;  %v3123_v46 = vsel %vm6077_vm2, %v5043_v44, 0.0  ;;  %v3131_v13 = vsel %vm6073_vm1, %v7266_v4, 0.0 }
 0xa28   : > { %v3125_v50 = vsel %vm6073_vm1, %v3109_v49, 0.0  ;;  %v3124_v31 = vsel %vm6081_vm3, %v5044_v41, 0.0  ;;  %v3148_v47 = vsel %vm905_vm13, %v3131_v13, 0.0 }
 0xa29   : > { %v3134_v7 = vadd.f32 %v3133_v52, %v3132_v45  ;;  %v3137_v23 = vadd.f32 %v3124_v31, %v3123_v46  ;;  %v3138_v63 = vsel %vm905_vm13, %v3125_v50, 0.0 }
 0xa2a   : > { %v3013_v51 = vpop.f32.mrb[32].mxu1 }
 0xa2b   : > { %v5045_v24 = vadd.f32 %v3013_v51, %v2873_v28  ;;  %v3015_v35 = vpop.f32.mrb[33].mxu1  ;;  %3135 = vadd.xlane.f32.xlu0 %v3134_v7  ;;  %v3139_v30 = vadd.f32 %v3138_v63, %v3137_v23 }
 0xa2c   : > { %v5046_v10 = vadd.f32 %v3015_v35, %v2873_v28  ;;  %v3017_v22 = vpop.f32.mrb[34].mxu1  ;;  %v3143_v28 = vsel %vm905_vm13, %v3128_v5, 0.0 }
 0xa2d   : > { %v3126_v18 = vsel %vm6077_vm2, %v5045_v24, 0.0  ;;  %v5047_v42 = vadd.f32 %v3017_v22, %v2878_v34  ;;  %v3019_v12 = vpop.f32.mrb[35].mxu1  ;;  %3140 = vadd.xlane.f32.xlu1 %v3139_v30 }
 0xa2e   : > { %v3127_v33 = vsel %vm6081_vm3, %v5046_v10, 0.0  ;;  %v5048_v53 = vadd.f32 %v3019_v12, %v2878_v34 }
 0xa2f   : > { %v3142_v54 = vadd.f32 %v3127_v33, %v3126_v18  ;;  %v3129_v55 = vsel %vm6077_vm2, %v5047_v42, 0.0 }
 0xa30   : > { %v3130_v1 = vsel %vm6081_vm3, %v5048_v53, 0.0 }
 0xa31   : > { %v3147_v9 = vadd.f32 %v3130_v1, %v3129_v55  ;;  %v3144_v19 = vadd.f32 %v3143_v28, %v3142_v54 }
 0xa33   : > { %3145 = vadd.xlane.f32.xlu0 %v3144_v19  ;;  %v3149_v34 = vadd.f32 %v3148_v47, %v3147_v9 }
 0xa37   : > { %3150 = vadd.xlane.f32.xlu0 %v3149_v34 }
 0xa3e   : > { %3237 = vperm.xlu1 %5217, %v7018_v8  }
 0xa42   : > { %5219 = vset.pattern.permute.xlu1 %v5516_v57 }
 0xab8   : > { %v3136_v60 = vpop.xlane.xlu0 %3135 }
 0xab9   : > { %v3152_v61 = vmul.f32 0.00390625, %v3136_v60 }
 0xaba   : > { %v3141_v32 = vpop.xlane.xlu1 %3140 }
 0xabb   : > { %v7298_v38 = vsub.f32 %v5041_v21, %v3152_v61  ;;  %v7300_v43 = vsub.f32 %v5042_v11, %v3152_v61  ;;  %v7302_v59 = vsub.f32 %v3106_v39, %v3152_v61  ;;  %v3153_v3 = vmul.f32 0.00390625, %v3141_v32 }
 0xabd   : > { %v3168_v27 = vsel %vm6077_vm2, %v7298_v38, 0.0  ;;  %v3169_v45 = vsel %vm6081_vm3, %v7300_v43, 0.0  ;;  %v3170_v52 = vsel %vm6073_vm1, %v7302_v59, 0.0  ;;  %v7313_v50 = vsub.f32 %v5043_v44, %v3153_v3 }
 0xabe   : > { %v3180_v21 = vmul.f32 %v3168_v27, %v3168_v27  ;;  %v3181_v46 = vmul.f32 %v3169_v45, %v3169_v45  ;;  %v3182_v11 = vmul.f32 %v3170_v52, %v3170_v52  ;;  %v7315_v39 = vsub.f32 %v5044_v41, %v3153_v3 }
 0xabf   : > { %v7317_v7 = vsub.f32 %v3109_v49, %v3153_v3  ;;  %v3171_v63 = vsel %vm6077_vm2, %v7313_v50, 0.0 }
 0xac0   : > { %v3146_v31 = vpop.xlane.xlu0 %3145  ;;  %v3192_v51 = vadd.f32 %v3181_v46, %v3180_v21  ;;  %v3193_v23 = vsel %vm905_vm13, %v3182_v11, 0.0  ;;  %v3172_v22 = vsel %vm6081_vm3, %v7315_v39, 0.0  ;;  %v3183_v49 = vmul.f32 %v3171_v63, %v3171_v63 }
 0xac1   : > { %v3154_v35 = vmul.f32 0.00390625, %v3146_v31  ;;  %v3173_v44 = vsel %vm6073_vm1, %v7317_v7, 0.0  ;;  %v3184_v5 = vmul.f32 %v3172_v22, %v3172_v22 }
 0xac2   : > { %v3194_v41 = vadd.f32 %v3193_v23, %v3192_v51  ;;  %v3185_v18 = vmul.f32 %v3173_v44, %v3173_v44 }
 0xac3   : > { %v7329_v12 = vsub.f32 %v5045_v24, %v3154_v35  ;;  %v7331_v30 = vsub.f32 %v5046_v10, %v3154_v35  ;;  %v7334_v33 = vsub.f32 %v7262_v36, %v3154_v35  ;;  %v3197_v55 = vadd.f32 %v3184_v5, %v3183_v49 }
 0xac4   : > { %3195 = vadd.xlane.f32.xlu1 %v3194_v41  ;;  %v3151_v54 = vpop.xlane.xlu0 %3150  ;;  %v3198_v28 = vsel %vm905_vm13, %v3185_v18, 0.0 }
 0xac5   : > { %v3155_v1 = vmul.f32 0.00390625, %v3151_v54  ;;  %v3174_v13 = vsel %vm6077_vm2, %v7329_v12, 0.0  ;;  %v3175_v24 = vsel %vm6081_vm3, %v7331_v30, 0.0  ;;  %v3176_v10 = vsel %vm6073_vm1, %v7334_v33, 0.0 }
 0xac6   : > { %v3199_v36 = vadd.f32 %v3198_v28, %v3197_v55  ;;  %v3186_v9 = vmul.f32 %v3174_v13, %v3174_v13  ;;  %v3187_v19 = vmul.f32 %v3175_v24, %v3175_v24  ;;  %v3188_v47 = vmul.f32 %v3176_v10, %v3176_v10 }
 0xac7   : > { %v7346_v34 = vsub.f32 %v5047_v42, %v3155_v1  ;;  %v7348_v60 = vsub.f32 %v5048_v53, %v3155_v1  ;;  %v7351_v61 = vsub.f32 %v7266_v4, %v3155_v1 }
 0xac8   : > { %3200 = vadd.xlane.f32.xlu0 %v3199_v36  ;;  %v3202_v32 = vadd.f32 %v3187_v19, %v3186_v9  ;;  %v3203_v3 = vsel %vm905_vm13, %v3188_v47, 0.0 }
 0xac9   : > { %v3177_v27 = vsel %vm6077_vm2, %v7346_v34, 0.0  ;;  %v3178_v45 = vsel %vm6081_vm3, %v7348_v60, 0.0  ;;  %v3179_v42 = vsel %vm6073_vm1, %v7351_v61, 0.0 }
 0xaca   : > { %v3204_v53 = vadd.f32 %v3203_v3, %v3202_v32  ;;  %v3189_v52 = vmul.f32 %v3177_v27, %v3177_v27  ;;  %v3190_v4 = vmul.f32 %v3178_v45, %v3178_v45  ;;  %v3191_v21 = vmul.f32 %v3179_v42, %v3179_v42 }
 0xacc   : > { %3205 = vadd.xlane.f32.xlu1 %v3204_v53  ;;  %v3207_v46 = vadd.f32 %v3190_v4, %v3189_v52  ;;  %v3208_v11 = vsel %vm905_vm13, %v3191_v21, 0.0 }
 0xace   : > { %v3209_v31 = vadd.f32 %v3208_v11, %v3207_v46 }
 0xad0   : > { %3210 = vadd.xlane.f32.xlu0 %v3209_v31 }
 0xadd   : > { %3265 = vperm.xlu1 %5219, %v7018_v8   ;;  %v3238_v8 = vpop.permute.xlu1 %3237 }
 0xae1   : > { %3269 = vperm.xlu1 %5219, %v7023_v25  }
 0xae5   : > { %5220 = vset.pattern.permute.xlu1 %v5515_v2 }
 0xae6   : > { %3245 = vperm.xlu1 %5220, %v7032_v40   ;;  %3241 = vperm.xlu0 %5218, %v7023_v25  }
 0xaea   : > { %3249 = vperm.xlu1 %5220, %v7043_v6   ;;  %5222 = vset.pattern.permute.xlu0 %v5514_v48 }
 0xaee   : > { %5221 = vset.pattern.permute.xlu1 %v5516_v57 }
 0xaef   : > { %3273 = vperm.xlu1 %5221, %v7032_v40  }
 0xaf3   : > { %3277 = vperm.xlu1 %5221, %v7043_v6  }
 0xaf7   : > { %5223 = vset.pattern.permute.xlu1 %v5514_v48 }
 0xb51   : > { %v3196_v51 = vpop.xlane.xlu1 %3195 }
 0xb52   : > { %v3212_v23 = vmul.f32 0.00390625, %v3196_v51 }
 0xb54   : > { %v3216_v35 = vadd.f32 1e-05, %v3212_v23 }
 0xb55   : > { %v3201_v63 = vpop.xlane.xlu0 %3200 }
 0xb56   : > { %5286 = vrsqrt.f32 %v3216_v35  ;;  %v3213_v22 = vmul.f32 0.00390625, %v3201_v63 }
 0xb58   : > { %v3217_v25 = vadd.f32 1e-05, %v3213_v22 }
 0xb59   : > { %v3206_v44 = vpop.xlane.xlu1 %3205 }
 0xb5a   : > { %5288 = vrsqrt.f32 %v3217_v25  ;;  %v3214_v41 = vmul.f32 0.00390625, %v3206_v44 }
 0xb5c   : > { %v3218_v49 = vadd.f32 1e-05, %v3214_v41 }
 0xb5d   : > { %v3211_v5 = vpop.xlane.xlu0 %3210  ;;  %v3266_v18 = vpop.permute.xlu1 %3265 }
 0xb5e   : > { %5290 = vrsqrt.f32 %v3218_v49  ;;  %v3215_v40 = vmul.f32 0.00390625, %v3211_v5 }
 0xb60   : > { %v5287_v54 = vpop.eup %5286  ;;  %v3219_v6 = vadd.f32 1e-05, %v3215_v40 }
 0xb61   : > { %v3224_v55 = vmul.f32 %v5287_v54, %v7298_v38  ;;  %v3225_v28 = vmul.f32 %v5287_v54, %v7300_v43  ;;  %v3226_v1 = vmul.f32 %v5287_v54, %v7302_v59  ;;  %v3270_v13 = vpop.permute.xlu1 %3269 }
 0xb62   : > { %5292 = vrsqrt.f32 %v3219_v6 }
 0xb63   : > { %v3252_v24 = vmul.f32 %v3238_v8, %v3224_v55  ;;  %v3253_v10 = vmul.f32 %v3238_v8, %v3225_v28  ;;  %v3254_v36 = vmul.f32 %v3238_v8, %v3226_v1 }
 0xb64   : > { %v5289_v9 = vpop.eup %5288 }
 0xb65   : > { %v3280_v19 = vadd.f32 %v3266_v18, %v3252_v24  ;;  %v3281_v47 = vadd.f32 %v3266_v18, %v3253_v10  ;;  %v3282_v32 = vadd.f32 %v3266_v18, %v3254_v36  ;;  %v3227_v3 = vmul.f32 %v5289_v9, %v7313_v50  ;;  %v3242_v27 = vpop.permute.xlu0 %3241  ;;  %v3246_v45 = vpop.permute.xlu1 %3245 }
 0xb66   : > { %v3228_v42 = vmul.f32 %v5289_v9, %v7315_v39  ;;  %v3229_v38 = vmul.f32 %v5289_v9, %v7317_v7 }
 0xb67   : > { %v3255_v43 = vmul.f32 %v3242_v27, %v3227_v3  ;;  %v3294_v53 = vmax.f32 %v3282_v32, 0.0  ;;  %v3292_v59 = vmax.f32 %v3280_v19, 0.0  ;;  %v3293_v8 = vmax.f32 %v3281_v47, 0.0 }
 0xb68   : > { %v5291_v52 = vpop.eup %5290  ;;  %v3256_v4 = vmul.f32 %v3242_v27, %v3228_v42  ;;  %v3257_v21 = vmul.f32 %v3242_v27, %v3229_v38 }
 0xb69   : > { %v3230_v46 = vmul.f32 %v5291_v52, %v7329_v12  ;;  %v3306_v11 = vsel %vm6073_vm1, %v3294_v53, 0.0  ;;  %v3250_v31 = vpop.permute.xlu1 %3249  ;;  %v3232_v50 = vmul.f32 %v5291_v52, %v7334_v33  ;;  %v3304_v39 = vsel %vm6077_vm2, %v3292_v59, 0.0 }
 0xb6a   : > { %3332 = vrot.lane.b32.xlu0 %v3306_v11, %s8146_s17  ;;  %v3284_v7 = vadd.f32 %v3270_v13, %v3256_v4  ;;  %v3283_v51 = vadd.f32 %v3270_v13, %v3255_v43  ;;  %3328 = vrot.lane.b32.xlu1 %v3304_v39, %s8146_s17  ;;  %v3231_v35 = vmul.f32 %v5291_v52, %v7331_v30  ;;  %v3305_v22 = vsel %vm6081_vm3, %v3293_v8, 0.0 }
 0xb6b   : > { %v3258_v63 = vmul.f32 %v3246_v45, %v3230_v46  ;;  %v3285_v25 = vadd.f32 %v3270_v13, %v3257_v21  ;;  %v3260_v44 = vmul.f32 %v3246_v45, %v3232_v50 }
 0xb6c   : > { %v5293_v23 = vpop.eup %5292  ;;  %v3296_v12 = vmax.f32 %v3284_v7, 0.0  ;;  %v3295_v5 = vmax.f32 %v3283_v51, 0.0  ;;  %v3259_v18 = vmul.f32 %v3246_v45, %v3231_v35 }
 0xb6d   : > { %v3234_v33 = vmul.f32 %v5293_v23, %v7348_v60  ;;  %v3233_v30 = vmul.f32 %v5293_v23, %v7346_v34  ;;  %v3297_v6 = vmax.f32 %v3285_v25, 0.0  ;;  %v3235_v24 = vmul.f32 %v5293_v23, %v7351_v61 }
 0xb6e   : > { %v3308_v41 = vsel %vm6081_vm3, %v3296_v12, 0.0  ;;  %v3274_v49 = vpop.permute.xlu1 %3273  ;;  %3330 = vrot.lane.b32.xlu1 %v3305_v22, %s8146_s17  ;;  %v3307_v60 = vsel %vm6077_vm2, %v3295_v5, 0.0 }
 0xb6f   : > { %3336 = vrot.lane.b32.xlu0 %v3308_v41, %s8146_s17  ;;  %v3286_v40 = vadd.f32 %v3274_v49, %v3258_v63  ;;  %v3288_v54 = vadd.f32 %v3274_v49, %v3260_v44  ;;  %v3262_v55 = vmul.f32 %v3250_v31, %v3234_v33  ;;  %v3287_v28 = vadd.f32 %v3274_v49, %v3259_v18 }
 0xb70   : > { %v3261_v10 = vmul.f32 %v3250_v31, %v3233_v30  ;;  %v3309_v47 = vsel %vm6073_vm1, %v3297_v6, 0.0  ;;  %v3263_v3 = vmul.f32 %v3250_v31, %v3235_v24 }
 0xb71   : > { %v3298_v13 = vmax.f32 %v3286_v40, 0.0  ;;  %v3300_v34 = vmax.f32 %v3288_v54, 0.0  ;;  %v3299_v32 = vmax.f32 %v3287_v28, 0.0 }
 0xb72   : > { %v3278_v1 = vpop.permute.xlu1 %3277  ;;  %3334 = vrot.lane.b32.xlu1 %v3307_v60, %s8146_s17 }
 0xb73   : > { %v3290_v36 = vadd.f32 %v3278_v1, %v3262_v55  ;;  %v3310_v9 = vsel %vm6077_vm2, %v3298_v13, 0.0  ;;  %v3289_v19 = vadd.f32 %v3278_v1, %v3261_v10  ;;  %v3312_v61 = vsel %vm6073_vm1, %v3300_v34, 0.0  ;;  %v7532_v34 = vld [vmem:[%s8100_s4 + $0x28] sm:$0xff] }
 0xb74   : > { %3340 = vrot.lane.b32.xlu0 %v3310_v9, %s8146_s17  ;;  %v3291_v45 = vadd.f32 %v3278_v1, %v3263_v3  ;;  %v3311_v42 = vsel %vm6081_vm3, %v3299_v32, 0.0  ;;  %v5261_v9 = vld [vmem:[#allocation8 + $0x34] ss:$12 sps:$4 sm:$0xff]   ;;  %v7549_v32 = vld [vmem:[%s8100_s4 + $0x38] sm:$0xff] }
 0xb75   : > { %v3302_v27 = vmax.f32 %v3290_v36, 0.0  ;;  %v3301_v38 = vmax.f32 %v3289_v19, 0.0  ;;  %3792 = vmatprep.mubr.bf16.mxu1 %v5261_v9  ;;  %3686 = vmatprep.mubr.bf16.mxu0 %v5261_v9  ;;  %v7537_v19 = vld [vmem:[%s8100_s4 + $0x20] sm:$0xff] }
 0xb76   : > { %3338 = vrot.lane.b32.xlu1 %v3309_v47, %s8146_s17  ;;  %v3303_v59 = vmax.f32 %v3291_v45, 0.0  ;;  %v7544_v47 = vld [vmem:[%s8100_s4 + $0x30] sm:$0xff] }
 0xb77   : > { %v3314_v43 = vsel %vm6081_vm3, %v3302_v27, 0.0  ;;  %v3313_v53 = vsel %vm6077_vm2, %v3301_v38, 0.0 }
 0xb78   : > { %3344 = vrot.lane.b32.xlu0 %v3312_v61, %s8146_s17  ;;  %v3315_v52 = vsel %vm6073_vm1, %v3303_v59, 0.0 }
 0xb7a   : > { %3342 = vrot.lane.b32.xlu1 %v3311_v42, %s8146_s17 }
 0xb7c   : > { %3348 = vrot.lane.b32.xlu0 %v3314_v43, %s8146_s17 }
 0xb7e   : > { %3346 = vrot.lane.b32.xlu1 %v3313_v53, %s8146_s17 }
 0xb82   : > { %3350 = vrot.lane.b32.xlu1 %v3315_v52, %s8146_s17  ;;  %s8250_s17 = smov 126  }
 0xbdc   : > { %v3333_v4 = vpop.permute.xlu0 %3332  ;;  %v3329_v21 = vpop.permute.xlu1 %3328 }
 0xbdd   : > { %3372 = vst.msk [vmem:[#allocation3] sm:$0xff] %vm1375_vm4, %v3329_v21 }
 0xbe0   : > { %v3331_v46 = vpop.permute.xlu1 %3330 }
 0xbe1   : > { %v3352_v11 = vsel %vm1354_vm12, %v3329_v21, %v3331_v46  ;;  %v3353_v31 = vsel %vm1354_vm12, %v3331_v46, %v3333_v4  ;;  %v3337_v8 = vpop.permute.xlu0 %3336 }
 0xbe2   : > { %3374 = vst.msk [vmem:[#allocation3 + $0x10] sm:$0xff] %vm1378_vm11, %v3353_v31 }
 0xbe4   : > { %v3335_v50 = vpop.permute.xlu1 %3334  ;;  %v3384_v63 = vld [vmem:[#allocation3] sm:$0xff] }
 0xbe5   : > { %v3354_v39 = vsel %vm1354_vm12, %v3335_v50, %v3337_v8  ;;  %3375 = vst.msk [vmem:[#allocation3 + $0x18] sm:$0xff] %vm1375_vm4, %v3335_v50 }
 0xbe6   : > { %v3341_v7 = vpop.permute.xlu0 %3340  ;;  %v7429_v51 = vpack.c.bf16 %v3354_v39, %v3352_v11 }
 0xbe7   : > { %3378 = vst.msk [vmem:[#allocation3 + $0x30] sm:$0xff] %vm1375_vm4, %v3341_v7 }
 0xbe8   : > { %v3339_v23 = vpop.permute.xlu1 %3338  ;;  %3654 = vmatprep.subr.bf16.mxu0 %v7429_v51 }
 0xbe9   : > { %v3355_v35 = vsel %vm1354_vm12, %v3337_v8, %v3339_v23  ;;  %v3386_v40 = vld [vmem:[#allocation3 + $0x10] sm:$0xff] }
 0xbea   : > { %3377 = vst.msk [vmem:[#allocation3 + $0x28] sm:$0xff] %vm1378_vm11, %v3355_v35  ;;  %v3345_v12 = vpop.permute.xlu0 %3344 }
 0xbec   : > { %v3387_v22 = vld [vmem:[#allocation3 + $0x18] sm:$0xff]  ;;  %v3343_v25 = vpop.permute.xlu1 %3342 }
 0xbed   : > { %v7435_v44 = vpack.c.bf16 %v3387_v22, %v3384_v63  ;;  %v3356_v33 = vsel %vm1354_vm12, %v3341_v7, %v3343_v25  ;;  %v3357_v41 = vsel %vm1354_vm12, %v3343_v25, %v3345_v12 }
 0xbee   : > { %3380 = vst.msk [vmem:[#allocation3 + $0x40] sm:$0xff] %vm1378_vm11, %v3357_v41  ;;  %v3349_v49 = vpop.permute.xlu0 %3348  ;;  %v3390_v60 = vld [vmem:[#allocation3 + $0x30] sm:$0xff] }
 0xbef   : > { %3408 = vrot.lane.b32.xlu0 %v7435_v44, %s8144_s30  ;;  %3655 = vmatpush1.bf16.msra.mxu0 %v7435_v44 }
 0xbf0   : > { %v3347_v5 = vpop.permute.xlu1 %3346 }
 0xbf1   : > { %v3389_v18 = vld [vmem:[#allocation3 + $0x28] sm:$0xff]  ;;  %v3358_v30 = vsel %vm1354_vm12, %v3347_v5, %v3349_v49  ;;  %3381 = vst.msk [vmem:[#allocation3 + $0x48] sm:$0xff] %vm1375_vm4, %v3347_v5 }
 0xbf2   : > { %v7445_v54 = vpack.c.bf16 %v3389_v18, %v3386_v40  ;;  %v3400_v6 = vpack.c.bf16 %v3358_v30, %v3356_v33 }
 0xbf3   : > { %3430 = vrot.lane.b32.xlu0 %v7435_v44, %s8142_s29 }
 0xbf4   : > { %3412 = vrot.lane.b32.xlu1 %v7445_v54, %s8144_s30  ;;  %v3351_v55 = vpop.permute.xlu1 %3350  ;;  %3656 = vmatprep.subr.bf16.mxu0 %v3400_v6 }
 0xbf5   : > { %v3359_v28 = vsel %vm1354_vm12, %v3349_v49, %v3351_v55  ;;  %v3392_v10 = vld [vmem:[#allocation3 + $0x40] sm:$0xff] }
 0xbf6   : > { %3383 = vst.msk [vmem:[#allocation3 + $0x58] sm:$0xff] %vm1378_vm11, %v3359_v28 }
 0xbf7   : > { %3452 = vrot.lane.b32.xlu0 %v7435_v44, %s8202_s23 }
 0xbf8   : > { %v3393_v1 = vld [vmem:[#allocation3 + $0x48] sm:$0xff]  ;;  %3434 = vrot.lane.b32.xlu1 %v7445_v54, %s8142_s29 }
 0xbf9   : > { %v3399_v13 = vpack.c.bf16 %v3393_v1, %v3390_v60 }
 0xbfb   : > { %3474 = vrot.lane.b32.xlu0 %v7435_v44, %s8235_s15  ;;  %3657 = vmatpush1.bf16.msra.mxu0 %v3399_v13 }
 0xbfc   : > { %3456 = vrot.lane.b32.xlu1 %v7445_v54, %s8202_s23 }
 0xbfd   : > { %v3395_v24 = vld [vmem:[#allocation3 + $0x58] sm:$0xff] }
 0xbfe   : > { %v7474_v36 = vpack.c.bf16 %v3395_v24, %v3392_v10 }
 0xbff   : > { %3410 = vrot.lane.b32.xlu0 %v7429_v51, %s8144_s30 }
 0xc00   : > { %3478 = vrot.lane.b32.xlu1 %v7445_v54, %s8235_s15 }
 0xc03   : > { %3432 = vrot.lane.b32.xlu0 %v7429_v51, %s8142_s29 }
 0xc04   : > { %3414 = vrot.lane.b32.xlu1 %v3399_v13, %s8144_s30 }
 0xc07   : > { %3454 = vrot.lane.b32.xlu0 %v7429_v51, %s8202_s23 }
 0xc08   : > { %3436 = vrot.lane.b32.xlu1 %v3399_v13, %s8142_s29 }
 0xc0b   : > { %3476 = vrot.lane.b32.xlu0 %v7429_v51, %s8235_s15 }
 0xc0c   : > { %3458 = vrot.lane.b32.xlu1 %v3399_v13, %s8202_s23 }
 0xc0f   : > { %3418 = vrot.lane.b32.xlu0 %v7474_v36, %s8144_s30 }
 0xc10   : > { %3416 = vrot.lane.b32.xlu1 %v3400_v6, %s8144_s30  ;;  %s8248_s30 = smov 19  }
 0xc13   : > { %3498 = vrot.lane.b32.xlu0 %v7429_v51, %s8207_s22 }
 0xc14   : > { %3480 = vrot.lane.b32.xlu1 %v3399_v13, %s8235_s15 }
 0xc17   : > { %3440 = vrot.lane.b32.xlu0 %v7474_v36, %s8142_s29 }
 0xc18   : > { %3438 = vrot.lane.b32.xlu1 %v3400_v6, %s8142_s29  ;;  %s8249_s29 = smov 127  }
 0xc1b   : > { %3496 = vrot.lane.b32.xlu0 %v7435_v44, %s8207_s22 }
 0xc1c   : > { %3500 = vrot.lane.b32.xlu1 %v7445_v54, %s8207_s22 }
 0xc1f   : > { %3462 = vrot.lane.b32.xlu0 %v7474_v36, %s8202_s23 }
 0xc20   : > { %3460 = vrot.lane.b32.xlu1 %v3400_v6, %s8202_s23 }
 0xc23   : > { %3520 = vrot.lane.b32.xlu0 %v7429_v51, %s8178_s12 }
 0xc24   : > { %3502 = vrot.lane.b32.xlu1 %v3399_v13, %s8207_s22 }
 0xc27   : > { %3484 = vrot.lane.b32.xlu0 %v7474_v36, %s8235_s15 }
 0xc28   : > { %3482 = vrot.lane.b32.xlu1 %v3400_v6, %s8235_s15 }
 0xc2b   : > { %3518 = vrot.lane.b32.xlu0 %v7435_v44, %s8178_s12 }
 0xc2c   : > { %3522 = vrot.lane.b32.xlu1 %v7445_v54, %s8178_s12 }
 0xc2f   : > { %3506 = vrot.lane.b32.xlu0 %v7474_v36, %s8207_s22 }
 0xc30   : > { %3504 = vrot.lane.b32.xlu1 %v3400_v6, %s8207_s22 }
 0xc33   : > { %3542 = vrot.lane.b32.xlu0 %v7429_v51, %s8179_s13 }
 0xc34   : > { %3524 = vrot.lane.b32.xlu1 %v3399_v13, %s8178_s12 }
 0xc37   : > { %3528 = vrot.lane.b32.xlu0 %v7474_v36, %s8178_s12 }
 0xc38   : > { %3526 = vrot.lane.b32.xlu1 %v3400_v6, %s8178_s12 }
 0xc3b   : > { %3540 = vrot.lane.b32.xlu0 %v7435_v44, %s8179_s13 }
 0xc3c   : > { %3544 = vrot.lane.b32.xlu1 %v7445_v54, %s8179_s13 }
 0xc3f   : > { %3550 = vrot.lane.b32.xlu0 %v7474_v36, %s8179_s13 }
 0xc40   : > { %3548 = vrot.lane.b32.xlu1 %v3400_v6, %s8179_s13 }
 0xc43   : > { %3564 = vrot.lane.b32.xlu0 %v7429_v51, %s8180_s27 }
 0xc44   : > { %3546 = vrot.lane.b32.xlu1 %v3399_v13, %s8179_s13 }
 0xc47   : > { %3562 = vrot.lane.b32.xlu0 %v7435_v44, %s8180_s27 }
 0xc48   : > { %3566 = vrot.lane.b32.xlu1 %v7445_v54, %s8180_s27 }
 0xc4b   : > { %3572 = vrot.lane.b32.xlu0 %v7474_v36, %s8180_s27 }
 0xc4c   : > { %3570 = vrot.lane.b32.xlu1 %v3400_v6, %s8180_s27 }
 0xc4f   : > { %3600 = vperm.xlu0 %5222, %v7537_v19  }
 0xc50   : > { %3568 = vrot.lane.b32.xlu1 %v3399_v13, %s8180_s27 }
 0xc53   : > { %3615 = vperm.xlu0 %5222, %v7549_v32  }
 0xc54   : > { %3605 = vperm.xlu1 %5223, %v7532_v34  }
 0xc57   : > { %5224 = vset.pattern.permute.xlu0 %v5515_v2 }
 0xc58   : > { %3610 = vperm.xlu1 %5223, %v7544_v47  }
 0xc5c   : > { %5225 = vset.pattern.permute.xlu1 %v5515_v2 }
 0xc61   : > { %v3409_v3 = vpop.permute.xlu0 %3408 }
 0xc65   : > { %v3431_v61 = vpop.permute.xlu0 %3430 }
 0xc66   : > { %v7555_v27 = vpop.permute.xlu1 %3412 }
 0xc69   : > { %v3453_v45 = vpop.permute.xlu0 %3452 }
 0xc6a   : > { %v7557_v42 = vpop.permute.xlu1 %3434 }
 0xc6d   : > { %v3475_v38 = vpop.permute.xlu0 %3474 }
 0xc6e   : > { %v7559_v43 = vpop.permute.xlu1 %3456 }
 0xc71   : > { %v3411_v53 = vpop.permute.xlu0 %3410 }
 0xc72   : > { %v3479_v59 = vpop.permute.xlu1 %3478  ;;  %v3421_v52 = vsel %vm671_vm5, %v3411_v53, %v7555_v27  ;;  %v3420_v4 = vsel %vm671_vm5, %v3409_v3, %v3411_v53 }
 0xc73   : > { %3658 = vmatprep.subr.bf16.mxu0 %v3421_v52  ;;  %4916 = vmatprep.subr.bf16.mxu1 %v3479_v59 }
 0xc74   : > { %3659 = vmatpush1.bf16.msra.mxu0 %v3420_v4  ;;  %4917 = vmatpush3.bf16.msra.mxu1 %v7445_v54 }
 0xc75   : > { %v3433_v21 = vpop.permute.xlu0 %3432 }
 0xc76   : > { %v3415_v46 = vpop.permute.xlu1 %3414  ;;  %v3443_v12 = vsel %vm694_vm6, %v3433_v21, %v7557_v42  ;;  %v3442_v22 = vsel %vm694_vm6, %v3431_v61, %v3433_v21 }
 0xc79   : > { %v3455_v11 = vpop.permute.xlu0 %3454 }
 0xc7a   : > { %v3437_v31 = vpop.permute.xlu1 %3436  ;;  %v3465_v5 = vsel %vm717_vm7, %v3455_v11, %v7559_v43  ;;  %v3464_v30 = vsel %vm717_vm7, %v3453_v45, %v3455_v11 }
 0xc7d   : > { %v3477_v8 = vpop.permute.xlu0 %3476 }
 0xc7e   : > { %v3459_v50 = vpop.permute.xlu1 %3458  ;;  %v3487_v60 = vsel %vm740_vm8, %v3477_v8, %v3479_v59  ;;  %v3486_v13 = vsel %vm740_vm8, %v3475_v38, %v3477_v8 }
 0xc81   : > { %v3419_v39 = vpop.permute.xlu0 %3418 }
 0xc82   : > { %v3417_v7 = vpop.permute.xlu1 %3416 }
 0xc83   : > { %v3423_v51 = vsel %vm671_vm5, %v3417_v7, %v3419_v39  ;;  %v3422_v23 = vsel %vm671_vm5, %v3415_v46, %v3417_v7 }
 0xc84   : > { %3660 = vmatprep.subr.bf16.mxu0 %v3423_v51 }
 0xc85   : > { %v3499_v35 = vpop.permute.xlu0 %3498  ;;  %3661 = vmatpush1.bf16.msra.mxu0 %v3422_v23 }
 0xc86   : > { %3662 = vmatprep.subr.bf16.mxu0 %v3443_v12  ;;  %v3481_v63 = vpop.permute.xlu1 %3480 }
 0xc89   : > { %v3441_v25 = vpop.permute.xlu0 %3440  ;;  %3663 = vmatpush1.bf16.msra.mxu0 %v3442_v22  ;;  %v5259_v22 = vld [vmem:[#allocation8 + $0x30] ss:$12 sps:$4 sm:$0xff]  }
 0xc8a   : > { %v3439_v44 = vpop.permute.xlu1 %3438 }
 0xc8b   : > { %v3445_v33 = vsel %vm694_vm6, %v3439_v44, %v3441_v25  ;;  %v3444_v41 = vsel %vm694_vm6, %v3437_v31, %v3439_v44 }
 0xc8c   : > { %3664 = vmatprep.subr.bf16.mxu0 %v3445_v33 }
 0xc8d   : > { %v3497_v49 = vpop.permute.xlu0 %3496  ;;  %3665 = vmatpush1.bf16.msra.mxu0 %v3444_v41 }
 0xc8e   : > { %3666 = vmatprep.subr.bf16.mxu0 %v3465_v5  ;;  %v3501_v18 = vpop.permute.xlu1 %3500  ;;  %v3508_v38 = vsel %vm8148_vm9, %v3497_v49, %v3499_v35 }
 0xc8f   : > { %v3509_v45 = vsel %vm8148_vm9, %v3499_v35, %v3501_v18 }
 0xc91   : > { %v7575_v40 = vpop.permute.xlu0 %3462  ;;  %3667 = vmatpush1.bf16.msra.mxu0 %v3464_v30 }
 0xc92   : > { %v3461_v54 = vpop.permute.xlu1 %3460 }
 0xc93   : > { %v3467_v6 = vsel %vm717_vm7, %v3461_v54, %v7575_v40  ;;  %v3466_v55 = vsel %vm717_vm7, %v3459_v50, %v3461_v54  ;;  %v5265_v54 = vld [vmem:[#allocation8 + $0x38] ss:$12 sps:$4 sm:$0xff]  }
 0xc94   : > { %3668 = vmatprep.subr.bf16.mxu0 %v3467_v6 }
 0xc95   : > { %v3521_v28 = vpop.permute.xlu0 %3520  ;;  %3669 = vmatpush1.bf16.msra.mxu0 %v3466_v55 }
 0xc96   : > { %3670 = vmatprep.subr.bf16.mxu0 %v3487_v60  ;;  %v3503_v1 = vpop.permute.xlu1 %3502 }
 0xc99   : > { %v3485_v24 = vpop.permute.xlu0 %3484  ;;  %3671 = vmatpush1.bf16.msra.mxu0 %v3486_v13 }
 0xc9a   : > { %4918 = vmatprep.subr.bf16.mxu1 %v3485_v24  ;;  %v3483_v10 = vpop.permute.xlu1 %3482 }
 0xc9b   : > { %4919 = vmatpush3.bf16.msra.mxu1 %v7474_v36  ;;  %v3489_v9 = vsel %vm740_vm8, %v3483_v10, %v3485_v24  ;;  %v3488_v3 = vsel %vm740_vm8, %v3481_v63, %v3483_v10 }
 0xc9c   : > { %3672 = vmatprep.subr.bf16.mxu0 %v3489_v9  ;;  %4920 = vmatprep.subr.bf16.mxu1 %v3501_v18  ;;  %v5264_v18 = vld [vmem:[#allocation8 + $0x48] ss:$12 sps:$4 sm:$0xff]  }
 0xc9d   : > { %v3519_v61 = vpop.permute.xlu0 %3518  ;;  %3673 = vmatpush1.bf16.msra.mxu0 %v3488_v3 }
 0xc9e   : > { %3674 = vmatprep.subr.bf16.mxu0 %v3509_v45  ;;  %v3523_v53 = vpop.permute.xlu1 %3522 }
 0xc9f   : > { %4921 = vmatpush3.bf16.msra.mxu1 %v7555_v27  ;;  %v3531_v46 = vsel %vm8236_vm14, %v3521_v28, %v3523_v53  ;;  %v3530_v27 = vsel %vm8237_vm15, %v3519_v61, %v3521_v28  ;;  %vm8240_vm14 = vcmask 744448  }
 0xca1   : > { %v3507_v59 = vpop.permute.xlu0 %3506  ;;  %3675 = vmatpush1.bf16.msra.mxu0 %v3508_v38 }
 0xca2   : > { %4922 = vmatprep.subr.bf16.mxu1 %v3507_v59  ;;  %v3505_v36 = vpop.permute.xlu1 %3504 }
 0xca3   : > { %4923 = vmatpush3.bf16.msra.mxu1 %v3419_v39  ;;  %v3511_v52 = vsel %vm8148_vm9, %v3505_v36, %v3507_v59  ;;  %v3510_v4 = vsel %vm8148_vm9, %v3503_v1, %v3505_v36  ;;  %vm8241_vm9 = vmmov %vm8240_vm14  ;;  %v5266_v1 = vld [vmem:[#allocation8 + $0x50] ss:$12 sps:$4 sm:$0xff]  }
 0xca4   : > { %3676 = vmatprep.subr.bf16.mxu0 %v3511_v52  ;;  %4924 = vmatprep.subr.bf16.mxu1 %v3523_v53  ;;  %vm8242_vm15 = vmmov %vm8241_vm9 }
 0xca5   : > { %v3543_v21 = vpop.permute.xlu0 %3542  ;;  %3677 = vmatpush1.bf16.msra.mxu0 %v3510_v4 }
 0xca6   : > { %3678 = vmatprep.subr.bf16.mxu0 %v3531_v46  ;;  %v3525_v11 = vpop.permute.xlu1 %3524 }
 0xca7   : > { %4925 = vmatpush3.bf16.msra.mxu1 %v7557_v42 }
 0xca9   : > { %v3529_v31 = vpop.permute.xlu0 %3528  ;;  %3679 = vmatpush1.bf16.msra.mxu0 %v3530_v27 }
 0xcaa   : > { %4926 = vmatprep.subr.bf16.mxu1 %v3529_v31  ;;  %v3527_v8 = vpop.permute.xlu1 %3526 }
 0xcab   : > { %4927 = vmatpush3.bf16.msra.mxu1 %v3441_v25  ;;  %v3533_v50 = vsel %vm8238_vm10, %v3527_v8, %v3529_v31  ;;  %v3532_v39 = vsel %vm8239_vm0, %v3525_v11, %v3527_v8  ;;  %v5262_v25 = vld [vmem:[#allocation8 + $0x4c] ss:$12 sps:$4 sm:$0xff]   ;;  %vm8243_vm10 = vmmov %vm8241_vm9 }
 0xcac   : > { %3680 = vmatprep.subr.bf16.mxu0 %v3533_v50 }
 0xcad   : > { %v3541_v7 = vpop.permute.xlu0 %3540  ;;  %3681 = vmatpush1.bf16.msra.mxu0 %v3532_v39 }
 0xcae   : > { %v3545_v51 = vpop.permute.xlu1 %3544  ;;  %v3552_v42 = vsel %vm8241_vm9, %v3541_v7, %v3543_v21  ;;  %vm8244_vm9 = vcmask 736256  }
 0xcaf   : > { %4928 = vmatprep.subr.bf16.mxu1 %v3545_v51  ;;  %v3553_v23 = vsel %vm8240_vm14, %v3543_v21, %v3545_v51  ;;  %vm8245_vm0 = vmmov %vm8244_vm9 }
 0xcb0   : > { %3682 = vmatprep.subr.bf16.mxu0 %v3553_v23  ;;  %4929 = vmatpush3.bf16.msra.mxu1 %v7559_v43  ;;  %vm8246_vm14 = vmmov %vm8245_vm0 }
 0xcb1   : > { %v3551_v35 = vpop.permute.xlu0 %3550  ;;  %3683 = vmatpush1.bf16.msra.mxu0 %v3552_v42 }
 0xcb2   : > { %4930 = vmatprep.subr.bf16.mxu1 %v3551_v35  ;;  %v3549_v12 = vpop.permute.xlu1 %3548 }
 0xcb3   : > { %v3555_v63 = vsel %vm8242_vm15, %v3549_v12, %v3551_v35  ;;  %vm8247_vm15 = vmmov %vm8245_vm0 }
 0xcb4   : > { %3684 = vmatprep.subr.bf16.mxu0 %v3555_v63  ;;  %4931 = vmatpush3.bf16.msra.mxu1 %v7575_v40 }
 0xcb5   : > { %v3565_v44 = vpop.permute.xlu0 %3564 }
 0xcb6   : > { %v3547_v33 = vpop.permute.xlu1 %3546 }
 0xcb7   : > { %v3554_v41 = vsel %vm8243_vm10, %v3547_v33, %v3549_v12  ;;  %3793 = vmatmul.mubr.bf16.vlgmr.msra.gmra.mrb[36].mxu1 %v5259_v22 }
 0xcb8   : > { %3685 = vmatpush1.bf16.msra.mxu0 %v3554_v41  ;;  %3800 = vmatprep.mubr.bf16.mxu1 %v5262_v25 }
 0xcb9   : > { %v3563_v49 = vpop.permute.xlu0 %3562 }
 0xcba   : > { %v3567_v43 = vpop.permute.xlu1 %3566  ;;  %v3574_v30 = vsel %vm8245_vm0, %v3563_v49, %v3565_v44  ;;  %vm8262_vm0 = vmmov 0  }
 0xcbb   : > { %3687 = vmatmul.mubr.bf16.vlgmr.msra.gmra.mrb[36].mxu0 %v5259_v22  ;;  %5005 = vmatprep.subr.bf16.mxu1 %v3567_v43  ;;  %v3575_v5 = vsel %vm8244_vm9, %v3565_v44, %v3567_v43  ;;  %vm8261_vm9 = vmmov %vm8243_vm10 }
 0xcbc   : > { %3707 = vmatprep.subr.bf16.mxu0 %v3575_v5  ;;  %5006 = vmatpush3.bf16.msra.mxu1 %v3567_v43 }
 0xcbd   : > { %v3573_v40 = vpop.permute.xlu0 %3572  ;;  %3708 = vmatpush1.bf16.msra.mxu0 %v3574_v30  ;;  %3696 = vmatprep.mubr.bf16.mxu0 %v5262_v25 }
 0xcbe   : > { %5007 = vmatprep.subr.bf16.mxu1 %v3573_v40  ;;  %v3571_v6 = vpop.permute.xlu1 %3570 }
 0xcbf   : > { %3801 = vmatmul.mubr.bf16.gmra.mrb[40].mxu1 %v5264_v18  ;;  %v3577_v55 = vsel %vm8246_vm14, %v3571_v6, %v3573_v40 }
 0xcc0   : > { %3709 = vmatprep.subr.bf16.mxu0 %v3577_v55  ;;  %5008 = vmatpush3.bf16.msra.mxu1 %v3573_v40 }
 0xcc1   : > { %5009 = vmatprep.mubr.msk.bf16.mxu1 %vm905_vm13, %v5265_v54 }
 0xcc2   : > { %v3569_v28 = vpop.permute.xlu1 %3568 }
 0xcc3   : > { %v3576_v60 = vsel %vm8247_vm15, %v3569_v28, %v3571_v6  ;;  %3697 = vmatmul.mubr.bf16.gmra.mrb[40].mxu0 %v5264_v18  ;;  %vm8263_vm15 = vmmov %vm8246_vm14 }
 0xcc4   : > { %3710 = vmatpush1.bf16.msra.mxu0 %v3576_v60  ;;  %3739 = vmatprep.mubr.bf16.mxu0 %v5514_v48 }
 0xcc7   : > { %5010 = vmatmul.mubr.msk.bf16.vlgmr.msra.gmra.mrb[44].mxu1 %vm905_vm13, %v5266_v1 }
 0xccb   : > { %4781 = vmatmul.mubr.msk.bf16.vlgmr.msra.gmra.mrb[36].mxu0 %vm905_vm13, %v5265_v54 }
 0xccc   : > { %3749 = vmatprep.mubr.bf16.mxu0 %v5514_v48 }
 0xcce   : > { %v3601_v53 = vpop.permute.xlu0 %3600 }
 0xcd2   : > { %v3616_v11 = vpop.permute.xlu0 %3615 }
 0xcd3   : > { %4782 = vmatmul.mubr.msk.bf16.gmra.mrb[40].mxu0 %vm905_vm13, %v5266_v1  ;;  %v3606_v45 = vpop.permute.xlu1 %3605 }
 0xcd7   : > { %v3611_v4 = vpop.permute.xlu1 %3610 }
 0xd8a   : > { %v4932_v13 = vpop.f32.mrb[36].mxu1 }
 0xd8b   : > { %v4933_v24 = vpop.f32.mrb[37].mxu1 }
 0xd8c   : > { %v4934_v10 = vadd.f32 %v4933_v24, %v4932_v13  ;;  %v4935_v9 = vpop.f32.mrb[38].mxu1 }
 0xd8d   : > { %v4936_v3 = vpop.f32.mrb[39].mxu1 }
 0xd8e   : > { %v4937_v61 = vadd.f32 %v4936_v3, %v4935_v9  ;;  %v3795_v50 = vadd.f32 %v4934_v10, %v3601_v53 }
 0xd90   : > { %v3798_v42 = vadd.f32 %v4937_v61, %v3606_v45 }
 0xd92   : > { %v4938_v38 = vpop.f32.mrb[40].mxu1 }
 0xd93   : > { %v4939_v59 = vpop.f32.mrb[41].mxu1 }
 0xd94   : > { %v4940_v36 = vadd.f32 %v4939_v59, %v4938_v38  ;;  %v4941_v52 = vpop.f32.mrb[42].mxu1 }
 0xd95   : > { %v4942_v21 = vpop.f32.mrb[43].mxu1 }
 0xd96   : > { %v4943_v46 = vadd.f32 %v4942_v21, %v4941_v52  ;;  %v3803_v27 = vadd.f32 %v4940_v36, %v3611_v4 }
 0xd98   : > { %v3806_v31 = vadd.f32 %v4943_v46, %v3616_v11 }
 0xd9a   : > { %v5011_v8 = vpop.f32.mrb[44].mxu1 }
 0xd9b   : > { %v7611_v39 = vadd.f32 %v5011_v8, %v3803_v27  ;;  %v3843_v7 = vpop.f32.mrb[45].mxu1 }
 0xd9c   : > { %v3844_v51 = vadd.f32 %v3843_v7, %v3795_v50  ;;  %v5012_v23 = vpop.f32.mrb[46].mxu1 }
 0xd9d   : > { %v7613_v35 = vadd.f32 %v5012_v23, %v3806_v31  ;;  %v3846_v12 = vpop.f32.mrb[47].mxu1  ;;  %v3866_v52 = vsel %vm6073_vm1, %v7611_v39, 0.0 }
 0xd9e   : > { %v3847_v63 = vadd.f32 %v3846_v12, %v3798_v42  ;;  %v3741_v22 = vpop.f32.mrb[36].mxu0  ;;  %v3860_v49 = vsel %vm6073_vm1, %v3844_v51, 0.0  ;;  %v3881_v50 = vsel %vm905_vm13, %v3866_v52, 0.0 }
 0xd9f   : > { %v5049_v25 = vadd.f32 %v3741_v22, %v3601_v53  ;;  %v3743_v44 = vpop.f32.mrb[37].mxu0  ;;  %v3871_v28 = vsel %vm905_vm13, %v3860_v49, 0.0 }
 0xda0   : > { %v5050_v33 = vadd.f32 %v3743_v44, %v3601_v53  ;;  %v3745_v41 = vpop.f32.mrb[38].mxu0  ;;  %v3863_v54 = vsel %vm6073_vm1, %v3847_v63, 0.0 }
 0xda1   : > { %v3858_v43 = vsel %vm6077_vm2, %v5049_v25, 0.0  ;;  %v5051_v5 = vadd.f32 %v3745_v41, %v3606_v45  ;;  %v3747_v18 = vpop.f32.mrb[39].mxu0  ;;  %v3876_v24 = vsel %vm905_vm13, %v3863_v54, 0.0 }
 0xda2   : > { %v3859_v30 = vsel %vm6081_vm3, %v5050_v33, 0.0  ;;  %v5052_v40 = vadd.f32 %v3747_v18, %v3606_v45 }
 0xda3   : > { %v3870_v6 = vadd.f32 %v3859_v30, %v3858_v43  ;;  %v3861_v55 = vsel %vm6077_vm2, %v5051_v5, 0.0 }
 0xda4   : > { %v3862_v60 = vsel %vm6081_vm3, %v5052_v40, 0.0 }
 0xda5   : > { %v3875_v1 = vadd.f32 %v3862_v60, %v3861_v55  ;;  %v3872_v13 = vadd.f32 %v3871_v28, %v3870_v6 }
 0xda6   : > { %v3751_v10 = vpop.f32.mrb[40].mxu0 }
 0xda7   : > { %v5053_v9 = vadd.f32 %v3751_v10, %v3611_v4  ;;  %v3753_v3 = vpop.f32.mrb[41].mxu0  ;;  %3873 = vadd.xlane.f32.xlu1 %v3872_v13  ;;  %v3877_v61 = vadd.f32 %v3876_v24, %v3875_v1 }
 0xda8   : > { %v5054_v45 = vadd.f32 %v3753_v3, %v3611_v4  ;;  %v3755_v53 = vpop.f32.mrb[42].mxu0  ;;  %v3869_v4 = vsel %vm6073_vm1, %v7613_v35, 0.0 }
 0xda9   : > { %v3864_v38 = vsel %vm6077_vm2, %v5053_v9, 0.0  ;;  %v7631_v59 = vadd.f32 %v3755_v53, %v3616_v11  ;;  %v3757_v36 = vpop.f32.mrb[43].mxu0  ;;  %3878 = vadd.xlane.f32.xlu0 %v3877_v61 }
 0xdaa   : > { %v3865_v21 = vsel %vm6081_vm3, %v5054_v45, 0.0  ;;  %v7638_v46 = vadd.f32 %v3757_v36, %v3616_v11  ;;  %v3886_v11 = vsel %vm905_vm13, %v3869_v4, 0.0 }
 0xdab   : > { %v3880_v27 = vadd.f32 %v3865_v21, %v3864_v38  ;;  %v3867_v31 = vsel %vm6077_vm2, %v7631_v59, 0.0 }
 0xdac   : > { %v3868_v8 = vsel %vm6081_vm3, %v7638_v46, 0.0 }
 0xdad   : > { %v3885_v7 = vadd.f32 %v3868_v8, %v3867_v31  ;;  %v3882_v23 = vadd.f32 %v3881_v50, %v3880_v27 }
 0xdaf   : > { %3883 = vadd.xlane.f32.xlu0 %v3882_v23  ;;  %v3887_v42 = vadd.f32 %v3886_v11, %v3885_v7 }
 0xdb1   : > { %3888 = vadd.xlane.f32.xlu1 %v3887_v42 }
 0xe34   : > { %v3874_v12 = vpop.xlane.xlu1 %3873 }
 0xe35   : > { %v3890_v22 = vmul.f32 0.00390625, %v3874_v12 }
 0xe36   : > { %v3879_v44 = vpop.xlane.xlu0 %3878 }
 0xe37   : > { %v7651_v41 = vsub.f32 %v5049_v25, %v3890_v22  ;;  %v7653_v49 = vsub.f32 %v5050_v33, %v3890_v22  ;;  %v7655_v43 = vsub.f32 %v3844_v51, %v3890_v22  ;;  %v3891_v18 = vmul.f32 0.00390625, %v3879_v44 }
 0xe39   : > { %v3906_v30 = vsel %vm6077_vm2, %v7651_v41, 0.0  ;;  %v3907_v54 = vsel %vm6081_vm3, %v7653_v49, 0.0  ;;  %v3908_v6 = vsel %vm6073_vm1, %v7655_v43, 0.0  ;;  %v7666_v55 = vsub.f32 %v5051_v5, %v3891_v18 }
 0xe3a   : > { %v3918_v25 = vmul.f32 %v3906_v30, %v3906_v30  ;;  %v3919_v33 = vmul.f32 %v3907_v54, %v3907_v54  ;;  %v7668_v28 = vsub.f32 %v5052_v40, %v3891_v18  ;;  %v7670_v51 = vsub.f32 %v3847_v63, %v3891_v18 }
 0xe3b   : > { %v3909_v60 = vsel %vm6077_vm2, %v7666_v55, 0.0  ;;  %v3920_v1 = vmul.f32 %v3908_v6, %v3908_v6 }
 0xe3c   : > { %v3910_v13 = vsel %vm6081_vm3, %v7668_v28, 0.0  ;;  %v3911_v5 = vsel %vm6073_vm1, %v7670_v51, 0.0  ;;  %v3921_v24 = vmul.f32 %v3909_v60, %v3909_v60  ;;  %v3884_v10 = vpop.xlane.xlu0 %3883  ;;  %v3930_v3 = vadd.f32 %v3919_v33, %v3918_v25 }
 0xe3d   : > { %v3922_v40 = vmul.f32 %v3910_v13, %v3910_v13  ;;  %v3892_v61 = vmul.f32 0.00390625, %v3884_v10  ;;  %v3931_v63 = vsel %vm905_vm13, %v3920_v1, 0.0  ;;  %v3923_v53 = vmul.f32 %v3911_v5, %v3911_v5 }
 0xe3e   : > { %v3932_v38 = vadd.f32 %v3931_v63, %v3930_v3  ;;  %v3889_v12 = vpop.xlane.xlu1 %3888 }
 0xe3f   : > { %v7682_v36 = vsub.f32 %v5053_v9, %v3892_v61  ;;  %v7684_v52 = vsub.f32 %v5054_v45, %v3892_v61  ;;  %v7687_v21 = vsub.f32 %v7611_v39, %v3892_v61  ;;  %v3935_v4 = vadd.f32 %v3922_v40, %v3921_v24 }
 0xe40   : > { %3933 = vadd.xlane.f32.xlu0 %v3932_v38  ;;  %v3936_v27 = vsel %vm905_vm13, %v3923_v53, 0.0  ;;  %v3893_v22 = vmul.f32 0.00390625, %v3889_v12 }
 0xe41   : > { %v3912_v31 = vsel %vm6077_vm2, %v7682_v36, 0.0  ;;  %v3913_v8 = vsel %vm6081_vm3, %v7684_v52, 0.0  ;;  %v3914_v9 = vsel %vm6073_vm1, %v7687_v21, 0.0  ;;  %v3937_v39 = vadd.f32 %v3936_v27, %v3935_v4 }
 0xe42   : > { %v3924_v45 = vmul.f32 %v3912_v31, %v3912_v31  ;;  %v3925_v50 = vmul.f32 %v3913_v8, %v3913_v8  ;;  %v3926_v7 = vmul.f32 %v3914_v9, %v3914_v9  ;;  %v7712_v44 = vsub.f32 %v7631_v59, %v3893_v22 }
 0xe43   : > { %3938 = vadd.xlane.f32.xlu1 %v3937_v39 }
 0xe44   : > { %v3940_v23 = vadd.f32 %v3925_v50, %v3924_v45  ;;  %v3941_v11 = vsel %vm905_vm13, %v3926_v7, 0.0 }
 0xe46   : > { %v3942_v42 = vadd.f32 %v3941_v11, %v3940_v23 }
 0xe48   : > { %3943 = vadd.xlane.f32.xlu0 %v3942_v42 }
 0xe54   : > { %3979 = vperm.xlu1 %5225, %v7532_v34  }
 0xe58   : > { %5226 = vset.pattern.permute.xlu1 %v5516_v57 }
 0xe59   : > { %4003 = vperm.xlu1 %5226, %v7537_v19  }
 0xe5d   : > { %4007 = vperm.xlu1 %5226, %v7532_v34   ;;  %v7718_v34 = vsub.f32 %v7613_v35, %v3893_v22 }
 0xe5e   : > { %3975 = vperm.xlu0 %5224, %v7537_v19   ;;  %v7715_v19 = vsub.f32 %v7638_v46, %v3893_v22 }
 0xe61   : > { %5227 = vset.pattern.permute.xlu1 %v5515_v2  ;;  %v3915_v2 = vsel %vm6077_vm2, %v7712_v44, 0.0 }
 0xe62   : > { %5229 = vset.pattern.permute.xlu0 %v5514_v48  ;;  %3983 = vperm.xlu1 %5227, %v7544_v47   ;;  %v3927_v59 = vmul.f32 %v3915_v2, %v3915_v2 }
 0xe66   : > { %3987 = vperm.xlu1 %5227, %v7549_v32  }
 0xe6a   : > { %5228 = vset.pattern.permute.xlu1 %v5516_v57  ;;  %v3916_v57 = vsel %vm6081_vm3, %v7715_v19, 0.0 }
 0xe6b   : > { %4011 = vperm.xlu1 %5228, %v7544_v47   ;;  %v3917_v47 = vsel %vm6073_vm1, %v7718_v34, 0.0  ;;  %v3928_v18 = vmul.f32 %v3916_v57, %v3916_v57 }
 0xe6c   : > { %v3929_v30 = vmul.f32 %v3917_v47, %v3917_v47 }
 0xe6d   : > { %v3945_v46 = vadd.f32 %v3928_v18, %v3927_v59 }
 0xe6e   : > { %v3946_v54 = vsel %vm905_vm13, %v3929_v30, 0.0 }
 0xe6f   : > { %v3947_v35 = vadd.f32 %v3946_v54, %v3945_v46 }
 0xe8f   : > { %3948 = vadd.xlane.f32.xlu1 %v3947_v35 }
 0xea0   : > { %4015 = vperm.xlu1 %5228, %v7549_v32  }
 0xea4   : > { %5230 = vset.pattern.permute.xlu1 %v5514_v48 }
 0xecd   : > { %v3934_v6 = vpop.xlane.xlu0 %3933 }
 0xece   : > { %v3950_v25 = vmul.f32 0.00390625, %v3934_v6 }
 0xed0   : > { %v3954_v33 = vadd.f32 1e-05, %v3950_v25  ;;  %v3939_v60 = vpop.xlane.xlu1 %3938 }
 0xed1   : > { %v3951_v1 = vmul.f32 0.00390625, %v3939_v60 }
 0xed2   : > { %5294 = vrsqrt.f32 %v3954_v33 }
 0xed3   : > { %v3955_v13 = vadd.f32 1e-05, %v3951_v1 }
 0xed4   : > { %v3980_v24 = vpop.permute.xlu1 %3979 }
 0xed5   : > { %v3944_v5 = vpop.xlane.xlu0 %3943  ;;  %5296 = vrsqrt.f32 %v3955_v13 }
 0xed6   : > { %v3952_v10 = vmul.f32 0.00390625, %v3944_v5 }
 0xed8   : > { %v3956_v3 = vadd.f32 1e-05, %v3952_v10  ;;  %v4004_v40 = vpop.permute.xlu1 %4003 }
 0xeda   : > { %5298 = vrsqrt.f32 %v3956_v3 }
 0xedc   : > { %v5295_v61 = vpop.eup %5294  ;;  %v4008_v4 = vpop.permute.xlu1 %4007 }
 0xedd   : > { %v3962_v63 = vmul.f32 %v5295_v61, %v7651_v41  ;;  %v3963_v32 = vmul.f32 %v5295_v61, %v7653_v49  ;;  %v3964_v53 = vmul.f32 %v5295_v61, %v7655_v43  ;;  %v3976_v38 = vpop.permute.xlu0 %3975 }
 0xedf   : > { %v3990_v27 = vmul.f32 %v3976_v38, %v3962_v63  ;;  %v3991_v31 = vmul.f32 %v3976_v38, %v3963_v32  ;;  %v3992_v8 = vmul.f32 %v3976_v38, %v3964_v53  ;;  %v5297_v9 = vpop.eup %5296 }
 0xee0   : > { %v3965_v7 = vmul.f32 %v5297_v9, %v7666_v55  ;;  %v3966_v23 = vmul.f32 %v5297_v9, %v7668_v28  ;;  %v3967_v11 = vmul.f32 %v5297_v9, %v7670_v51 }
 0xee1   : > { %v4018_v45 = vadd.f32 %v4004_v40, %v3990_v27  ;;  %v4019_v50 = vadd.f32 %v4004_v40, %v3991_v31  ;;  %v4020_v39 = vadd.f32 %v4004_v40, %v3992_v8  ;;  %v3984_v41 = vpop.permute.xlu1 %3983 }
 0xee2   : > { %v3993_v43 = vmul.f32 %v3980_v24, %v3965_v7  ;;  %v3994_v22 = vmul.f32 %v3980_v24, %v3966_v23  ;;  %v3995_v2 = vmul.f32 %v3980_v24, %v3967_v11 }
 0xee3   : > { %v4031_v42 = vmax.f32 %v4019_v50, 0.0  ;;  %v4030_v49 = vmax.f32 %v4018_v45, 0.0  ;;  %v4032_v57 = vmax.f32 %v4020_v39, 0.0 }
 0xee4   : > { %v5299_v12 = vpop.eup %5298  ;;  %v4021_v28 = vadd.f32 %v4008_v4, %v3993_v43  ;;  %v4022_v30 = vadd.f32 %v4008_v4, %v3994_v22  ;;  %v4023_v51 = vadd.f32 %v4008_v4, %v3995_v2 }
 0xee5   : > { %v3968_v47 = vmul.f32 %v5299_v12, %v7682_v36  ;;  %v3969_v59 = vmul.f32 %v5299_v12, %v7684_v52  ;;  %v3970_v18 = vmul.f32 %v5299_v12, %v7687_v21  ;;  %v4043_v55 = vsel %vm6081_vm3, %v4031_v42, 0.0  ;;  %v3988_v54 = vpop.permute.xlu1 %3987 }
 0xee6   : > { %4068 = vrot.lane.b32.xlu1 %v4043_v55, %s8248_s30  ;;  %v4042_v46 = vsel %vm6077_vm2, %v4030_v49, 0.0  ;;  %v4033_v35 = vmax.f32 %v4021_v28, 0.0  ;;  %v4034_v25 = vmax.f32 %v4022_v30, 0.0  ;;  %v4035_v21 = vmax.f32 %v4023_v51, 0.0 }
 0xee7   : > { %4066 = vrot.lane.b32.xlu0 %v4042_v46, %s8248_s30  ;;  %v3996_v36 = vmul.f32 %v3984_v41, %v3968_v47  ;;  %v3997_v6 = vmul.f32 %v3984_v41, %v3969_v59  ;;  %v3998_v52 = vmul.f32 %v3984_v41, %v3970_v18  ;;  %v4044_v33 = vsel %vm6073_vm1, %v4032_v57, 0.0 }
 0xee8   : > { %v4045_v60 = vsel %vm6077_vm2, %v4033_v35, 0.0  ;;  %v4046_v10 = vsel %vm6081_vm3, %v4034_v25, 0.0  ;;  %v4047_v3 = vsel %vm6073_vm1, %v4035_v21, 0.0 }
 0xeea   : > { %4072 = vrot.lane.b32.xlu1 %v4045_v60, %s8248_s30  ;;  %v4012_v1 = vpop.permute.xlu1 %4011 }
 0xeeb   : > { %4070 = vrot.lane.b32.xlu0 %v4044_v33, %s8248_s30  ;;  %v4024_v13 = vadd.f32 %v4012_v1, %v3996_v36  ;;  %v4025_v5 = vadd.f32 %v4012_v1, %v3997_v6  ;;  %v4026_v24 = vadd.f32 %v4012_v1, %v3998_v52 }
 0xeed   : > { %v4036_v40 = vmax.f32 %v4024_v13, 0.0  ;;  %v4037_v61 = vmax.f32 %v4025_v5, 0.0  ;;  %v4038_v63 = vmax.f32 %v4026_v24, 0.0 }
 0xeee   : > { %4076 = vrot.lane.b32.xlu1 %v4047_v3, %s8248_s30 }
 0xeef   : > { %4074 = vrot.lane.b32.xlu0 %v4046_v10, %s8248_s30  ;;  %v4049_v32 = vsel %vm6081_vm3, %v4037_v61, 0.0  ;;  %v4048_v53 = vsel %vm6077_vm2, %v4036_v40, 0.0  ;;  %v4050_v38 = vsel %vm6073_vm1, %v4038_v63, 0.0 }
 0xef2   : > { %4080 = vrot.lane.b32.xlu1 %v4049_v32, %s8248_s30 }
 0xef3   : > { %4078 = vrot.lane.b32.xlu0 %v4048_v53, %s8248_s30 }
 0xef7   : > { %4082 = vrot.lane.b32.xlu0 %v4050_v38, %s8248_s30 }
 0xf1c   : > { %v3949_v4 = vpop.xlane.xlu1 %3948 }
 0xf1d   : > { %v3953_v27 = vmul.f32 0.00390625, %v3949_v4 }
 0xf1f   : > { %v3957_v31 = vadd.f32 1e-05, %v3953_v27 }
 0xf20   : > { %v4016_v11 = vpop.permute.xlu1 %4015 }
 0xf21   : > { %5300 = vrsqrt.f32 %v3957_v31 }
 0xf2b   : > { %v5301_v8 = vpop.eup %5300 }
 0xf2c   : > { %v3971_v9 = vmul.f32 %v5301_v8, %v7712_v44  ;;  %v3972_v45 = vmul.f32 %v5301_v8, %v7715_v19  ;;  %v3973_v50 = vmul.f32 %v5301_v8, %v7718_v34 }
 0xf2e   : > { %v3999_v39 = vmul.f32 %v3988_v54, %v3971_v9  ;;  %v4000_v7 = vmul.f32 %v3988_v54, %v3972_v45  ;;  %v4001_v23 = vmul.f32 %v3988_v54, %v3973_v50 }
 0xf30   : > { %v4027_v41 = vadd.f32 %v4016_v11, %v3999_v39  ;;  %v4028_v42 = vadd.f32 %v4016_v11, %v4000_v7  ;;  %v4029_v49 = vadd.f32 %v4016_v11, %v4001_v23  ;;  %v7890_v39 = vld [vmem:[%s8103_s7] sm:$0xff] }
 0xf31   : > { %v4786_v7 = vcombine.high %v7890_v39, %v7890_v39 }
 0xf32   : > { %v4039_v12 = vmax.f32 %v4027_v41, 0.0  ;;  %v4040_v43 = vmax.f32 %v4028_v42, 0.0  ;;  %v4041_v22 = vmax.f32 %v4029_v49, 0.0  ;;  %v2332_v49 = vld [vmem:[%s8102_s6 + $0x8] sm:$0xff] }
 0xf33   : > { %4375 = vmatprep.mubr.bf16.mxu1 %v4786_v7  ;;  %4457 = vmatprep.mubr.bf16.mxu0 %v4786_v7 }
 0xf34   : > { %v4052_v2 = vsel %vm6081_vm3, %v4040_v43, 0.0  ;;  %v4051_v44 = vsel %vm6077_vm2, %v4039_v12, 0.0  ;;  %v4053_v19 = vsel %vm6073_vm1, %v4041_v22, 0.0  ;;  %v2331_v12 = vld [vmem:[%s8102_s6] sm:$0xff]  ;;  %vm8255_vm1 = vcmask 752640  }
 0xf35   : > { %4086 = vrot.lane.b32.xlu0 %v4052_v2, %s8248_s30  ;;  %4084 = vrot.lane.b32.xlu1 %v4051_v44, %s8248_s30  ;;  %v4324_v43 = vld [vmem:[%s8104_s8] sm:$0xff]  ;;  %vm8256_vm2 = vmmov %vm8255_vm1 }
 0xf36   : > { %vm8257_vm3 = vmmov %vm8255_vm1 }
 0xf39   : > { %4088 = vrot.lane.b32.xlu1 %v4053_v19, %s8248_s30  ;;  %s5103_s30 = smul.u32 3, %s5732_s20 }
 0xf58   : > { %v4069_v34 = vpop.permute.xlu1 %4068 }
 0xf59   : > { %v4067_v57 = vpop.permute.xlu0 %4066 }
 0xf5a   : > { %4110 = vst.msk [vmem:[#allocation2] sm:$0xff] %vm1375_vm4, %v4067_v57  ;;  %v4090_v47 = vsel %vm1354_vm12, %v4067_v57, %v4069_v34 }
 0xf5c   : > { %v4073_v59 = vpop.permute.xlu1 %4072 }
 0xf5d   : > { %v4071_v20 = vpop.permute.xlu0 %4070  ;;  %4113 = vst.msk [vmem:[#allocation2 + $0x18] sm:$0xff] %vm1375_vm4, %v4073_v59 }
 0xf5e   : > { %v4091_v16 = vsel %vm1354_vm12, %v4069_v34, %v4071_v20 }
 0xf5f   : > { %4112 = vst.msk [vmem:[#allocation2 + $0x10] sm:$0xff] %vm1378_vm11, %v4091_v16 }
 0xf60   : > { %v4077_v55 = vpop.permute.xlu1 %4076 }
 0xf61   : > { %v4075_v18 = vpop.permute.xlu0 %4074  ;;  %v4122_v51 = vld [vmem:[#allocation2] sm:$0xff] }
 0xf62   : > { %v4092_v14 = vsel %vm1354_vm12, %v4073_v59, %v4075_v18  ;;  %v4093_v28 = vsel %vm1354_vm12, %v4075_v18, %v4077_v55 }
 0xf63   : > { %v7787_v30 = vpack.c.bf16 %v4092_v14, %v4090_v47  ;;  %4115 = vst.msk [vmem:[#allocation2 + $0x28] sm:$0xff] %vm1378_vm11, %v4093_v28 }
 0xf64   : > { %v4125_v46 = vld [vmem:[#allocation2 + $0x18] sm:$0xff]  ;;  %v4081_v35 = vpop.permute.xlu1 %4080 }
 0xf65   : > { %v4079_v54 = vpop.permute.xlu0 %4078  ;;  %4343 = vmatprep.subr.bf16.mxu1 %v7787_v30  ;;  %v7791_v36 = vpack.c.bf16 %v4125_v46, %v4122_v51 }
 0xf66   : > { %4116 = vst.msk [vmem:[#allocation2 + $0x30] sm:$0xff] %vm1375_vm4, %v4079_v54  ;;  %v4094_v6 = vsel %vm1354_vm12, %v4079_v54, %v4081_v35  ;;  %v4124_v25 = vld [vmem:[#allocation2 + $0x10] sm:$0xff] }
 0xf67   : > { %4146 = vrot.lane.b32.xlu0 %v7791_v36, %s8249_s29  ;;  %4344 = vmatpush1.bf16.msra.mxu1 %v7791_v36 }
 0xf69   : > { %v4083_v52 = vpop.permute.xlu0 %4082 }
 0xf6a   : > { %v4127_v21 = vld [vmem:[#allocation2 + $0x28] sm:$0xff]  ;;  %v4095_v33 = vsel %vm1354_vm12, %v4081_v35, %v4083_v52 }
 0xf6b   : > { %4118 = vst.msk [vmem:[#allocation2 + $0x40] sm:$0xff] %vm1378_vm11, %v4095_v33  ;;  %v7800_v60 = vpack.c.bf16 %v4127_v21, %v4124_v25  ;;  %4168 = vrot.lane.b32.xlu0 %v7791_v36, %s8250_s17 }
 0xf6d   : > { %4150 = vrot.lane.b32.xlu1 %v7800_v60, %s8249_s29  ;;  %v4128_v40 = vld [vmem:[#allocation2 + $0x30] sm:$0xff] }
 0xf6f   : > { %4190 = vrot.lane.b32.xlu0 %v7791_v36, %s8202_s23 }
 0xf71   : > { %4172 = vrot.lane.b32.xlu1 %v7800_v60, %s8250_s17 }
 0xf72   : > { %v4130_v32 = vld [vmem:[#allocation2 + $0x40] sm:$0xff] }
 0xf73   : > { %4212 = vrot.lane.b32.xlu0 %v7791_v36, %s8235_s15 }
 0xf75   : > { %4194 = vrot.lane.b32.xlu1 %v7800_v60, %s8202_s23 }
 0xf77   : > { %4148 = vrot.lane.b32.xlu0 %v7787_v30, %s8249_s29 }
 0xf79   : > { %4216 = vrot.lane.b32.xlu1 %v7800_v60, %s8235_s15 }
 0xf7b   : > { %4170 = vrot.lane.b32.xlu0 %v7787_v30, %s8250_s17 }
 0xf7f   : > { %4192 = vrot.lane.b32.xlu0 %v7787_v30, %s8202_s23 }
 0xf83   : > { %4214 = vrot.lane.b32.xlu0 %v7787_v30, %s8235_s15 }
 0xfa7   : > { %v4087_v1 = vpop.permute.xlu0 %4086  ;;  %v4085_v13 = vpop.permute.xlu1 %4084 }
 0xfa8   : > { %v4096_v5 = vsel %vm1354_vm12, %v4085_v13, %v4087_v1  ;;  %4119 = vst.msk [vmem:[#allocation2 + $0x48] sm:$0xff] %vm1375_vm4, %v4085_v13  ;;  %vm8258_vm4 = vmmov %vm8255_vm1 }
 0xfa9   : > { %v7826_v24 = vpack.c.bf16 %v4096_v5, %v4094_v6 }
 0xfab   : > { %v4089_v10 = vpop.permute.xlu1 %4088  ;;  %4345 = vmatprep.subr.bf16.mxu1 %v7826_v24 }
 0xfac   : > { %v4097_v3 = vsel %vm1354_vm12, %v4087_v1, %v4089_v10  ;;  %vm8260_vm12 = vmmov %vm8243_vm10 }
 0xfad   : > { %4121 = vst.msk [vmem:[#allocation2 + $0x58] sm:$0xff] %vm1378_vm11, %v4097_v3  ;;  %vm8259_vm11 = vmmov %vm8243_vm10 }
 0xfaf   : > { %v4131_v61 = vld [vmem:[#allocation2 + $0x48] sm:$0xff] }
 0xfb0   : > { %v4137_v63 = vpack.c.bf16 %v4131_v61, %v4128_v40 }
 0xfb2   : > { %4152 = vrot.lane.b32.xlu1 %v4137_v63, %s8249_s29  ;;  %4346 = vmatpush1.bf16.msra.mxu1 %v4137_v63 }
 0xfb4   : > { %v4133_v53 = vld [vmem:[#allocation2 + $0x58] sm:$0xff] }
 0xfb5   : > { %v7832_v38 = vpack.c.bf16 %v4133_v53, %v4130_v32 }
 0xfb6   : > { %4174 = vrot.lane.b32.xlu1 %v4137_v63, %s8250_s17 }
 0xfb7   : > { %4156 = vrot.lane.b32.xlu0 %v7832_v38, %s8249_s29 }
 0xfba   : > { %4196 = vrot.lane.b32.xlu1 %v4137_v63, %s8202_s23 }
 0xfbb   : > { %4236 = vrot.lane.b32.xlu0 %v7787_v30, %s8207_s22 }
 0xfbe   : > { %4154 = vrot.lane.b32.xlu1 %v7826_v24, %s8249_s29  ;;  %s7991_s29 = scalar_lea.vmem [#allocation10], %s5102_s19 }
 0xfbf   : > { %4178 = vrot.lane.b32.xlu0 %v7832_v38, %s8250_s17 }
 0xfc2   : > { %4218 = vrot.lane.b32.xlu1 %v4137_v63, %s8235_s15 }
 0xfc3   : > { %4234 = vrot.lane.b32.xlu0 %v7791_v36, %s8207_s22 }
 0xfc6   : > { %4176 = vrot.lane.b32.xlu1 %v7826_v24, %s8250_s17  ;;  %s458_s17 = scalar_lea.vmem [#allocation11], %s5103_s30 }
 0xfc7   : > { %4200 = vrot.lane.b32.xlu0 %v7832_v38, %s8202_s23 }
 0xfca   : > { %4238 = vrot.lane.b32.xlu1 %v7800_v60, %s8207_s22 }
 0xfcb   : > { %4258 = vrot.lane.b32.xlu0 %v7787_v30, %s8178_s12 }
 0xfce   : > { %4198 = vrot.lane.b32.xlu1 %v7826_v24, %s8202_s23  ;;  %s4528_s23 = sand.u32 1, %s5612_s9  }
 0xfcf   : > { %4222 = vrot.lane.b32.xlu0 %v7832_v38, %s8235_s15 }
 0xfd2   : > { %4240 = vrot.lane.b32.xlu1 %v4137_v63, %s8207_s22 }
 0xfd3   : > { %4256 = vrot.lane.b32.xlu0 %v7791_v36, %s8178_s12 }
 0xfd6   : > { %4220 = vrot.lane.b32.xlu1 %v7826_v24, %s8235_s15  ;;  %s5112_s15 = smul.u32 48, %s5612_s9 }
 0xfd7   : > { %4244 = vrot.lane.b32.xlu0 %v7832_v38, %s8207_s22 }
 0xfd8   : > { %s8004_s18 = scalar_lea.hbm %s8107_s11, %s5112_s15 }
 0xfd9   : > { %v4147_v4 = vpop.permute.xlu0 %4146 }
 0xfda   : > { %4260 = vrot.lane.b32.xlu1 %v7800_v60, %s8178_s12 }
 0xfdb   : > { %4280 = vrot.lane.b32.xlu0 %v7787_v30, %s8179_s13 }
 0xfdd   : > { %v4169_v27 = vpop.permute.xlu0 %4168 }
 0xfde   : > { %4242 = vrot.lane.b32.xlu1 %v7826_v24, %s8207_s22 }
 0xfdf   : > { %v7870_v31 = vpop.permute.xlu1 %4150  ;;  %4266 = vrot.lane.b32.xlu0 %v7832_v38, %s8178_s12 }
 0xfe1   : > { %v7876_v8 = vpop.permute.xlu0 %4190 }
 0xfe2   : > { %4262 = vrot.lane.b32.xlu1 %v4137_v63, %s8178_s12 }
 0xfe3   : > { %v7878_v9 = vpop.permute.xlu1 %4172  ;;  %4278 = vrot.lane.b32.xlu0 %v7791_v36, %s8179_s13 }
 0xfe5   : > { %v7883_v45 = vpop.permute.xlu0 %4212 }
 0xfe6   : > { %4264 = vrot.lane.b32.xlu1 %v7826_v24, %s8178_s12  ;;  %s4562_s12 = sshll.u32 %s458_s17, 4  ;;  %s4563_s12 = int_to_ptr.vmem [resolvable:$true] %s4562_s12 }
 0xfe7   : > { %v7885_v50 = vpop.permute.xlu1 %4194  ;;  %4288 = vrot.lane.b32.xlu0 %v7832_v38, %s8179_s13  ;;  %s5366_s28 = scalar_lea.vmem %s4563_s12, 48 }
 0xfe8   : > { %p5367_p4 = scmp.ne.s32.totalorder %s4563_s12, %s5366_s28 }
 0xfe9   : > { %v4149_v23 = vpop.permute.xlu0 %4148 }
 0xfea   : > { %v4158_v11 = vsel %vm671_vm5, %v4147_v4, %v4149_v23  ;;  %v4159_v42 = vsel %vm671_vm5, %v4149_v23, %v7870_v31  ;;  %4282 = vrot.lane.b32.xlu1 %v7800_v60, %s8179_s13  ;;  %p5368_p6 = pnand %p5367_p4, %p5684_p12 }
 0xfeb   : > { %v4217_v41 = vpop.permute.xlu1 %4216  ;;  %4347 = vmatprep.subr.bf16.mxu1 %v4159_v42  ;;  %4302 = vrot.lane.b32.xlu0 %v7787_v30, %s8180_s27 }
 0xfec   : > { %4948 = vmatprep.subr.bf16.mxu0 %v4217_v41  ;;  %4348 = vmatpush1.bf16.msra.mxu1 %v4158_v11  ;;  %p5369_p8 = pneg %p5368_p6 }
 0xfed   : > { %4949 = vmatpush3.bf16.msra.mxu0 %v7800_v60  ;;  %v4171_v22 = vpop.permute.xlu0 %4170 }
 0xfee   : > { %4286 = vrot.lane.b32.xlu1 %v7826_v24, %s8179_s13  ;;  %v4181_v14 = vsel %vm694_vm6, %v4171_v22, %v7878_v9  ;;  %v4180_v51 = vsel %vm694_vm6, %v4169_v27, %v4171_v22 }
 0xfef   : > { %4300 = vrot.lane.b32.xlu0 %v7791_v36, %s8180_s27 }
 0xff1   : > { %v4193_v2 = vpop.permute.xlu0 %4192 }
 0xff2   : > { %4284 = vrot.lane.b32.xlu1 %v4137_v63, %s8179_s13  ;;  %v4203_v6 = vsel %vm717_vm7, %v4193_v2, %v7885_v50  ;;  %v4202_v21 = vsel %vm717_vm7, %v7876_v8, %v4193_v2  ;;  %s8006_s13 = scalar_lea.sflag [#allocation12], %s4528_s23 }
 0xff3   : > { %4310 = vrot.lane.b32.xlu0 %v7832_v38, %s8180_s27 }
 0xff5   : > { %v4215_v19 = vpop.permute.xlu0 %4214 }
 0xff6   : > { %4304 = vrot.lane.b32.xlu1 %v7800_v60, %s8180_s27  ;;  %v4225_v5 = vsel %vm740_vm8, %v4215_v19, %v4217_v41  ;;  %v4224_v3 = vsel %vm740_vm8, %v7883_v45, %v4215_v19 }
 0xff7   : > { %4327 = vperm.xlu0 %5229, %v4324_v43  }
 0xffa   : > { %4308 = vrot.lane.b32.xlu1 %v7826_v24, %s8180_s27 }
 0xffe   : > { %4306 = vrot.lane.b32.xlu1 %v4137_v63, %s8180_s27  ;;  %s5520_s27 = smov [#allocation11]  }
 0xfff   : > { %s5370_s14 = sshll.u32 %s5520_s27, 4  ;;  %s5371_s14 = int_to_ptr.vmem [resolvable:$false] %s5370_s14 }
0x1000   : > { %s5372_s19 = scalar_lea.vmem %s5371_s14, 96  ;;  %p5373_p10 = scmp.lt.s32.totalorder %s4563_s12, %s5371_s14 }
0x1001   : > { %p5374_p13 = scmp.lt.s32.totalorder %s5372_s19, %s5366_s28 }
0x1002   : > { %2340 = vperm.xlu1 %5230, %v2332_v49  }
0x1003   : > { %p5375_p3 = por %p5374_p13, %p5373_p10 }
0x1005   : > { %p5376_p7 = pnand %p5375_p3, %p5369_p8 }
0x1006   : > { %2335 = vperm.xlu1 %5230, %v2331_v12  }
0x1024   : > { %v4153_v44 = vpop.permute.xlu1 %4152 }
0x1028   : > { %v4175_v34 = vpop.permute.xlu1 %4174 }
0x1029   : > { %v4157_v57 = vpop.permute.xlu0 %4156 }
0x102c   : > { %v4197_v47 = vpop.permute.xlu1 %4196 }
0x102d   : > { %v4237_v20 = vpop.permute.xlu0 %4236 }
0x1030   : > { %v4155_v59 = vpop.permute.xlu1 %4154 }
0x1031   : > { %v4160_v16 = vsel %vm671_vm5, %v4153_v44, %v4155_v59  ;;  %v4179_v18 = vpop.permute.xlu0 %4178  ;;  %v4161_v55 = vsel %vm671_vm5, %v4155_v59, %v4157_v57  ;;  %vm8251_vm5 = vcmask 883712  }
0x1032   : > { %4349 = vmatprep.subr.bf16.mxu1 %v4161_v55 }
0x1033   : > { %4350 = vmatpush1.bf16.msra.mxu1 %v4160_v16 }
0x1034   : > { %4351 = vmatprep.subr.bf16.mxu1 %v4181_v14  ;;  %v4219_v28 = vpop.permute.xlu1 %4218 }
0x1035   : > { %v4235_v30 = vpop.permute.xlu0 %4234 }
0x1037   : > { %4352 = vmatpush1.bf16.msra.mxu1 %v4180_v51 }
0x1038   : > { %v4177_v46 = vpop.permute.xlu1 %4176 }
0x1039   : > { %v4182_v54 = vsel %vm694_vm6, %v4175_v34, %v4177_v46  ;;  %v7933_v35 = vpop.permute.xlu0 %4200  ;;  %v4183_v36 = vsel %vm694_vm6, %v4177_v46, %v4179_v18  ;;  %vm8252_vm6 = vmmov %vm8251_vm5 }
0x103a   : > { %4353 = vmatprep.subr.bf16.mxu1 %v4183_v36  ;;  %v4246_v27 = vsel %vm8252_vm6, %v4235_v30, %v4237_v20 }
0x103b   : > { %4354 = vmatpush1.bf16.msra.mxu1 %v4182_v54 }
0x103c   : > { %4355 = vmatprep.subr.bf16.mxu1 %v4203_v6  ;;  %v4239_v52 = vpop.permute.xlu1 %4238 }
0x103d   : > { %v4259_v25 = vpop.permute.xlu0 %4258  ;;  %v4247_v53 = vsel %vm8251_vm5, %v4237_v20, %v4239_v52 }
0x103f   : > { %4356 = vmatpush1.bf16.msra.mxu1 %v4202_v21 }
0x1040   : > { %v4199_v33 = vpop.permute.xlu1 %4198 }
0x1041   : > { %v4204_v60 = vsel %vm717_vm7, %v4197_v47, %v4199_v33  ;;  %v4223_v1 = vpop.permute.xlu0 %4222  ;;  %v4205_v13 = vsel %vm717_vm7, %v4199_v33, %v7933_v35  ;;  %vm8253_vm7 = vmmov %vm8251_vm5  ;;  %v4785_v47 = vcombine.low %v7890_v39, %v7890_v39 }
0x1042   : > { %4357 = vmatprep.subr.bf16.mxu1 %v4205_v13  ;;  %4950 = vmatprep.subr.bf16.mxu0 %v4223_v1 }
0x1043   : > { %4358 = vmatpush1.bf16.msra.mxu1 %v4204_v60  ;;  %4951 = vmatpush3.bf16.msra.mxu0 %v7832_v38 }
0x1044   : > { %4359 = vmatprep.subr.bf16.mxu1 %v4225_v5  ;;  %4952 = vmatprep.subr.bf16.mxu0 %v4239_v52  ;;  %v4241_v24 = vpop.permute.xlu1 %4240 }
0x1045   : > { %v4257_v10 = vpop.permute.xlu0 %4256 }
0x1046   : > { %v4268_v42 = vsel %vm8256_vm2, %v4257_v10, %v4259_v25 }
0x1047   : > { %4360 = vmatpush1.bf16.msra.mxu1 %v4224_v3  ;;  %4953 = vmatpush3.bf16.msra.mxu0 %v7870_v31 }
0x1048   : > { %v4221_v40 = vpop.permute.xlu1 %4220 }
0x1049   : > { %v4226_v61 = vsel %vm740_vm8, %v4219_v28, %v4221_v40  ;;  %v4245_v63 = vpop.permute.xlu0 %4244  ;;  %v4227_v32 = vsel %vm740_vm8, %v4221_v40, %v4223_v1  ;;  %vm8254_vm8 = vmmov %vm8251_vm5  ;;  %v5269_v28 = vld [vmem:[%s8103_s7 + $0x8] ss:$0 sps:$4 sm:$0xff]  }
0x104a   : > { %4361 = vmatprep.subr.bf16.mxu1 %v4227_v32  ;;  %4954 = vmatprep.subr.bf16.mxu0 %v4245_v63  ;;  %vm8264_vm5 = vmmov %vm8246_vm14 }
0x104b   : > { %4362 = vmatpush1.bf16.msra.mxu1 %v4226_v61  ;;  %4955 = vmatpush3.bf16.msra.mxu0 %v4157_v57  ;;  %vm8265_vm6 = vmmov %vm8264_vm5 }
0x104c   : > { %4363 = vmatprep.subr.bf16.mxu1 %v4247_v53  ;;  %v4261_v38 = vpop.permute.xlu1 %4260 }
0x104d   : > { %v4281_v4 = vpop.permute.xlu0 %4280  ;;  %4956 = vmatprep.subr.bf16.mxu0 %v4261_v38  ;;  %v4269_v23 = vsel %vm8255_vm1, %v4259_v25, %v4261_v38 }
0x104f   : > { %4364 = vmatpush1.bf16.msra.mxu1 %v4246_v27  ;;  %4957 = vmatpush3.bf16.msra.mxu0 %v7878_v9 }
0x1050   : > { %v4243_v31 = vpop.permute.xlu1 %4242 }
0x1051   : > { %v4248_v8 = vsel %vm8253_vm7, %v4241_v24, %v4243_v31  ;;  %v4267_v45 = vpop.permute.xlu0 %4266  ;;  %v4249_v7 = vsel %vm8254_vm8, %v4243_v31, %v4245_v63 }
0x1052   : > { %4365 = vmatprep.subr.bf16.mxu1 %v4249_v7  ;;  %4958 = vmatprep.subr.bf16.mxu0 %v4267_v45 }
0x1053   : > { %4366 = vmatpush1.bf16.msra.mxu1 %v4248_v8  ;;  %4959 = vmatpush3.bf16.msra.mxu0 %v4179_v18 }
0x1054   : > { %4367 = vmatprep.subr.bf16.mxu1 %v4269_v23  ;;  %v4263_v11 = vpop.permute.xlu1 %4262 }
0x1055   : > { %v4279_v41 = vpop.permute.xlu0 %4278 }
0x1056   : > { %v4290_v44 = vsel %vm8260_vm12, %v4279_v41, %v4281_v4 }
0x1057   : > { %4368 = vmatpush1.bf16.msra.mxu1 %v4268_v42 }
0x1058   : > { %v4265_v49 = vpop.permute.xlu1 %4264 }
0x1059   : > { %v4270_v9 = vsel %vm8257_vm3, %v4263_v11, %v4265_v49  ;;  %v4271_v12 = vsel %vm8258_vm4, %v4265_v49, %v4267_v45  ;;  %v4289_v43 = vpop.permute.xlu0 %4288 }
0x105a   : > { %4369 = vmatprep.subr.bf16.mxu1 %v4271_v12 }
0x105b   : > { %4370 = vmatpush1.bf16.msra.mxu1 %v4270_v9 }
0x105c   : > { %v4283_v22 = vpop.permute.xlu1 %4282 }
0x105d   : > { %4960 = vmatprep.subr.bf16.mxu0 %v4283_v22  ;;  %v4291_v2 = vsel %vm8259_vm11, %v4281_v4, %v4283_v22  ;;  %v4303_v19 = vpop.permute.xlu0 %4302 }
0x105e   : > { %4371 = vmatprep.subr.bf16.mxu1 %v4291_v2  ;;  %4961 = vmatpush3.bf16.msra.mxu0 %v7885_v50 }
0x105f   : > { %4372 = vmatpush1.bf16.msra.mxu1 %v4290_v44  ;;  %4962 = vmatprep.subr.bf16.mxu0 %v4289_v43 }
0x1060   : > { %v4287_v34 = vpop.permute.xlu1 %4286 }
0x1061   : > { %v4293_v57 = vsel %vm8243_vm10, %v4287_v34, %v4289_v43  ;;  %v4301_v16 = vpop.permute.xlu0 %4300 }
0x1062   : > { %4373 = vmatprep.subr.bf16.mxu1 %v4293_v57  ;;  %4963 = vmatpush3.bf16.msra.mxu0 %v7933_v35  ;;  %v4312_v39 = vsel %vm8263_vm15, %v4301_v16, %v4303_v19  ;;  %v8266_v35 = vlaneseq }
0x1063   : > { %5013 = vmatprep.subr.bf16.mxu0 %v5504_v0 }
0x1064   : > { %v4285_v20 = vpop.permute.xlu1 %4284  ;;  %v2540_v36 = vshrl.u32 %v8266_v35, 7  ;;  %vm2561_vm7 = vcmp.lt.s32.totalorder %v8266_v35, 288 }
0x1065   : > { %v4292_v59 = vsel %vm8261_vm9, %v4285_v20, %v4287_v34  ;;  %4458 = vmatmul.mubr.bf16.vlgmr.msra.gmra.mrb[44].mxu0 %v4785_v47  ;;  %v4311_v55 = vpop.permute.xlu0 %4310 }
0x1066   : > { %4374 = vmatpush1.bf16.msra.mxu1 %v4292_v59  ;;  %5017 = vmatprep.mubr.msk.bf16.mxu0 %vm8262_vm0, %v5504_v0 }
0x1068   : > { %v4305_v50 = vpop.permute.xlu1 %4304 }
0x1069   : > { %4376 = vmatmul.mubr.bf16.vlgmr.msra.gmra.mrb[48].mxu1 %v4785_v47  ;;  %5014 = vmatpush3.bf16.msra.mxu0 %v4305_v50  ;;  %v4313_v18 = vsel %vm8246_vm14, %v4303_v19, %v4305_v50 }
0x106a   : > { %4384 = vmatprep.subr.bf16.mxu1 %v4313_v18  ;;  %5015 = vmatprep.subr.bf16.mxu0 %v5504_v0  ;;  %v5519_v0 = vmov 1966171168  }
0x106b   : > { %4385 = vmatpush1.bf16.msra.mxu1 %v4312_v39  ;;  %4416 = vmatprep.mubr.bf16.mxu1 %v5514_v48  ;;  %v2537_v48 = vunpack.c.l.s4 %v5519_v0 }
0x106c   : > { %v4309_v14 = vpop.permute.xlu1 %4308 }
0x106d   : > { %5016 = vmatpush3.bf16.msra.mxu0 %v4311_v55  ;;  %v4315_v30 = vsel %vm8264_vm5, %v4309_v14, %v4311_v55  ;;  %v2538_v54 = vunpack.c.0.s8 %v2537_v48 }
0x106e   : > { %4386 = vmatprep.subr.bf16.mxu1 %v4315_v30 }
0x106f   : > { %v2541_v52 = vsub.s32 %v2538_v54, %v2540_v36 }
0x1070   : > { %v4307_v51 = vpop.permute.xlu1 %4306  ;;  %5018 = vmatmul.mubr.msk.bf16.vlgmr.msra.gmra.mrb[48].mxu0 %vm905_vm13, %v5269_v28 }
0x1071   : > { %v4314_v46 = vsel %vm8265_vm6, %v4307_v51, %v4309_v14 }
0x1072   : > { %4387 = vmatpush1.bf16.msra.mxu1 %v4314_v46 }
0x1075   : > { %4788 = vmatmul.mubr.msk.bf16.vlgmr.msra.gmra.mrb[48].mxu1 %vm905_vm13, %v5269_v28 }
0x1081   : > { %v2341_v6 = vpop.permute.xlu1 %2340 }
0x1082   : > { %v5039_v25 = vadd.f32 %v7258_v62, %v2341_v6  ;;  %v5040_v21 = vadd.f32 %v7260_v56, %v2341_v6  ;;  %v2485_v33 = vadd.f32 %v7248_v58, %v2341_v6 }
0x1084   : > { %v2526_v60 = vadd.f32 %v7252_v26, %v2485_v33  ;;  %v2535_v1 = vcombine.low %v5039_v25, %v5040_v21 }
0x1085   : > { %v2336_v13 = vpop.permute.xlu1 %2335 }
0x1086   : > { %v2542_v5 = vrot.slane %v2535_v1, %v2541_v52  ;;  %v2549_v24 = vrot.slane %v2526_v60, %v2541_v52  ;;  %v5037_v10 = vadd.f32 %v7254_v29, %v2336_v13  ;;  %v5038_v3 = vadd.f32 %v7256_v15, %v2336_v13 }
0x1087   : > { %v2482_v40 = vadd.f32 %v7246_v17, %v2336_v13 }
0x1088   : > { %v2550_v62 = vcombine.low %v2542_v5, %v2549_v24  ;;  %2529 = vst [vmem:[%s7991_s29] sm:$0xff] %v5037_v10  ;;  %2530 = vst [vmem:[%s7991_s29 + $0x8] sm:$0xff] %v5038_v3 }
0x1089   : > { %v2523_v58 = vadd.f32 %v7250_v37, %v2482_v40 }
0x108a   : > { %v2557_v26 = vrot.slane %v2550_v62, %v2541_v52 }
0x108b   : > { %2531 = vst.msk [vmem:[%s7991_s29 + $0x10] sm:$0xff] %vm905_vm13, %v2523_v58 }
0x108c   : > { %2563 = vst.msk [vmem:[%s458_s17] sm:$0x7] %vm2561_vm7, %v2557_v26 }
0x108d   : > { %5379 = shalt.err (!%p5376_p7)
}
0x108e   : > { %s5380_s30 = scalar_lea.hbm %s8004_s18, 48  ;;  %s5384_s15 = scalar_lea.hbm %s8107_s11, 96 }
0x108f   : > { %p5381_p9 = scmp.ne.s32.totalorder %s8004_s18, %s5380_s30  ;;  %p5385_p5 = scmp.lt.u32.totalorder %s8004_s18, %s8107_s11 }
0x1090   : > { %p5386_p11 = scmp.lt.u32.totalorder %s5384_s15, %s5380_s30  ;;  %p5388_p4 = scmp.lt.u32.totalorder %s5380_s30, %s8004_s18 }
0x1091   : > { %p5382_p2 = pnand %p5381_p9, %p5684_p12 }
0x1092   : > { %p5387_p1 = por %p5386_p11, %p5385_p5 }
0x1093   : > { %p5383_p0 = pneg %p5382_p2 }
0x1094   : > { %p5389_p6 = por %p5388_p4, %p5387_p1 }
0x1096   : > { %p5390_p8 = pnand %p5389_p6, %p5383_p0 }
0x1098   : > { %5393 = shalt.err (!%p5390_p8)
}
0x1099   : > { %5121 = dma.vmem_to_hbm [thread:$0]  (%p5684_p12), %s4563_s12, 48, %s8004_s18, %s8006_s13  }
0x109a   : > { %s5111_s28 = smul.u32 384, %s5612_s9  ;;  %s4548_s27 = sshll.u32 %s7991_s29, 4  ;;  %s4549_s27 = int_to_ptr.vmem [resolvable:$true] %s4548_s27 }
0x109b   : > { %s4524_s30 = scalar_lea.sflag [#allocation7], %s5732_s20  ;;  %s5394_s23 = scalar_lea.vmem %s4549_s27, 384 }
0x109c   : > { %s8031_s17 = scalar_lea.hbm %s8106_s10, %s5111_s28  ;;  %p5395_p10 = scmp.ne.s32.totalorder %s4549_s27, %s5394_s23 }
0x109d   : > { %s5521_s15 = smov [#allocation10]  }
0x109e   : > { %p5396_p13 = pnand %p5395_p10, %p5684_p12  ;;  %s5398_s22 = sshll.u32 %s5521_s15, 4  ;;  %s5399_s22 = int_to_ptr.vmem [resolvable:$false] %s5398_s22 }
0x109f   : > { %s5400_s3 = scalar_lea.vmem %s5399_s22, 768  ;;  %p5401_p7 = scmp.lt.s32.totalorder %s4549_s27, %s5399_s22 }
0x10a0   : > { %p5397_p3 = pneg %p5396_p13  ;;  %p5402_p9 = scmp.lt.s32.totalorder %s5400_s3, %s5394_s23 }
0x10a2   : > { %p5403_p2 = por %p5402_p9, %p5401_p7 }
0x10a4   : > { %p5404_p0 = pnand %p5403_p2, %p5397_p3 }
0x10a6   : > { %5407 = shalt.err (!%p5404_p0)
}
0x10a7   : > { %s5408_s29 = scalar_lea.hbm %s8031_s17, 384  ;;  %s5412_s28 = scalar_lea.hbm %s8106_s10, 768 }
0x10a8   : > { %p5409_p5 = scmp.ne.s32.totalorder %s8031_s17, %s5408_s29  ;;  %p5413_p4 = scmp.lt.u32.totalorder %s8031_s17, %s8106_s10 }
0x10a9   : > { %p5414_p6 = scmp.lt.u32.totalorder %s5412_s28, %s5408_s29  ;;  %p5416_p10 = scmp.lt.u32.totalorder %s5408_s29, %s8031_s17 }
0x10aa   : > { %p5410_p11 = pnand %p5409_p5, %p5684_p12 }
0x10ab   : > { %p5415_p8 = por %p5414_p6, %p5413_p4 }
0x10ac   : > { %p5411_p1 = pneg %p5410_p11 }
0x10ad   : > { %p5417_p13 = por %p5416_p10, %p5415_p8 }
0x10af   : > { %p5418_p3 = pnand %p5417_p13, %p5411_p1 }
0x10b1   : > { %5421 = shalt.err (!%p5418_p3)
}
0x10b2   : > { %5120 = dma.vmem_to_hbm [thread:$0]  (%p5684_p12), %s4549_s27, 384, %s8031_s17, %s4524_s30   ;;  %v4328_v61 = vpop.permute.xlu0 %4327  ;;  %vm4521_vm13 = vcmask 257024  }
0x10b3   : > { %s4505_s23 = sld [smem:[#allocation4]]  ;;  %s5104_s27 = smul.u32 12, %s5732_s20 }
0x10b4   : > { %s5113_s30 = smul.u32 192, %s5612_s9  ;;  %s8267_s29 = sld [smem:[#allocation22_spill]] }
0x10b5   : > { %s465_s17 = scalar_lea.vmem [#allocation13], %s5104_s27  ;;  %s5522_s18 = smov [#allocation13]  }
0x10b6   : > { %s4576_s15 = sshll.u32 %s465_s17, 4  ;;  %s5426_s28 = sshll.u32 %s5522_s18, 4  ;;  %s4577_s15 = int_to_ptr.vmem [resolvable:$true] %s4576_s15  ;;  %s5427_s28 = int_to_ptr.vmem [resolvable:$false] %s5426_s28 }
0x10b7   : > { %s5422_s20 = scalar_lea.vmem %s4577_s15, 192  ;;  %s5428_s9 = scalar_lea.vmem %s5427_s28, 384 }
0x10b8   : > { %p5423_p7 = scmp.ne.s32.totalorder %s4577_s15, %s5422_s20  ;;  %p5429_p0 = scmp.lt.s32.totalorder %s4577_s15, %s5427_s28 }
0x10b9   : > { %v4506_v32 = vstv %s4505_s23  ;;  %p5430_p5 = scmp.lt.s32.totalorder %s5428_s9, %s5422_s20 }
0x10ba   : > { %s8056_s12 = scalar_lea.hbm %s8267_s29, %s5113_s30  ;;  %p5424_p9 = pnand %p5423_p7, %p5684_p12 }
0x10bb   : > { %p5431_p11 = por %p5430_p5, %p5429_p0 }
0x10bc   : > { %p5425_p2 = pneg %p5424_p9 }
0x10be   : > { %p5432_p1 = pnand %p5431_p11, %p5425_p2 }
0x1138   : > { %v4964_v17 = vpop.f32.mrb[44].mxu0 }
0x1139   : > { %v4965_v37 = vpop.f32.mrb[45].mxu0 }
0x113a   : > { %v4966_v29 = vadd.f32 %v4965_v37, %v4964_v17  ;;  %v4967_v15 = vpop.f32.mrb[46].mxu0 }
0x113b   : > { %v4968_v56 = vpop.f32.mrb[47].mxu0 }
0x113c   : > { %v4460_v63 = vadd.f32 %v4966_v29, %v4328_v61 }
0x1143   : > { %v4499_v53 = vpop.f32.mrb[48].mxu0 }
0x1144   : > { %v4500_v38 = vadd.f32 %v4499_v53, %v4460_v63  ;;  %v5019_v4 = vpop.f32.mrb[49].mxu0 }
0x1145   : > { %v4502_v27 = vpop.f32.mrb[50].mxu0 }
0x1146   : > { %v4509_v31 = vmul.f32 %v4506_v32, %v4500_v38  ;;  %v5020_v8 = vpop.f32.mrb[51].mxu0 }
0x1148   : > { %v4418_v45 = vpop.f32.mrb[48].mxu1  ;;  %v4514_v7 = vmul.f32 1.442695, %v4509_v31 }
0x1149   : > { %v5057_v23 = vadd.f32 %v4418_v45, %v4328_v61  ;;  %v4420_v11 = vpop.f32.mrb[49].mxu1 }
0x114a   : > { %v5058_v41 = vadd.f32 %v4420_v11, %v4328_v61  ;;  %v4422_v42 = vpop.f32.mrb[50].mxu1  ;;  %5302 = vpow2.f32 %v4514_v7 }
0x114b   : > { %v4507_v49 = vmul.f32 %v5057_v23, %v4506_v32  ;;  %v4423_v9 = vpop.f32.mrb[51].mxu1 }
0x114c   : > { %v4508_v12 = vmul.f32 %v5058_v41, %v4506_v32 }
0x114d   : > { %v4510_v43 = vmul.f32 1.442695, %v4507_v49 }
0x114e   : > { %v4512_v22 = vmul.f32 1.442695, %v4508_v12 }
0x114f   : > { %5304 = vpow2.f32 %v4510_v43 }
0x1150   : > { %5306 = vpow2.f32 %v4512_v22 }
0x1154   : > { %v5303_v2 = vpop.eup %5302 }
0x1155   : > { %4522 = vst.msk [vmem:[%s465_s17 + $0x8] sm:$0xf] %vm4521_vm13, %v5303_v2 }
0x1159   : > { %v5305_v44 = vpop.eup %5304 }
0x115a   : > { %v5307_v19 = vpop.eup %5306 }
0x115b   : > { %v4518_v34 = vcombine.low %v5305_v44, %v5307_v19 }
0x115d   : > { %4520 = vst [vmem:[%s465_s17] sm:$0xff] %v4518_v34 }
0x115e   : > { %5435 = shalt.err (!%p5432_p1)
}
0x115f   : > { %s5436_s14 = scalar_lea.hbm %s8056_s12, 192  ;;  %s5440_s27 = scalar_lea.hbm %s8267_s29, 384 }
0x1160   : > { %p5437_p4 = scmp.ne.s32.totalorder %s8056_s12, %s5436_s14  ;;  %p5441_p10 = scmp.lt.u32.totalorder %s8056_s12, %s8267_s29 }
0x1161   : > { %p5442_p13 = scmp.lt.u32.totalorder %s5440_s27, %s5436_s14  ;;  %p5444_p7 = scmp.lt.u32.totalorder %s5436_s14, %s8056_s12 }
0x1162   : > { %p5438_p6 = pnand %p5437_p4, %p5684_p12 }
0x1163   : > { %p5443_p3 = por %p5442_p13, %p5441_p10 }
0x1164   : > { %p5439_p8 = pneg %p5438_p6 }
0x1165   : > { %p5445_p9 = por %p5444_p7, %p5443_p3 }
0x1167   : > { %p5446_p2 = pnand %p5445_p9, %p5439_p8 }
0x1169   : > { %5449 = shalt.err (!%p5446_p2)
}
0x116a   : > { %5122 = dma.vmem_to_hbm [thread:$0]  (%p5684_p12), %s4577_s15, 192, %s8056_s12, %s8006_s13  }
0x116b PF: > { %s8268_s22 = sld [smem:[#allocation18_spill]]  ;;  %s8269_s3 = sld [smem:[#allocation19_spill]] }
0x116c   : > { %p8271_p5 = scmp.ge.s32.totalorder %s5496_s26, 2 }
0x1171   : > { %s4588_s20 = sand.u32 1, %s8268_s22   ;;  %p8270_p0 = scmp.ne.s32.totalorder %s8269_s3, 0 }
0x1172   : > { %s4589_s18 = scalar_lea.sflag [#allocation7], %s4588_s20 }
0x1173   : > { %p5135_p11 = pnand %p8271_p5, %p8270_p0 }
0x1175   : > { %5475 = dma.done.wait (!%p5135_p11), %s4589_s18, 384  }
0x1176   : > { %5477 = vsyncadd (!%p5135_p11), %s4589_s18, 4294966912  ;;  %s8272_s28 = sadd.s32 4294967294, %s5496_s26  }
0x1177   : > { %s4597_s9 = sand.u32 1, %s8272_s28  }
0x1178   : > { %s4598_s14 = scalar_lea.sflag [#allocation12], %s4597_s9 }
0x1179   : > { %5479 = dma.done.wait (!%p5135_p11), %s4598_s14, 240  }
0x117a   : > { %5481 = vsyncadd (!%p5135_p11), %s4598_s14, 4294967056  ;;  %s8273_s26 = sld [smem:[#allocation20_spill]]  ;;  %s8274_s23 = smov %s5488_s24 }
0x117b   : > { %s8275_s24 = smov %s5492_s25  ;;  %s8276_s25 = smov %s5680_s16 }
0x1180   : > { %p31_p12 = scmp.ge.s32.totalorder %s8273_s26, 4  }
0x1182   :  { %33 = sbr.rel (!%p31_p12) target bundleno = 12 (0xc), region = 145 }
0x1189   :  { %4612 = vsyncpa [#allocation6], 1 }
0x118a   :  { %4614 = vsyncpa [#allocation6 + $0x1], 1 }
0x118b   :  { %4615 = vsyncpa [#allocation9], 1 }
0x118c   :  { %4616 = vsyncpa [#allocation7], 1 }
0x118d   :  { %4618 = vsyncpa [#allocation7 + $0x1], 1 }
0x118e   :  { %4619 = vsyncpa [#allocation12], 1 }
0x118f   :  { %4621 = vsyncpa [#allocation12 + $0x1], 1 }

</bundles_post_ra>
